<compile_context>
chip_gen: v7x
topology: tpu7x:2x2x1
jax: 0.10.0
libtpu: 0.0.40
codegen_flags: <defaults>
</compile_context>

<pallas_src>
import functools

import jax
import jax.numpy as jnp
from jax import lax
from jax.experimental import pallas as pl
from jax.experimental.pallas import tpu as pltpu


# ----------------------------- conv3x3 + BN + ReLU -----------------------------

def _conv_bn_relu_kernel(x_ref, w_ref, s_ref, b_ref, o_ref, acc_ref):
    # x_ref  : (1, H+2, W+2, Cin_blk) bf16, channels-last, zero padded
    # w_ref  : (9, Cin_blk, Cout)     bf16
    # s_ref  : (1, Cout) f32 BN scale ; b_ref : (1, Cout) f32 BN bias (conv bias folded in)
    # o_ref  : (1, H*W, Cout)         bf16
    # acc_ref: (H*W, Cout)            f32 scratch, accumulated over the Cin-block grid axis
    ci = pl.program_id(1)
    Hp, Wp = x_ref.shape[1], x_ref.shape[2]
    H, W = Hp - 2, Wp - 2
    Cout = o_ref.shape[-1]
    cb = x_ref.shape[-1]

    @pl.when(ci == 0)
    def _():
        acc_ref[...] = jnp.zeros_like(acc_ref)

    part = jnp.zeros((H * W, Cout), jnp.float32)
    for t in range(9):                         # 9 taps formed in-kernel (no HBM im2col)
        dy, dx = t // 3, t % 3
        xt = x_ref[0, dy:dy + H, dx:dx + W, :].reshape(H * W, cb)
        part = part + jnp.dot(xt, w_ref[t], preferred_element_type=jnp.float32)
    acc_ref[...] += part

    @pl.when(ci == pl.num_programs(1) - 1)
    def _():
        out = jnp.maximum(acc_ref[...] * s_ref[...] + b_ref[...], 0.0)   # fused BN + ReLU
        o_ref[0] = out.astype(o_ref.dtype)


def conv_bn_relu(x, conv_w, conv_b, gamma, beta, mean, var, eps=1e-5, cin_block=None):
    B, Cin, H, W = x.shape
    Cout = conv_w.shape[0]
    assert H % 8 == 0 and W % 8 == 0, "feature map H, W must be multiples of 8"

    # Optional Cin tiling for large channel counts (block must be a multiple of 128);
    # default: single block (fine for small Cin).
    cb = Cin if cin_block is None else min(cin_block, Cin)
    assert Cin % cb == 0
    n_cb = Cin // cb
    Hp, Wp = H + 2, W + 2

    # channels-last bf16 padded input, weights as (9, Cin, Cout) bf16
    xp = jnp.pad(jnp.transpose(x, (0, 2, 3, 1)).astype(jnp.bfloat16),
                 ((0, 0), (1, 1), (1, 1), (0, 0)))
    w9 = jnp.transpose(conv_w, (2, 3, 1, 0)).reshape(9, Cin, Cout).astype(jnp.bfloat16)
    scale = (gamma / jnp.sqrt(var + eps)).astype(jnp.float32)
    bias = (beta + scale * (conv_b - mean)).astype(jnp.float32)   # fold conv bias into BN
    scale2 = scale.reshape(1, Cout)
    bias2 = bias.reshape(1, Cout)

    flops = 2 * B * H * W * 9 * Cin * Cout
    bytes_accessed = xp.size * 2 + w9.size * 2 + B * H * W * Cout * 2 + 8 * Cout

    out = pl.pallas_call(
        _conv_bn_relu_kernel,
        out_shape=jax.ShapeDtypeStruct((B, H * W, Cout), jnp.bfloat16),
        grid_spec=pltpu.PrefetchScalarGridSpec(
            num_scalar_prefetch=0,
            grid=(B, n_cb),
            in_specs=[
                pl.BlockSpec((1, Hp, Wp, cb), lambda b, c: (b, 0, 0, c)),
                pl.BlockSpec((9, cb, Cout), lambda b, c: (0, c, 0)),
                pl.BlockSpec((1, Cout), lambda b, c: (0, 0)),
                pl.BlockSpec((1, Cout), lambda b, c: (0, 0)),
            ],
            out_specs=pl.BlockSpec((1, H * W, Cout), lambda b, c: (b, 0, 0)),
            scratch_shapes=[pltpu.VMEM((H * W, Cout), jnp.float32)],
        ),
        compiler_params=pltpu.CompilerParams(
            dimension_semantics=("parallel", "arbitrary"),
            vmem_limit_bytes=64 * 1024 * 1024),
        cost_estimate=pl.CostEstimate(flops=flops, transcendentals=0,
                                      bytes_accessed=bytes_accessed),
    )(xp, w9, scale2, bias2)

    # (B, H*W, Cout) -> NCHW (B, Cout, H, W) for the RoI kernel; stays bf16.
    return jnp.swapaxes(out, 1, 2).reshape(B, Cout, H, W)


# ----------------------------- masked RoI extract -------------------------------

def _masked_roi_kernel(bidx_ref, flag_ref, feat_ref, mask_ref, wx_ref, wy_ref, o_ref,
                       *, OH, OW):
    # feat_ref: (1, C, H, W)  bf16 (block selected by batch index via scalar prefetch)
    # mask_ref: (1, H, W)     bf16
    # wx_ref  : (1, SP, W)    bf16 x-contraction weights (qx, or qt zero-padded)
    # wy_ref  : (1, H, SP)    f32  y-contraction weights (py^T or pt^T, zero-padded)
    # o_ref   : (1, C, OH*OW) f32  lane-dense output slab
    r = pl.program_id(0)
    C, H, W = feat_ref.shape[1], feat_ref.shape[2], feat_ref.shape[3]

    # masked features for ALL channels; (C, H, W) -> (C*H, W) is a free reshape (H % 8 == 0)
    m = (feat_ref[0] * mask_ref[0]).reshape(C * H, W)
    # stage 1: contract x for every channel with a single MXU matmul (bf16 in, f32 acc)
    v = lax.dot_general(m, wx_ref[0], (((1,), (1,)), ((), ())),
                        preferred_element_type=jnp.float32)          # (C*H, SP)
    v = v.reshape(C, H, -1)
    wy = wy_ref[0]                                                    # (H, SP)

    @pl.when(flag_ref[r] == 0)
    def _():
        # normal crop: out[c, oh, ow] = sum_y py[oh, y] * v[c, y, ow]
        slabs = [jnp.sum(v * wy[:, oh:oh + 1][None, :, :], axis=1)[:, :OW]
                 for oh in range(OH)]
        o_ref[0] = jnp.concatenate(slabs, axis=-1)

    @pl.when(flag_ref[r] != 0)
    def _():
        # tall crop (transposed in PyTorch): out[c, oh, ow] = sum_y pt[ow, y] * v[c, y, oh]
        slabs = [jnp.sum(v[:, :, oh:oh + 1] * wy[None, :, :], axis=1)[:, :OW]
                 for oh in range(OH)]
        o_ref[0] = jnp.concatenate(slabs, axis=-1)


def _bilinear_weights(out_size, full_size, in_size, offset, ok):
    # F.interpolate(mode='bilinear', align_corners=False) index/weight math for a crop of
    # length `in_size` starting at `offset` inside the full axis of size `full_size`.
    o = jnp.arange(out_size, dtype=jnp.float32)
    scale = in_size.astype(jnp.float32) / out_size
    src = jnp.maximum((o + 0.5) * scale - 0.5, 0.0)
    i0 = jnp.floor(src).astype(jnp.int32)
    i1 = jnp.minimum(i0 + 1, jnp.maximum(in_size - 1, 0))
    w1 = src - i0.astype(jnp.float32)
    w0 = 1.0 - w1
    cols = jnp.arange(full_size)[None, :]
    wm = (w0[:, None] * (cols == (offset + i0)[:, None]).astype(jnp.float32)
          + w1[:, None] * (cols == (offset + i1)[:, None]).astype(jnp.float32))
    return jnp.where(ok, wm, 0.0)   # degenerate (empty) box -> all-zero weights -> zero output


def masked_roi_features(feat, rois, masks, output_size=(8, 32), scale_factor=4):
    B, C, H, W = feat.shape
    N = rois.shape[0]
    OH, OW = output_size
    SP = max(OH, OW)
    assert masks.shape == (N, H, W)
    assert H % 8 == 0

    # The PyTorch forward emits RoIs grouped by batch index (outer loop over images);
    # a stable sort reproduces that ordering.  `masks` is expected already in that
    # grouped order (per-image mask lists concatenated).
    order = jnp.argsort(rois[:, 0].astype(jnp.int32), stable=True)
    rois_s = rois[order]
    batch_idx = rois_s[:, 0].astype(jnp.int32)

    pad = jnp.array([-1.0, -1.0, 1.0, 1.0], dtype=jnp.float32)
    bb = (rois_s[:, 1:5].astype(jnp.float32) / scale_factor + pad).astype(jnp.int32)  # .long()
    left = jnp.clip(bb[:, 0], 0, W)
    top = jnp.clip(bb[:, 1], 0, H)
    right = jnp.clip(bb[:, 2], 0, W)
    bottom = jnp.clip(bb[:, 3], 0, H)
    crop_h = bottom - top
    crop_w = right - left
    valid = (crop_h > 0) & (crop_w > 0)
    flag = (crop_h.astype(jnp.float32) > 1.5 * crop_w.astype(jnp.float32)) & valid

    mk = jax.vmap(_bilinear_weights, in_axes=(None, None, 0, 0, 0))
    qx = mk(OW, W, crop_w, left, valid)    # (N, OW, W)  normal path, horizontal
    py = mk(OH, H, crop_h, top, valid)     # (N, OH, H)  normal path, vertical
    qt = mk(OH, W, crop_w, left, valid)    # (N, OH, W)  transposed path, x -> output rows
    pt = mk(OW, H, crop_h, top, valid)     # (N, OW, H)  transposed path, y -> output cols

    # Per-RoI weight selection happens in the wrapper so stage 1 is a single straight-line
    # matmul inside the kernel; padded to a common SP = max(OH, OW) row/col count.
    wx = jnp.where(flag[:, None, None],
                   jnp.pad(qt, ((0, 0), (0, SP - OH), (0, 0))),
                   jnp.pad(qx, ((0, 0), (0, SP - OW), (0, 0)))).astype(jnp.bfloat16)
    wy = jnp.where(flag[:, None, None],
                   jnp.pad(jnp.swapaxes(pt, 1, 2), ((0, 0), (0, 0), (0, SP - OW))),
                   jnp.pad(jnp.swapaxes(py, 1, 2), ((0, 0), (0, 0), (0, SP - OH)))
                   ).astype(jnp.float32)

    flops = N * (2 * C * H * W * SP + 2 * OH * C * H * SP)
    bytes_accessed = (B * C * H * W * 2
                      + N * (H * W * 2 + SP * W * 2 + H * SP * 4)
                      + N * C * OH * OW * 4)

    kernel = functools.partial(_masked_roi_kernel, OH=OH, OW=OW)
    out = pl.pallas_call(
        kernel,
        out_shape=jax.ShapeDtypeStruct((N, C, OH * OW), jnp.float32),
        grid_spec=pltpu.PrefetchScalarGridSpec(
            num_scalar_prefetch=2,
            grid=(N,),
            in_specs=[
                pl.BlockSpec((1, C, H, W), lambda r, bidx, flg: (bidx[r], 0, 0, 0)),
                pl.BlockSpec((1, H, W), lambda r, bidx, flg: (r, 0, 0)),
                pl.BlockSpec((1, SP, W), lambda r, bidx, flg: (r, 0, 0)),
                pl.BlockSpec((1, H, SP), lambda r, bidx, flg: (r, 0, 0)),
            ],
            out_specs=pl.BlockSpec((1, C, OH * OW), lambda r, bidx, flg: (r, 0, 0)),
        ),
        compiler_params=pltpu.CompilerParams(
            dimension_semantics=("parallel",),
            vmem_limit_bytes=64 * 1024 * 1024),
        cost_estimate=pl.CostEstimate(flops=flops, transcendentals=0,
                                      bytes_accessed=bytes_accessed),
    )(batch_idx, flag.astype(jnp.int32),
      feat.astype(jnp.bfloat16), masks.astype(jnp.bfloat16), wx, wy)
    return out.reshape(N, C, OH, OW)


class MaskedRoIExtractor:
    # TODO(synk): force_fp32/out_fp16 mixed-precision decorator not modeled; MXU operands are
    #             bf16 with f32 accumulation, final output is f32.
    # TODO(synk): BitmapMasks.rescale(1/scale_factor) (cv2 nearest resize) not modeled;
    #             masks must already be supplied at feature-map resolution (N, H, W).
    def __init__(self, in_channels, out_channels, featmap_strides, output_size=(8, 32), key=None):
        self.in_channels = in_channels
        self.out_channels = out_channels
        self.featmap_strides = featmap_strides
        self.output_size = output_size
        key = jax.random.PRNGKey(0) if key is None else key
        ks = jax.random.split(key, 6)
        # deterministic synthetic parameters (inference-mode BatchNorm)
        self.conv_w = 0.1 * jax.random.normal(ks[0], (out_channels, in_channels, 3, 3), jnp.float32)
        self.conv_b = 0.1 * jax.random.normal(ks[1], (out_channels,), jnp.float32)
        self.bn_gamma = 1.0 + 0.1 * jax.random.normal(ks[2], (out_channels,), jnp.float32)
        self.bn_beta = 0.1 * jax.random.normal(ks[3], (out_channels,), jnp.float32)
        self.bn_mean = 0.1 * jax.random.normal(ks[4], (out_channels,), jnp.float32)
        self.bn_var = 0.5 + jnp.abs(jax.random.normal(ks[5], (out_channels,), jnp.float32))

    @property
    def num_inputs(self):
        return len(self.featmap_strides)

    def __call__(self, feats, rois, masks):
        feat = conv_bn_relu(feats[0], self.conv_w, self.conv_b,
                            self.bn_gamma, self.bn_beta, self.bn_mean, self.bn_var)
        return masked_roi_features(feat, rois, masks,
                                   output_size=self.output_size, scale_factor=4)


if __name__ == "__main__":
    B, Cin, Cout, H, W = 2, 4, 8, 16, 16           # stride-4 feature map of a 64x64 image
    key = jax.random.PRNGKey(0)
    k_feat, k_mask, k_param = jax.random.split(key, 3)

    feats0 = jax.random.normal(k_feat, (B, Cin, H, W), jnp.float32)
    # rois: [batch_idx, x1, y1, x2, y2] in input-image coordinates, grouped by batch
    rois = jnp.array([
        [0.0, 6.0, 6.0, 46.0, 22.0],
        [0.0, 10.0, 8.0, 20.0, 60.0],              # tall box -> exercises transposed path
        [1.0, 2.0, 4.0, 58.0, 30.0],
        [1.0, 30.0, 30.0, 34.0, 44.0],
    ], dtype=jnp.float32)
    N = rois.shape[0]
    masks = (jax.random.uniform(k_mask, (N, H, W)) > 0.3).astype(jnp.float32)

    extractor = MaskedRoIExtractor(in_channels=Cin, out_channels=Cout,
                                   featmap_strides=[4], output_size=(8, 32), key=k_param)
    roi_feats = extractor([feats0], rois, masks)
    roi_feats = jax.block_until_ready(roi_feats)
    assert roi_feats.shape == (N, Cout, 8, 32)
    assert bool(jnp.all(jnp.isfinite(roi_feats)))
    print("KERNEL_OK")
</pallas_src>

<mosaic_0001>
module attributes {stable_mosaic.version = 11 : i64} {
  func.func @_conv_bn_relu_kernel(%arg0: i32, %arg1: i32, %arg2: memref<1x18x18x4xbf16, #tpu.memory_space<vmem>>, %arg3: memref<9x4x8xbf16, #tpu.memory_space<vmem>>, %arg4: memref<1x8xf32, #tpu.memory_space<vmem>>, %arg5: memref<1x8xf32, #tpu.memory_space<vmem>>, %arg6: memref<1x256x8xbf16, #tpu.memory_space<vmem>>, %arg7: memref<256x8xf32, #tpu.memory_space<vmem>>) attributes {dimension_semantics = [#tpu.dimension_semantics<parallel>, #tpu.dimension_semantics<arbitrary>], iteration_bounds = array<i64: 2, 1>, scalar_prefetch = 0 : i64, scratch_operands = 1 : i64, tpu.core_type = #tpu.core_type<tc>, window_params = [{transform_indices = @transform_0, window_bounds = array<i64: 1, 18, 18, 4>}, {transform_indices = @transform_1, window_bounds = array<i64: 9, 4, 8>}, {pipeline_mode = #tpu.pipeline_mode<synchronous>, transform_indices = @transform_2, window_bounds = array<i64: 1, 8>}, {pipeline_mode = #tpu.pipeline_mode<synchronous>, transform_indices = @transform_3, window_bounds = array<i64: 1, 8>}, {transform_indices = @transform_4, window_bounds = array<i64: 1, 256, 8>}]} {
    %c0_i32 = arith.constant 0 : i32
    %0 = arith.cmpi eq, %arg1, %c0_i32 : i32
    %1 = arith.extui %0 : i1 to i32
    %c0_i32_0 = arith.constant 0 : i32
    %2 = arith.cmpi ne, %1, %c0_i32_0 : i32
    scf.if %2 {
      %cst_70 = arith.constant 0.000000e+00 : f32
      %73 = vector.broadcast %cst_70 : f32 to vector<256x8xf32>
      %c0_71 = arith.constant 0 : index
      %c0_72 = arith.constant 0 : index
      %74 = vector.load %arg7[%c0_71, %c0_72] : memref<256x8xf32, #tpu.memory_space<vmem>>, vector<256x8xf32>
      tpu.vector_store %arg7[%c0_71, %c0_72], %73 {strides = array<i32>} : memref<256x8xf32, #tpu.memory_space<vmem>>, vector<256x8xf32>,
    } else {
    }
    %cst = arith.constant 0.000000e+00 : f32
    %3 = vector.broadcast %cst : f32 to vector<256x8xf32>
    %c0 = arith.constant 0 : index
    %c0_1 = arith.constant 0 : index
    %c0_2 = arith.constant 0 : index
    %c0_3 = arith.constant 0 : index
    %4 = vector.load %arg2[%c0, %c0_1, %c0_2, %c0_3] : memref<1x18x18x4xbf16, #tpu.memory_space<vmem>>, vector<1x16x16x4xbf16>
    %5 = vector.shape_cast %4 : vector<1x16x16x4xbf16> to vector<16x16x4xbf16>
    %6 = vector.shape_cast %5 : vector<16x16x4xbf16> to vector<256x4xbf16>
    %c0_4 = arith.constant 0 : index
    %c0_5 = arith.constant 0 : index
    %c0_6 = arith.constant 0 : index
    %7 = vector.load %arg3[%c0_4, %c0_5, %c0_6] : memref<9x4x8xbf16, #tpu.memory_space<vmem>>, vector<1x4x8xbf16>
    %8 = vector.shape_cast %7 : vector<1x4x8xbf16> to vector<4x8xbf16>
    %cst_7 = arith.constant dense<0.000000e+00> : vector<256x8xf32>
    %9 = tpu.matmul %6, %8, %cst_7 {dimension_numbers = #tpu.dot_dimension_numbers<[1], [0], [0], [1], [0, 0, 1, 1], [], []>} : vector<256x4xbf16>, vector<4x8xbf16>, vector<256x8xf32> -> vector<256x8xf32>
    %10 = arith.addf %3, %9 : vector<256x8xf32>
    %c0_8 = arith.constant 0 : index
    %c0_9 = arith.constant 0 : index
    %c1 = arith.constant 1 : index
    %c0_10 = arith.constant 0 : index
    %11 = vector.load %arg2[%c0_8, %c0_9, %c1, %c0_10] : memref<1x18x18x4xbf16, #tpu.memory_space<vmem>>, vector<1x16x16x4xbf16>
    %12 = vector.shape_cast %11 : vector<1x16x16x4xbf16> to vector<16x16x4xbf16>
    %13 = vector.shape_cast %12 : vector<16x16x4xbf16> to vector<256x4xbf16>
    %c1_11 = arith.constant 1 : index
    %c0_12 = arith.constant 0 : index
    %c0_13 = arith.constant 0 : index
    %14 = vector.load %arg3[%c1_11, %c0_12, %c0_13] : memref<9x4x8xbf16, #tpu.memory_space<vmem>>, vector<1x4x8xbf16>
    %15 = vector.shape_cast %14 : vector<1x4x8xbf16> to vector<4x8xbf16>
    %cst_14 = arith.constant dense<0.000000e+00> : vector<256x8xf32>
    %16 = tpu.matmul %13, %15, %cst_14 {dimension_numbers = #tpu.dot_dimension_numbers<[1], [0], [0], [1], [0, 0, 1, 1], [], []>} : vector<256x4xbf16>, vector<4x8xbf16>, vector<256x8xf32> -> vector<256x8xf32>
    %17 = arith.addf %10, %16 : vector<256x8xf32>
    %c0_15 = arith.constant 0 : index
    %c0_16 = arith.constant 0 : index
    %c2 = arith.constant 2 : index
    %c0_17 = arith.constant 0 : index
    %18 = vector.load %arg2[%c0_15, %c0_16, %c2, %c0_17] : memref<1x18x18x4xbf16, #tpu.memory_space<vmem>>, vector<1x16x16x4xbf16>
    %19 = vector.shape_cast %18 : vector<1x16x16x4xbf16> to vector<16x16x4xbf16>
    %20 = vector.shape_cast %19 : vector<16x16x4xbf16> to vector<256x4xbf16>
    %c2_18 = arith.constant 2 : index
    %c0_19 = arith.constant 0 : index
    %c0_20 = arith.constant 0 : index
    %21 = vector.load %arg3[%c2_18, %c0_19, %c0_20] : memref<9x4x8xbf16, #tpu.memory_space<vmem>>, vector<1x4x8xbf16>
    %22 = vector.shape_cast %21 : vector<1x4x8xbf16> to vector<4x8xbf16>
    %cst_21 = arith.constant dense<0.000000e+00> : vector<256x8xf32>
    %23 = tpu.matmul %20, %22, %cst_21 {dimension_numbers = #tpu.dot_dimension_numbers<[1], [0], [0], [1], [0, 0, 1, 1], [], []>} : vector<256x4xbf16>, vector<4x8xbf16>, vector<256x8xf32> -> vector<256x8xf32>
    %24 = arith.addf %17, %23 : vector<256x8xf32>
    %c0_22 = arith.constant 0 : index
    %c1_23 = arith.constant 1 : index
    %c0_24 = arith.constant 0 : index
    %c0_25 = arith.constant 0 : index
    %25 = vector.load %arg2[%c0_22, %c1_23, %c0_24, %c0_25] : memref<1x18x18x4xbf16, #tpu.memory_space<vmem>>, vector<1x16x16x4xbf16>
    %26 = vector.shape_cast %25 : vector<1x16x16x4xbf16> to vector<16x16x4xbf16>
    %27 = vector.shape_cast %26 : vector<16x16x4xbf16> to vector<256x4xbf16>
    %c3 = arith.constant 3 : index
    %c0_26 = arith.constant 0 : index
    %c0_27 = arith.constant 0 : index
    %28 = vector.load %arg3[%c3, %c0_26, %c0_27] : memref<9x4x8xbf16, #tpu.memory_space<vmem>>, vector<1x4x8xbf16>
    %29 = vector.shape_cast %28 : vector<1x4x8xbf16> to vector<4x8xbf16>
    %cst_28 = arith.constant dense<0.000000e+00> : vector<256x8xf32>
    %30 = tpu.matmul %27, %29, %cst_28 {dimension_numbers = #tpu.dot_dimension_numbers<[1], [0], [0], [1], [0, 0, 1, 1], [], []>} : vector<256x4xbf16>, vector<4x8xbf16>, vector<256x8xf32> -> vector<256x8xf32>
    %31 = arith.addf %24, %30 : vector<256x8xf32>
    %c0_29 = arith.constant 0 : index
    %c1_30 = arith.constant 1 : index
    %c1_31 = arith.constant 1 : index
    %c0_32 = arith.constant 0 : index
    %32 = vector.load %arg2[%c0_29, %c1_30, %c1_31, %c0_32] : memref<1x18x18x4xbf16, #tpu.memory_space<vmem>>, vector<1x16x16x4xbf16>
    %33 = vector.shape_cast %32 : vector<1x16x16x4xbf16> to vector<16x16x4xbf16>
    %34 = vector.shape_cast %33 : vector<16x16x4xbf16> to vector<256x4xbf16>
    %c4 = arith.constant 4 : index
    %c0_33 = arith.constant 0 : index
    %c0_34 = arith.constant 0 : index
    %35 = vector.load %arg3[%c4, %c0_33, %c0_34] : memref<9x4x8xbf16, #tpu.memory_space<vmem>>, vector<1x4x8xbf16>
    %36 = vector.shape_cast %35 : vector<1x4x8xbf16> to vector<4x8xbf16>
    %cst_35 = arith.constant dense<0.000000e+00> : vector<256x8xf32>
    %37 = tpu.matmul %34, %36, %cst_35 {dimension_numbers = #tpu.dot_dimension_numbers<[1], [0], [0], [1], [0, 0, 1, 1], [], []>} : vector<256x4xbf16>, vector<4x8xbf16>, vector<256x8xf32> -> vector<256x8xf32>
    %38 = arith.addf %31, %37 : vector<256x8xf32>
    %c0_36 = arith.constant 0 : index
    %c1_37 = arith.constant 1 : index
    %c2_38 = arith.constant 2 : index
    %c0_39 = arith.constant 0 : index
    %39 = vector.load %arg2[%c0_36, %c1_37, %c2_38, %c0_39] : memref<1x18x18x4xbf16, #tpu.memory_space<vmem>>, vector<1x16x16x4xbf16>
    %40 = vector.shape_cast %39 : vector<1x16x16x4xbf16> to vector<16x16x4xbf16>
    %41 = vector.shape_cast %40 : vector<16x16x4xbf16> to vector<256x4xbf16>
    %c5 = arith.constant 5 : index
    %c0_40 = arith.constant 0 : index
    %c0_41 = arith.constant 0 : index
    %42 = vector.load %arg3[%c5, %c0_40, %c0_41] : memref<9x4x8xbf16, #tpu.memory_space<vmem>>, vector<1x4x8xbf16>
    %43 = vector.shape_cast %42 : vector<1x4x8xbf16> to vector<4x8xbf16>
    %cst_42 = arith.constant dense<0.000000e+00> : vector<256x8xf32>
    %44 = tpu.matmul %41, %43, %cst_42 {dimension_numbers = #tpu.dot_dimension_numbers<[1], [0], [0], [1], [0, 0, 1, 1], [], []>} : vector<256x4xbf16>, vector<4x8xbf16>, vector<256x8xf32> -> vector<256x8xf32>
    %45 = arith.addf %38, %44 : vector<256x8xf32>
    %c0_43 = arith.constant 0 : index
    %c2_44 = arith.constant 2 : index
    %c0_45 = arith.constant 0 : index
    %c0_46 = arith.constant 0 : index
    %46 = vector.load %arg2[%c0_43, %c2_44, %c0_45, %c0_46] : memref<1x18x18x4xbf16, #tpu.memory_space<vmem>>, vector<1x16x16x4xbf16>
    %47 = vector.shape_cast %46 : vector<1x16x16x4xbf16> to vector<16x16x4xbf16>
    %48 = vector.shape_cast %47 : vector<16x16x4xbf16> to vector<256x4xbf16>
    %c6 = arith.constant 6 : index
    %c0_47 = arith.constant 0 : index
    %c0_48 = arith.constant 0 : index
    %49 = vector.load %arg3[%c6, %c0_47, %c0_48] : memref<9x4x8xbf16, #tpu.memory_space<vmem>>, vector<1x4x8xbf16>
    %50 = vector.shape_cast %49 : vector<1x4x8xbf16> to vector<4x8xbf16>
    %cst_49 = arith.constant dense<0.000000e+00> : vector<256x8xf32>
    %51 = tpu.matmul %48, %50, %cst_49 {dimension_numbers = #tpu.dot_dimension_numbers<[1], [0], [0], [1], [0, 0, 1, 1], [], []>} : vector<256x4xbf16>, vector<4x8xbf16>, vector<256x8xf32> -> vector<256x8xf32>
    %52 = arith.addf %45, %51 : vector<256x8xf32>
    %c0_50 = arith.constant 0 : index
    %c2_51 = arith.constant 2 : index
    %c1_52 = arith.constant 1 : index
    %c0_53 = arith.constant 0 : index
    %53 = vector.load %arg2[%c0_50, %c2_51, %c1_52, %c0_53] : memref<1x18x18x4xbf16, #tpu.memory_space<vmem>>, vector<1x16x16x4xbf16>
    %54 = vector.shape_cast %53 : vector<1x16x16x4xbf16> to vector<16x16x4xbf16>
    %55 = vector.shape_cast %54 : vector<16x16x4xbf16> to vector<256x4xbf16>
    %c7 = arith.constant 7 : index
    %c0_54 = arith.constant 0 : index
    %c0_55 = arith.constant 0 : index
    %56 = vector.load %arg3[%c7, %c0_54, %c0_55] : memref<9x4x8xbf16, #tpu.memory_space<vmem>>, vector<1x4x8xbf16>
    %57 = vector.shape_cast %56 : vector<1x4x8xbf16> to vector<4x8xbf16>
    %cst_56 = arith.constant dense<0.000000e+00> : vector<256x8xf32>
    %58 = tpu.matmul %55, %57, %cst_56 {dimension_numbers = #tpu.dot_dimension_numbers<[1], [0], [0], [1], [0, 0, 1, 1], [], []>} : vector<256x4xbf16>, vector<4x8xbf16>, vector<256x8xf32> -> vector<256x8xf32>
    %59 = arith.addf %52, %58 : vector<256x8xf32>
    %c0_57 = arith.constant 0 : index
    %c2_58 = arith.constant 2 : index
    %c2_59 = arith.constant 2 : index
    %c0_60 = arith.constant 0 : index
    %60 = vector.load %arg2[%c0_57, %c2_58, %c2_59, %c0_60] : memref<1x18x18x4xbf16, #tpu.memory_space<vmem>>, vector<1x16x16x4xbf16>
    %61 = vector.shape_cast %60 : vector<1x16x16x4xbf16> to vector<16x16x4xbf16>
    %62 = vector.shape_cast %61 : vector<16x16x4xbf16> to vector<256x4xbf16>
    %c8 = arith.constant 8 : index
    %c0_61 = arith.constant 0 : index
    %c0_62 = arith.constant 0 : index
    %63 = vector.load %arg3[%c8, %c0_61, %c0_62] : memref<9x4x8xbf16, #tpu.memory_space<vmem>>, vector<1x4x8xbf16>
    %64 = vector.shape_cast %63 : vector<1x4x8xbf16> to vector<4x8xbf16>
    %cst_63 = arith.constant dense<0.000000e+00> : vector<256x8xf32>
    %65 = tpu.matmul %62, %64, %cst_63 {dimension_numbers = #tpu.dot_dimension_numbers<[1], [0], [0], [1], [0, 0, 1, 1], [], []>} : vector<256x4xbf16>, vector<4x8xbf16>, vector<256x8xf32> -> vector<256x8xf32>
    %66 = arith.addf %59, %65 : vector<256x8xf32>
    %c0_64 = arith.constant 0 : index
    %c0_65 = arith.constant 0 : index
    %67 = vector.load %arg7[%c0_64, %c0_65] : memref<256x8xf32, #tpu.memory_space<vmem>>, vector<256x8xf32>
    %68 = arith.addf %67, %66 : vector<256x8xf32>
    %c0_66 = arith.constant 0 : index
    %c0_67 = arith.constant 0 : index
    %69 = vector.load %arg7[%c0_66, %c0_67] : memref<256x8xf32, #tpu.memory_space<vmem>>, vector<256x8xf32>
    tpu.vector_store %arg7[%c0_66, %c0_67], %68 {strides = array<i32>} : memref<256x8xf32, #tpu.memory_space<vmem>>, vector<256x8xf32>,
    %c0_i32_68 = arith.constant 0 : i32
    %70 = arith.cmpi eq, %arg1, %c0_i32_68 : i32
    %71 = arith.extui %70 : i1 to i32
    %c0_i32_69 = arith.constant 0 : i32
    %72 = arith.cmpi ne, %71, %c0_i32_69 : i32
    scf.if %72 {
      %c0_70 = arith.constant 0 : index
      %c0_71 = arith.constant 0 : index
      %73 = vector.load %arg7[%c0_70, %c0_71] : memref<256x8xf32, #tpu.memory_space<vmem>>, vector<256x8xf32>
      %c0_72 = arith.constant 0 : index
      %c0_73 = arith.constant 0 : index
      %74 = vector.load %arg4[%c0_72, %c0_73] : memref<1x8xf32, #tpu.memory_space<vmem>>, vector<1x8xf32>
      %75 = vector.broadcast %74 : vector<1x8xf32> to vector<256x8xf32>
      %76 = arith.mulf %73, %75 : vector<256x8xf32>
      %c0_74 = arith.constant 0 : index
      %c0_75 = arith.constant 0 : index
      %77 = vector.load %arg5[%c0_74, %c0_75] : memref<1x8xf32, #tpu.memory_space<vmem>>, vector<1x8xf32>
      %78 = vector.broadcast %77 : vector<1x8xf32> to vector<256x8xf32>
      %79 = arith.addf %76, %78 : vector<256x8xf32>
      %cst_76 = arith.constant 0.000000e+00 : f32
      %80 = vector.broadcast %cst_76 : f32 to vector<256x8xf32>
      %81 = arith.maximumf %79, %80 : vector<256x8xf32>
      %82 = arith.truncf %81 : vector<256x8xf32> to vector<256x8xbf16>
      %c0_77 = arith.constant 0 : index
      %c0_78 = arith.constant 0 : index
      %c0_79 = arith.constant 0 : index
      %83 = vector.load %arg6[%c0_77, %c0_78, %c0_79] : memref<1x256x8xbf16, #tpu.memory_space<vmem>>, vector<1x256x8xbf16>
      %84 = vector.shape_cast %83 : vector<1x256x8xbf16> to vector<256x8xbf16>
      %85 = vector.shape_cast %82 : vector<256x8xbf16> to vector<1x256x8xbf16>
      tpu.vector_store %arg6[%c0_77, %c0_78, %c0_79], %85 {strides = array<i32>} : memref<1x256x8xbf16, #tpu.memory_space<vmem>>, vector<1x256x8xbf16>,
    } else {
    }
    return
  }
  func.func @transform_0(%arg0: i32, %arg1: i32) -> (i32, i32, i32, i32) {
    %c0_i32 = arith.constant 0 : i32
    %c0_i32_0 = arith.constant 0 : i32
    %c0_i32_1 = arith.constant 0 : i32
    return %arg0, %c0_i32, %c0_i32_0, %arg1 : i32, i32, i32, i32
  }
  func.func @transform_1(%arg0: i32, %arg1: i32) -> (i32, i32, i32) {
    %c0_i32 = arith.constant 0 : i32
    %c0_i32_0 = arith.constant 0 : i32
    %c0_i32_1 = arith.constant 0 : i32
    return %c0_i32, %arg1, %c0_i32_0 : i32, i32, i32
  }
  func.func @transform_2(%arg0: i32, %arg1: i32) -> (i32, i32) {
    %c0_i32 = arith.constant 0 : i32
    %c0_i32_0 = arith.constant 0 : i32
    %c0_i32_1 = arith.constant 0 : i32
    return %c0_i32, %c0_i32_0 : i32, i32
  }
  func.func @transform_3(%arg0: i32, %arg1: i32) -> (i32, i32) {
    %c0_i32 = arith.constant 0 : i32
    %c0_i32_0 = arith.constant 0 : i32
    %c0_i32_1 = arith.constant 0 : i32
    return %c0_i32, %c0_i32_0 : i32, i32
  }
  func.func @transform_4(%arg0: i32, %arg1: i32) -> (i32, i32, i32) {
    %c0_i32 = arith.constant 0 : i32
    %c0_i32_0 = arith.constant 0 : i32
    %c0_i32_1 = arith.constant 0 : i32
    return %arg0, %c0_i32, %c0_i32_0 : i32, i32, i32
  }
}

</mosaic_0001>

<bundles_post_ra>
// kernel: tpu_custom_call.1
= control target key start
LH: loop header
LB: loop body
LE: loop exit
PB: predicated region body
PF: predicated region fallthrough
CT: control target
= control target key end

     0   :  { %9 = vsyncpa [#allocation4], 0  ;;  %s9394_s0 = inlined_call_operand.hbm [shape: bf16[2,18,18,4], index: 0, kind: input, shape index: {}]   ;;  %s9395_s1 = inlined_call_operand.hbm [shape: bf16[9,4,8], index: 1, kind: input, shape index: {}]   ;;  %s9396_s2 = inlined_call_operand.hbm [shape: f32[1,8], index: 2, kind: input, shape index: {}]   ;;  %s9397_s3 = inlined_call_operand.hbm [shape: f32[1,8], index: 3, kind: input, shape index: {}]   ;;  %s9398_s4 = inlined_call_operand.hbm [shape: bf16[2,256,8], index: 4, kind: output, shape index: {}]  }
   0x1   :  { %11 = vsyncpa [#allocation4 + $0x1], 0 }
   0x2   :  { %12 = vsyncpa [#allocation7], 0 }
   0x3   :  { %13 = vsyncpa [#allocation10], 0 }
   0x4   :  { %14 = vsyncpa [#allocation5], 0 }
   0x5   :  { %16 = vsyncpa [#allocation5 + $0x1], 0  ;;  %s7195_s15 = smov 0   ;;  %s7197_s16 = smov 0  }
   0x6   :  { %s7199_s17 = smov 0   ;;  %s7201_s18 = smov 0  }
   0x7   :  { %s7203_s19 = smov 0   ;;  %s7205_s20 = smov 0  }
   0x8 LB: > { %s5406_s21 = sadd.s32 4294967295, %s7156_s20   ;;  %s5407_s22 = sadd.s32 4294967294, %s7156_s20   ;;  %s7156_s20 = sphi %s7205_s20, %s22_s20   ;;  %s7152_s19 = sphi %s7203_s19, %s9511_s19   ;;  %s7148_s18 = sphi %s7201_s18, %s9510_s18   ;;  %s7144_s17 = sphi %s7199_s17, %s9509_s17   ;;  %s7140_s16 = sphi %s7197_s16, %s9508_s16   ;;  %s7136_s15 = sphi %s7195_s15, %s9507_s15  }
   0x9   : > { %p56_p0 = scmp.ne.s32.totalorder %s7140_s16, %s7136_s15  ;;  %p7229_p1 = scmp.eq.s32.totalorder %s5406_s21, 0 }
   0xa   : > { %p7233_p2 = scmp.eq.s32.totalorder %s5406_s21, 1  ;;  %p154_p3 = scmp.eq.s32.totalorder %s5407_s22, 1 }
   0xb   : > { %s9423_s23 = scalar_select %p7229_p1, 1, 0 }
   0xc   : > { %s9424_s24 = scalar_select %p7233_p2, 1, 0 }
   0xd   : > { %p7239_p4 = por %p7229_p1, %p56_p0  ;;  %p5408_p5 = scmp.ge.s32.totalorder %s7156_s20, 1 }
   0xe   : > { %p7244_p6 = por %p154_p3, %p56_p0  ;;  %p161_p7 = scmp.lt.s32.totalorder %s7156_s20, 3 }
   0xf   : > { %s9425_s25 = scalar_select %p7239_p4, 1, 0 }
  0x10   : > { %s9426_s26 = scalar_select %p7244_p6, 1, 0 }
  0x11   : > { %p7249_p8 = pnand %p5408_p5, %p161_p7  ;;  %s7158_s28 = smov [#allocation6]  }
  0x12   : > { %9427 = sst [smem:[#allocation16_spill]] %s9426_s26  ;;  %s175_s29 = sshll.u32 %s7158_s28, 4  ;;  %s7253_s29 = int_to_ptr.vmem [resolvable:$true] %s175_s29 }
  0x13   : > { %s9428_s27 = scalar_select %p7249_p8, 1, 0 }
  0x14   : > { %p6765_p9 = pneg %p7249_p8  ;;  %s7159_s5 = smov [#allocation8]  }
  0x15   : > { %s189_s6 = sshll.u32 %s7159_s5, 4  ;;  %s7160_s7 = smov [#allocation9]   ;;  %s7264_s6 = int_to_ptr.vmem [resolvable:$true] %s189_s6 }
  0x16   : > { %p7260_p11 = pnand %p6765_p9, %p7229_p1  ;;  %s7266_s8 = sshll.u32 %s7160_s7, 4  ;;  %s201_s8 = int_to_ptr.vmem [resolvable:$true] %s7266_s8 }
  0x17   : > { %s6952_s11 = scalar_lea.hbm %s9395_s1, 288 }
  0x18   : > { %p6953_p12 = scmp.ne.s32.totalorder %s9395_s1, %s6952_s11  ;;  %p7276_p13 = pneg %p7260_p11 }
  0x19   : > { %p6959_p5 = scmp.lt.u32.totalorder %s6952_s11, %s9395_s1 }
  0x1a   : > { %p6955_p0 = pnand %p7276_p13, %p6953_p12 }
  0x1c   : > { %p6956_p3 = pneg %p6955_p0 }
  0x1e   : > { %p6961_p7 = pnand %p6959_p5, %p6956_p3 }
  0x20   : > { %6964 = shalt.err (!%p6961_p7)
}
  0x21   : > { %s6965_s28 = scalar_lea.vmem %s7253_s29, 288  ;;  %p6973_p1 = scmp.lt.s32.totalorder %s7253_s29, %s7253_s29 }
  0x22   : > { %p6966_p9 = scmp.ne.s32.totalorder %s7253_s29, %s6965_s28  ;;  %p6974_p4 = scmp.lt.s32.totalorder %s6965_s28, %s6965_s28 }
  0x24   : > { %p6968_p10 = pnand %p6966_p9, %p7276_p13  ;;  %p6975_p12 = por %p6974_p4, %p6973_p1 }
  0x26   : > { %p6969_p6 = pneg %p6968_p10 }
  0x28   : > { %p6976_p0 = pnand %p6975_p12, %p6969_p6 }
  0x2a   : > { %6979 = shalt.err (!%p6976_p0)
}
  0x2b   : > { %s7161_s5 = smov 32   ;;  %s7162_s7 = smov 2  }
  0x2c   : > { %6768 = dma.hbm_to_vmem [thread:$0]  (!%p7260_p11), %s9395_s1, 288, %s7253_s29, [#allocation7], %s7161_s5, %s7161_s5, %s7162_s7  }
  0x2d   : > { %s6980_s13 = scalar_lea.hbm %s9396_s2, 16 }
  0x2e   : > { %p6981_p1 = scmp.ne.s32.totalorder %s9396_s2, %s6980_s13  ;;  %p6987_p10 = scmp.lt.u32.totalorder %s6980_s13, %s9396_s2 }
  0x30   : > { %p6983_p4 = pnand %p6981_p1, %p7276_p13 }
  0x32   : > { %p6984_p6 = pneg %p6983_p4 }
  0x34   : > { %p6989_p3 = pnand %p6987_p10, %p6984_p6 }
  0x36   : > { %6992 = shalt.err (!%p6989_p3)
}
  0x37   : > { %s6993_s29 = scalar_lea.vmem %s7264_s6, 16  ;;  %s7000_s5 = scalar_lea.vmem %s7264_s6, 32 }
  0x38   : > { %p6994_p5 = scmp.ne.s32.totalorder %s7264_s6, %s6993_s29  ;;  %p7001_p12 = scmp.lt.s32.totalorder %s7264_s6, %s7264_s6 }
  0x39   : > { %p7002_p0 = scmp.lt.s32.totalorder %s7000_s5, %s6993_s29 }
  0x3a   : > { %p6996_p7 = pnand %p6994_p5, %p7276_p13 }
  0x3b   : > { %p7003_p1 = por %p7002_p0, %p7001_p12 }
  0x3c   : > { %p6997_p9 = pneg %p6996_p7 }
  0x3e   : > { %p7004_p4 = pnand %p7003_p1, %p6997_p9 }
  0x40   : > { %7007 = shalt.err (!%p7004_p4)
}
  0x41   : > { %6771 = dma.hbm_to_vmem [thread:$0]  (!%p7260_p11), %s9396_s2, 16, %s7264_s6, [#allocation7]  }
  0x42   : > { %s7008_s11 = scalar_lea.hbm %s9397_s3, 16 }
  0x43   : > { %p7009_p6 = scmp.ne.s32.totalorder %s9397_s3, %s7008_s11  ;;  %p7015_p5 = scmp.lt.u32.totalorder %s7008_s11, %s9397_s3 }
  0x45   : > { %p7011_p10 = pnand %p7009_p6, %p7276_p13 }
  0x47   : > { %p7012_p3 = pneg %p7011_p10 }
  0x49   : > { %p7017_p7 = pnand %p7015_p5, %p7012_p3 }
  0x4b   : > { %7020 = shalt.err (!%p7017_p7)
}
  0x4c   : > { %s7021_s28 = scalar_lea.vmem %s201_s8, 16  ;;  %s7028_s6 = scalar_lea.vmem %s201_s8, 32 }
  0x4d   : > { %p7022_p9 = scmp.ne.s32.totalorder %s201_s8, %s7021_s28  ;;  %p7029_p1 = scmp.lt.s32.totalorder %s201_s8, %s201_s8 }
  0x4e   : > { %p7030_p4 = scmp.lt.s32.totalorder %s7028_s6, %s7021_s28 }
  0x4f   : > { %p7024_p12 = pnand %p7022_p9, %p7276_p13 }
  0x50   : > { %p7031_p8 = por %p7030_p4, %p7029_p1 }
  0x51   : > { %p7025_p0 = pneg %p7024_p12 }
  0x53   : > { %p7032_p2 = pnand %p7031_p8, %p7025_p0 }
  0x55   : > { %7035 = shalt.err (!%p7032_p2)
}
  0x56   : > { %6774 = dma.hbm_to_vmem [thread:$0]  (!%p7260_p11), %s9397_s3, 16, %s201_s8, [#allocation10]  }
  0x57   : > { %s43_s14 = sadd.s32 1, %s7144_s17  ;;  %s34_s26 = sadd.s32 1, %s7152_s19 }
  0x58   : > { %p50_p2 = scmp.ne.s32.totalorder %s7144_s17, %s7140_s16  ;;  %p36_p8 = scmp.ge.s32.totalorder %s34_s26, 2 }
  0x59   : > { %p51_p13 = scmp.eq.s32.totalorder %s7156_s20, 0  ;;  %p9431_p6 = scmp.ne.s32.totalorder %s9424_s24, 0 }
  0x5a   : > { %p6786_p3 = scmp.lt.s32.totalorder %s7156_s20, 2  ;;  %s9513_s26 = smov (%p36_p8, %s34_s26), 0 }
  0x5b   : > { %p7347_p10 = por %p9431_p6, %p50_p2  ;;  %p52_p5 = por %p51_p13, %p50_p2 }
  0x5c   : > { %s211_s7 = sand.u32 1, %s7144_s17   ;;  %s38_s9 = ssub.s32 %s7152_s19, %s9513_s26 }
  0x5d   : > { %p41_p7 = scmp.eq.s32.totalorder %s38_s9, 0  ;;  %s6746_s8 = smul.u32 216, %s211_s7 }
  0x5e   : > { %s6747_s10 = smul.u32 3456, %s7152_s19  ;;  %p7358_p11 = pnand %p6786_p3, %p52_p5 }
  0x5f   : > { %s7363_s24 = scalar_select %p41_p7, %s7144_s17, %s43_s14  }
  0x60   : > { %s7368_s21 = scalar_lea.hbm %s9394_s0, %s6747_s10  ;;  %s215_s22 = scalar_lea.vmem [#allocation3], %s6746_s8 }
  0x61   : > { %s223_s28 = sshll.u32 %s215_s22, 4  ;;  %s7372_s6 = scalar_lea.sflag [#allocation4], %s211_s7  ;;  %s7370_s28 = int_to_ptr.vmem [resolvable:$true] %s223_s28 }
  0x62   : > { %s7036_s29 = scalar_lea.hbm %s7368_s21, 3456  ;;  %p7038_p12 = pneg %p7358_p11 }
  0x63   : > { %p7037_p9 = scmp.ne.s32.totalorder %s7368_s21, %s7036_s29  ;;  %s7041_s9 = scalar_lea.hbm %s9394_s0, 6912 }
  0x64   : > { %p7042_p4 = scmp.lt.u32.totalorder %s7368_s21, %s9394_s0  ;;  %p7043_p2 = scmp.lt.u32.totalorder %s7041_s9, %s7036_s29 }
  0x65   : > { %p7039_p0 = pnand %p7038_p12, %p7037_p9  ;;  %p7045_p13 = scmp.lt.u32.totalorder %s7036_s29, %s7368_s21 }
  0x66   : > { %p7044_p8 = por %p7043_p2, %p7042_p4 }
  0x67   : > { %p7040_p1 = pneg %p7039_p0 }
  0x68   : > { %p7046_p6 = por %p7045_p13, %p7044_p8 }
  0x6a   : > { %p7047_p3 = pnand %p7046_p6, %p7040_p1 }
  0x6c   : > { %7050 = shalt.err (!%p7047_p3)
}
  0x6d   : > { %s7051_s7 = scalar_lea.vmem %s7370_s28, 3456  ;;  %s7163_s8 = smov [#allocation3]  }
  0x6e   : > { %p7052_p5 = scmp.ne.s32.totalorder %s7370_s28, %s7051_s7  ;;  %s7056_s13 = sshll.u32 %s7163_s8, 4  ;;  %s7057_s13 = int_to_ptr.vmem [resolvable:$false] %s7056_s13 }
  0x6f   : > { %s7058_s22 = scalar_lea.vmem %s7057_s13, 6912  ;;  %p7059_p0 = scmp.lt.s32.totalorder %s7370_s28, %s7057_s13 }
  0x70   : > { %p7054_p7 = pnand %p7052_p5, %p7038_p12  ;;  %p7060_p4 = scmp.lt.s32.totalorder %s7058_s22, %s7051_s7 }
  0x72   : > { %p7055_p9 = pneg %p7054_p7  ;;  %p7061_p2 = por %p7060_p4, %p7059_p0 }
  0x74   : > { %p7062_p8 = pnand %p7061_p2, %p7055_p9 }
  0x76   : > { %7065 = shalt.err (!%p7062_p8)
}
  0x77   : > { %s7164_s29 = smov 64   ;;  %s7165_s5 = smov 4  }
  0x78   : > { %6778 = dma.hbm_to_vmem [thread:$0]  (!%p7358_p11), %s7368_s21, 3456, %s7370_s28, %s7372_s6, %s7164_s29, %s7164_s29, %s7165_s5  }
  0x79   : > { %p9434_p12 = scmp.ne.s32.totalorder %s9428_s27, 0 }
  0x7b   : > { %235 = sbr.rel (%p9434_p12) target bundleno = 740 (0x2e4), region = 36 }
  0x82   : > { %s7403_s14 = sand.u32 1, %s7140_s16   ;;  %p9435_p1 = scmp.ne.s32.totalorder %s9425_s25, 0 }
  0x83   : > { %s6748_s9 = smul.u32 216, %s7403_s14  ;;  %s238_s10 = scalar_lea.sflag [#allocation4], %s7403_s14 }
  0x85   : > { %s7407_s12 = scalar_lea.vmem [#allocation3], %s6748_s9 }
  0x86   : > { %7119 = dma.done.wait (%p9435_p1), %s238_s10, 3456  }
  0x87   : > { %7121 = vsyncadd (%p9435_p1), %s238_s10, 4294963840  ;;  %p9436_p11 = scmp.ne.s32.totalorder %s9423_s23, 0 }
  0x89   : > { %7123 = dma.done.wait (%p9436_p11), [#allocation7], 304  }
  0x8a   : > { %7125 = vsyncadd (%p9436_p11), [#allocation7], 4294966992 }
  0x8b   : > { %7127 = dma.done.wait (%p9436_p11), [#allocation10], 16  }
  0x8c   : > { %7129 = vsyncadd (%p9436_p11), [#allocation10], 4294967280  ;;  %vm851_vm0 = vcmask 1041408   ;;  %vm365_vm1 = vsmask.f32 3328  ;;  %vm802_vm4 = vcmask 31744  }
  0x8d   : > { %vm366_vm2 = vsmask.f32 7440  ;;  %v753_v0 = vld [vmem:[#allocation6 + $0x2] sm:$0x3]  ;;  %v2557_v1 = vld [vmem:[#allocation6 + $0x8] sm:$0x3] }
  0x8e   : > { %v316_v2 = vld [vmem:[%s7407_s12] sm:$0xf]  ;;  %6736 = vmatprep.subr.msk.bf16.mxu1 %vm851_vm0, %v753_v0  ;;  %6740 = vmatprep.subr.msk.bf16.mxu0 %vm851_vm0, %v2557_v1  ;;  %v853_v3 = vsel %vm851_vm0, %v753_v0, 0  ;;  %v7426_v4 = vsel %vm851_vm0, %v2557_v1, 0  ;;  %v317_v5 = vld [vmem:[%s7407_s12 + $0x4] sm:$0xf]  ;;  %vm7449_vm3 = vmor %vm365_vm1, %vm366_vm2 }
  0x8f   : > { %9437 = vst [vmem:[#allocation17_spill] sm:$0xff] %v7426_v4  ;;  %v349_v6 = vld [vmem:[%s7407_s12 + $0x8] sm:$0x1]  ;;  %6173 = vmatpush3.bf16.msra.mxu1 %v853_v3  ;;  %6309 = vmatpush3.bf16.msra.mxu0 %v7426_v4  ;;  %v369_v7 = vshrl.u32 %v316_v2, 16  ;;  %v372_v8 = vshll.u32 %v316_v2, 16  ;;  %v378_v9 = vshll.u32 %v317_v5, 16 }
  0x90   : > { %v382_v10 = vshrl.u32 %v317_v5, 16  ;;  %v348_v11 = vld [vmem:[#allocation6] sm:$0x3]  ;;  %v388_v12 = vshll.u32 %v349_v6, 16  ;;  %v5595_v13 = vld [vmem:[%s7407_s12 + $0xc] sm:$0xf] }
  0x91   : > { %6737 = vmatprep.subr.msk.bf16.mxu1 %vm851_vm0, %v348_v11  ;;  %v7434_v14 = vld [vmem:[%s7407_s12 + $0x10] sm:$0xf]  ;;  %v371_v15 = vrot.slane %v369_v7, 4  ;;  %v374_v16 = vrot.slane %v372_v8, 5  ;;  %v380_v17 = vrot.slane %v378_v9, 5  ;;  %v2173_v21 = vshrl.u32 %v5595_v13, 16 }
  0x92   : > { %v384_v18 = vrot.slane %v382_v10, 4  ;;  %v7437_v19 = vld [vmem:[%s7407_s12 + $0x14] sm:$0x1]  ;;  %v390_v20 = vrot.slane %v388_v12, 5  ;;  %v2176_v22 = vshll.u32 %v5595_v13, 16  ;;  %v2182_v23 = vshll.u32 %v7434_v14, 16 }
  0x93   : > { %v7440_v24 = vld [vmem:[#allocation6 + $0xa] sm:$0x3]  ;;  %v375_v25 = vor.u32 %v374_v16, %v371_v15  ;;  %v2186_v27 = vshrl.u32 %v7434_v14, 16  ;;  %v2192_v28 = vshll.u32 %v7437_v19, 16  ;;  %v318_v29 = vld [vmem:[%s7407_s12 + $0xc] sm:$0xf] }
  0x94   : > { %v385_v26 = vor.u32 %v384_v18, %v380_v17  ;;  %6742 = vmatprep.subr.msk.bf16.mxu0 %vm851_vm0, %v7440_v24  ;;  %v2175_v31 = vrot.slane %v2173_v21, 4  ;;  %v2178_v32 = vrot.slane %v2176_v22, 5  ;;  %v2184_v33 = vrot.slane %v2182_v23, 5  ;;  %v319_v34 = vld [vmem:[%s7407_s12 + $0x10] sm:$0xf]  ;;  %s5418_s23 = sshll.u32 %s7403_s14, 7 }
  0x95   : > { %v376_v35 = vrot.slane %v375_v25, 4  ;;  %v2188_v37 = vrot.slane %v2186_v27, 4  ;;  %v2194_v39 = vrot.slane %v2192_v28, 5  ;;  %v350_v40 = vld [vmem:[%s7407_s12 + $0x14] sm:$0x1]  ;;  %v393_v41 = vshrl.u32 %v318_v29, 16 }
  0x96   : > { %v386_v36 = vrot.slane %v385_v26, 4  ;;  %v2179_v38 = vor.u32 %v2178_v32, %v2175_v31  ;;  %v396_v42 = vshll.u32 %v318_v29, 16  ;;  %v402_v46 = vshll.u32 %v319_v34, 16  ;;  %v5598_v55 = vld [vmem:[%s7407_s12 + $0x18] sm:$0xf]  ;;  %s9188_s25 = scalar_lea.vmem [#allocation11], %s5418_s23 }
  0x97   : > { %v381_v43 = vsel %vm7449_vm3, %v376_v35, %v380_v17  ;;  %v2189_v45 = vor.u32 %v2188_v37, %v2184_v33  ;;  %v395_v49 = vrot.slane %v393_v41, 4  ;;  %v406_v53 = vshrl.u32 %v319_v34, 16  ;;  %v7466_v60 = vld [vmem:[%s7407_s12 + $0x1c] sm:$0xf]  ;;  %v7469_v61 = vld [vmem:[%s7407_s12 + $0x20] sm:$0x1] }
  0x98   : > { %v391_v44 = vsel %vm7449_vm3, %v386_v36, %v390_v20  ;;  %v2180_v48 = vrot.slane %v2179_v38, 4  ;;  %v398_v50 = vrot.slane %v396_v42, 5  ;;  %v404_v52 = vrot.slane %v402_v46, 5  ;;  %v320_v16 = vld [vmem:[%s7407_s12 + $0x18] sm:$0xf]  ;;  %s6018_s27 = sshll.u32 %s7148_s18, 11 }
  0x99   : > { %v5419_v47 = vcombine.low %v381_v43, %v391_v44  ;;  %v2190_v51 = vrot.slane %v2189_v45, 4  ;;  %v412_v54 = vshll.u32 %v350_v40, 16  ;;  %v2916_v57 = vrot.slane %v7434_v14, 5  ;;  %v321_v22 = vld [vmem:[%s7407_s12 + $0x1c] sm:$0xf]  ;;  %s5292_s11 = sshll.u32 %s9188_s25, 4  ;;  %s9337_s6 = scalar_lea.hbm %s9398_s4, %s6018_s27  ;;  %s9339_s11 = int_to_ptr.vmem [resolvable:$true] %s5292_s11 }
  0x9a   : > { %v2185_v56 = vsel %vm7449_vm3, %v2180_v48, %v2184_v33  ;;  %v2919_v58 = vrot.slane %v7437_v19, 5  ;;  %v399_v59 = vor.u32 %v398_v50, %v395_v49  ;;  %v408_v63 = vrot.slane %v406_v53, 4  ;;  %v351_v28 = vld [vmem:[%s7407_s12 + $0x20] sm:$0x1]  ;;  %v5601_v34 = vld [vmem:[%s7407_s12 + $0x24] sm:$0xf] }
  0x9b   : > { %6174 = vmatprep.mubr.msk.bf16.mxu1 %vm802_vm4, %v5419_v47  ;;  %v2195_v62 = vsel %vm7449_vm3, %v2190_v51, %v2194_v39  ;;  %v414_v0 = vrot.slane %v412_v54, 5  ;;  %v1145_v1 = vsel %vm851_vm0, %v348_v11, 0  ;;  %v2197_v5 = vshrl.u32 %v5598_v55, 16  ;;  %v7495_v43 = vld [vmem:[%s7407_s12 + $0x28] sm:$0xf]  ;;  %s5279_s18 = scalar_lea.sflag [#allocation5], %s7403_s14 }
  0x9c   : > { %v5643_v2 = vcombine.low %v2185_v56, %v2195_v62  ;;  %v400_v3 = vrot.slane %v399_v59, 4  ;;  %v2200_v6 = vshll.u32 %v5598_v55, 16  ;;  %v409_v7 = vor.u32 %v408_v63, %v404_v52  ;;  %v7501_v46 = vld [vmem:[%s7407_s12 + $0x2c] sm:$0x1]  ;;  %s7066_s7 = scalar_lea.vmem %s9339_s11, 2048  ;;  %s7167_s8 = smov [#allocation11]  }
  0x9d   : > { %v2206_v8 = vshll.u32 %v7466_v60, 16  ;;  %v2210_v9 = vshrl.u32 %v7466_v60, 16  ;;  %v2216_v10 = vshll.u32 %v7469_v61, 16  ;;  %v2199_v13 = vrot.slane %v2197_v5, 4  ;;  %p7067_p13 = scmp.ne.s32.totalorder %s9339_s11, %s7066_s7  ;;  %s7070_s13 = sshll.u32 %s7167_s8, 4  ;;  %s7071_s13 = int_to_ptr.vmem [resolvable:$false] %s7070_s13 }
  0x9e   : > { %6310 = vmatprep.mubr.msk.bf16.mxu0 %vm802_vm4, %v5643_v2  ;;  %v405_v12 = vsel %vm7449_vm3, %v400_v3, %v404_v52  ;;  %v2202_v11 = vrot.slane %v2200_v6, 5  ;;  %v2923_v15 = vrot.slane %v7466_v60, 5  ;;  %v410_v17 = vrot.slane %v409_v7, 4  ;;  %v322_v52 = vld [vmem:[%s7407_s12 + $0x24] sm:$0xf]  ;;  %s7072_s22 = scalar_lea.vmem %s7071_s13, 4096  ;;  %p7073_p5 = scmp.lt.s32.totalorder %s9339_s11, %s7071_s13 }
  0x9f   : > { %v2208_v18 = vrot.slane %v2206_v8, 5  ;;  %v2212_v20 = vrot.slane %v2210_v9, 4  ;;  %v2218_v21 = vrot.slane %v2216_v10, 5  ;;  %v2926_v26 = vrot.slane %v7469_v61, 5  ;;  %p7068_p6 = pnand %p7067_p13, %p7347_p10  ;;  %p7074_p7 = scmp.lt.s32.totalorder %s7072_s22, %s7066_s7 }
  0xa0   : > { %v2203_v23 = vor.u32 %v2202_v11, %v2199_v13  ;;  %v7485_v25 = vrot.slane %v2923_v15, 4  ;;  %v3125_v27 = vsel %vm851_vm0, %v7440_v24, 0  ;;  %v415_v29 = vsel %vm7449_vm3, %v410_v17, %v414_v0  ;;  %v5604_v13 = vld [vmem:[%s7407_s12 + $0x30] sm:$0xf] }
  0xa1   : > { %v2213_v31 = vor.u32 %v2212_v20, %v2208_v18  ;;  %v417_v32 = vshrl.u32 %v320_v16, 16  ;;  %v420_v33 = vshll.u32 %v320_v16, 16  ;;  %v5420_v35 = vcombine.low %v405_v12, %v415_v29  ;;  %v352_v12 = vld [vmem:[%s7407_s12 + $0x2c] sm:$0x1]  ;;  %p7069_p3 = pneg %p7068_p6  ;;  %p7075_p9 = por %p7074_p7, %p7073_p5 }
  0xa2   : > { %v2204_v36 = vrot.slane %v2203_v23, 4  ;;  %v426_v37 = vshll.u32 %v321_v22, 16  ;;  %v430_v38 = vshrl.u32 %v321_v22, 16  ;;  %v436_v42 = vshll.u32 %v351_v28, 16 }
  0xa3   : > { %v2214_v39 = vrot.slane %v2213_v31, 4  ;;  %v419_v40 = vrot.slane %v417_v32, 4  ;;  %v422_v41 = vrot.slane %v420_v33, 5  ;;  %6175 = vmatmul.mubr.msk.bf16.vlgmr.msra.gmra.mrb[0].mxu1 %vm802_vm4, %v5420_v35  ;;  %v2221_v47 = vshrl.u32 %v5601_v34, 16  ;;  %p7076_p0 = pnand %p7075_p9, %p7069_p3 }
  0xa4   : > { %v2209_v24 = vsel %vm7449_vm3, %v2204_v36, %v2208_v18  ;;  %v428_v44 = vrot.slane %v426_v37, 5  ;;  %v432_v45 = vrot.slane %v430_v38, 4  ;;  %6207 = vmatpush3.bf16.msra.mxu1 %v1145_v1  ;;  %v438_v50 = vrot.slane %v436_v42, 5  ;;  %v323_v1 = vld [vmem:[%s7407_s12 + $0x28] sm:$0xf] }
  0xa5   : > { %v2219_v48 = vsel %vm7449_vm3, %v2214_v39, %v2218_v21  ;;  %v423_v49 = vor.u32 %v422_v41, %v419_v40  ;;  %v2224_v51 = vshll.u32 %v5601_v34, 16  ;;  %v2223_v55 = vrot.slane %v2221_v47, 4  ;;  %v7524_v36 = vld [vmem:[%s7407_s12 + $0x38] sm:$0x1]  ;;  %v324_v42 = vld [vmem:[%s7407_s12 + $0x30] sm:$0xf] }
  0xa6   : > { %v5644_v53 = vcombine.low %v2209_v24, %v2219_v48  ;;  %v433_v54 = vor.u32 %v432_v45, %v428_v44  ;;  %v2230_v56 = vshll.u32 %v7495_v43, 16  ;;  %v2234_v63 = vshrl.u32 %v7495_v43, 16  ;;  %v325_v48 = vld [vmem:[%s7407_s12 + $0x34] sm:$0xf] }
  0xa7   : > { %v424_v59 = vrot.slane %v423_v49, 4  ;;  %v2226_v62 = vrot.slane %v2224_v51, 5  ;;  %v2240_v0 = vshll.u32 %v7501_v46, 16  ;;  %v441_v5 = vshrl.u32 %v322_v52, 16 }
  0xa8   : > { %6311 = vmatmul.mubr.msk.bf16.vlgmr.msra.gmra.mrb[0].mxu0 %vm802_vm4, %v5644_v53  ;;  %v434_v2 = vrot.slane %v433_v54, 4  ;;  %v2232_v3 = vrot.slane %v2230_v56, 5  ;;  %v444_v6 = vshll.u32 %v322_v52, 16  ;;  %v2236_v9 = vrot.slane %v2234_v63, 4  ;;  %v353_v56 = vld [vmem:[%s7407_s12 + $0x38] sm:$0x1] }
  0xa9   : > { %6343 = vmatpush3.bf16.msra.mxu0 %v3125_v27  ;;  %v429_v7 = vsel %vm7449_vm3, %v424_v59, %v428_v44  ;;  %v2227_v8 = vor.u32 %v2226_v62, %v2223_v55  ;;  %v2242_v10 = vrot.slane %v2240_v0, 5  ;;  %v443_v16 = vrot.slane %v441_v5, 4  ;;  %v7518_v27 = vld [vmem:[%s7407_s12 + $0x34] sm:$0xf] }
  0xaa   : > { %v439_v11 = vsel %vm7449_vm3, %v434_v2, %v438_v50  ;;  %v446_v17 = vrot.slane %v444_v6, 5  ;;  %v450_v18 = vshll.u32 %v323_v1, 16  ;;  %v2237_v22 = vor.u32 %v2236_v9, %v2232_v3  ;;  %v5607_v2 = vld [vmem:[%s7407_s12 + $0x3c] sm:$0xf] }
  0xab   : > { %v5421_v20 = vcombine.low %v429_v7, %v439_v11  ;;  %v2228_v21 = vrot.slane %v2227_v8, 4  ;;  %v454_v23 = vshrl.u32 %v323_v1, 16  ;;  %v460_v31 = vshll.u32 %v352_v12, 16  ;;  %v7541_v8 = vld [vmem:[%s7407_s12 + $0x40] sm:$0xf] }
  0xac   : > { %v447_v28 = vor.u32 %v446_v17, %v443_v16  ;;  %v452_v29 = vrot.slane %v450_v18, 5  ;;  %v2245_v32 = vshrl.u32 %v5604_v13, 16  ;;  %v2238_v34 = vrot.slane %v2237_v22, 4  ;;  %v7546_v18 = vld [vmem:[%s7407_s12 + $0x44] sm:$0x1] }
  0xad   : > { %6178 = vmatprep.mubr.msk.bf16.mxu1 %vm802_vm4, %v5421_v20  ;;  %v2233_v33 = vsel %vm7449_vm3, %v2228_v21, %v2232_v3  ;;  %v456_v35 = vrot.slane %v454_v23, 4  ;;  %v2248_v37 = vshll.u32 %v5604_v13, 16  ;;  %v462_v39 = vrot.slane %v460_v31, 5  ;;  %v7551_v31 = vld [vmem:[#allocation6 + $0xc] sm:$0x3] }
  0xae   : > { %v448_v38 = vrot.slane %v447_v28, 4  ;;  %v2247_v40 = vrot.slane %v2245_v32, 4  ;;  %v2254_v41 = vshll.u32 %v7518_v27, 16  ;;  %v2243_v24 = vsel %vm7449_vm3, %v2238_v34, %v2242_v10  ;;  %6743 = vmatprep.subr.msk.bf16.mxu0 %vm851_vm0, %v7551_v31 }
  0xaf   : > { %v457_v44 = vor.u32 %v456_v35, %v452_v29  ;;  %v2250_v45 = vrot.slane %v2248_v37, 5  ;;  %v2258_v47 = vshrl.u32 %v7518_v27, 16  ;;  %v5645_v49 = vcombine.low %v2233_v33, %v2243_v24 }
  0xb0   : > { %v453_v50 = vsel %vm7449_vm3, %v448_v38, %v452_v29  ;;  %v2256_v51 = vrot.slane %v2254_v41, 5  ;;  %v2264_v52 = vshll.u32 %v7524_v36, 16  ;;  %v465_v59 = vshrl.u32 %v324_v42, 16  ;;  %v326_v29 = vld [vmem:[%s7407_s12 + $0x3c] sm:$0xf] }
  0xb1   : > { %v458_v53 = vrot.slane %v457_v44, 4  ;;  %v2251_v54 = vor.u32 %v2250_v45, %v2247_v40  ;;  %v2260_v55 = vrot.slane %v2258_v47, 4  ;;  %6314 = vmatprep.mubr.msk.bf16.mxu0 %vm802_vm4, %v5645_v49  ;;  %v468_v63 = vshll.u32 %v324_v42, 16  ;;  %v327_v44 = vld [vmem:[%s7407_s12 + $0x40] sm:$0xf] }
  0xb2   : > { %v2266_v62 = vrot.slane %v2264_v52, 5  ;;  %v474_v0 = vshll.u32 %v325_v48, 16  ;;  %v478_v1 = vshrl.u32 %v325_v48, 16  ;;  %v467_v7 = vrot.slane %v465_v59, 4  ;;  %v5610_v52 = vld [vmem:[%s7407_s12 + $0x48] sm:$0xf] }
  0xb3   : > { %v463_v3 = vsel %vm7449_vm3, %v458_v53, %v462_v39  ;;  %v2252_v5 = vrot.slane %v2251_v54, 4  ;;  %v2261_v6 = vor.u32 %v2260_v55, %v2256_v51  ;;  %v470_v10 = vrot.slane %v468_v63, 5 }
  0xb4   : > { %v5422_v9 = vcombine.low %v453_v50, %v463_v3  ;;  %v476_v12 = vrot.slane %v474_v0, 5  ;;  %v480_v13 = vrot.slane %v478_v1, 4  ;;  %v484_v17 = vshll.u32 %v353_v56, 16  ;;  %v354_v50 = vld [vmem:[%s7407_s12 + $0x44] sm:$0x1] }
  0xb5   : > { %v2257_v11 = vsel %vm7449_vm3, %v2252_v5, %v2256_v51  ;;  %v2262_v16 = vrot.slane %v2261_v6, 4  ;;  %v2269_v20 = vshrl.u32 %v5607_v2, 16  ;;  %v471_v21 = vor.u32 %v470_v10, %v467_v7  ;;  %v7569_v3 = vld [vmem:[%s7407_s12 + $0x4c] sm:$0xf] }
  0xb6   : > { %6179 = vmatmul.mubr.msk.bf16.gmra.mrb[4].mxu1 %vm802_vm4, %v5422_v9  ;;  %v481_v22 = vor.u32 %v480_v13, %v476_v12  ;;  %v2272_v23 = vshll.u32 %v5607_v2, 16  ;;  %v2278_v28 = vshll.u32 %v7541_v8, 16  ;;  %v486_v33 = vrot.slane %v484_v17, 5  ;;  %v7574_v13 = vld [vmem:[%s7407_s12 + $0x50] sm:$0x1] }
  0xb7   : > { %v2267_v32 = vsel %vm7449_vm3, %v2262_v16, %v2266_v62  ;;  %v2271_v34 = vrot.slane %v2269_v20, 4  ;;  %v2282_v35 = vshrl.u32 %v7541_v8, 16  ;;  %v472_v38 = vrot.slane %v471_v21, 4 }
  0xb8   : > { %v5646_v37 = vcombine.low %v2257_v11, %v2267_v32  ;;  %v482_v39 = vrot.slane %v481_v22, 4  ;;  %v2274_v40 = vrot.slane %v2272_v23, 5  ;;  %v2280_v41 = vrot.slane %v2278_v28, 5  ;;  %v7577_v11 = vld [vmem:[%s7407_s12 + $0x48] sm:$0xf] }
  0xb9   : > { %v2284_v42 = vrot.slane %v2282_v35, 4  ;;  %v2288_v24 = vshll.u32 %v7546_v18, 16  ;;  %v489_v45 = vshrl.u32 %v326_v29, 16  ;;  %v477_v47 = vsel %vm7449_vm3, %v472_v38, %v476_v12  ;;  %v7585_v35 = vld [vmem:[%s7407_s12 + $0x4c] sm:$0xf] }
  0xba   : > { %6315 = vmatmul.mubr.msk.bf16.gmra.mrb[4].mxu0 %vm802_vm4, %v5646_v37  ;;  %v487_v48 = vsel %vm7449_vm3, %v482_v39, %v486_v33  ;;  %v2275_v49 = vor.u32 %v2274_v40, %v2271_v34  ;;  %v492_v51 = vshll.u32 %v326_v29, 16  ;;  %v498_v63 = vshll.u32 %v327_v44, 16 }
  0xbb   : > { %v5423_v53 = vcombine.low %v477_v47, %v487_v48  ;;  %v2285_v54 = vor.u32 %v2284_v42, %v2280_v41  ;;  %v2290_v55 = vrot.slane %v2288_v24, 5  ;;  %v491_v56 = vrot.slane %v489_v45, 4  ;;  %v5613_v48 = vld [vmem:[%s7407_s12 + $0x54] sm:$0xf] }
  0xbc   : > { %v2276_v59 = vrot.slane %v2275_v49, 4  ;;  %v494_v62 = vrot.slane %v492_v51, 5  ;;  %v502_v0 = vshrl.u32 %v327_v44, 16  ;;  %v508_v2 = vshll.u32 %v354_v50, 16 }
  0xbd   : > { %6182 = vmatprep.mubr.msk.bf16.mxu1 %vm802_vm4, %v5423_v53  ;;  %v2286_v1 = vrot.slane %v2285_v54, 4  ;;  %v2293_v5 = vshrl.u32 %v5610_v52, 16  ;;  %v2296_v6 = vshll.u32 %v5610_v52, 16  ;;  %v500_v10 = vrot.slane %v498_v63, 5  ;;  %v7599_v53 = vld [vmem:[%s7407_s12 + $0x58] sm:$0xf] }
  0xbe   : > { %v2281_v7 = vsel %vm7449_vm3, %v2276_v59, %v2280_v41  ;;  %v495_v9 = vor.u32 %v494_v62, %v491_v56  ;;  %v504_v12 = vrot.slane %v502_v0, 4  ;;  %v510_v17 = vrot.slane %v508_v2, 5  ;;  %v355_v41 = vld [vmem:[%s7407_s12 + $0x50] sm:$0x1] }
  0xbf   : > { %v2291_v16 = vsel %vm7449_vm3, %v2286_v1, %v2290_v55  ;;  %v2295_v20 = vrot.slane %v2293_v5, 4  ;;  %v2298_v21 = vrot.slane %v2296_v6, 5  ;;  %v2302_v29 = vshll.u32 %v7569_v3, 16  ;;  %v7604_v1 = vld [vmem:[%s7407_s12 + $0x5c] sm:$0x1] }
  0xc0   : > { %v5647_v22 = vcombine.low %v2281_v7, %v2291_v16  ;;  %v496_v23 = vrot.slane %v495_v9, 4  ;;  %v505_v28 = vor.u32 %v504_v12, %v500_v10  ;;  %v2306_v33 = vshrl.u32 %v7569_v3, 16 }
  0xc1   : > { %v2299_v32 = vor.u32 %v2298_v21, %v2295_v20  ;;  %v2312_v34 = vshll.u32 %v7574_v13, 16  ;;  %v513_v37 = vshrl.u32 %v7577_v11, 16  ;;  %v2304_v40 = vrot.slane %v2302_v29, 5  ;;  %v7610_v20 = vld [vmem:[%s7407_s12 + $0x54] sm:$0xf] }
  0xc2   : > { %6318 = vmatprep.mubr.msk.bf16.mxu0 %vm802_vm4, %v5647_v22  ;;  %v501_v38 = vsel %vm7449_vm3, %v496_v23, %v500_v10  ;;  %v506_v39 = vrot.slane %v505_v28, 4  ;;  %v516_v42 = vshll.u32 %v7577_v11, 16  ;;  %v2308_v44 = vrot.slane %v2306_v33, 4  ;;  %v7616_v29 = vld [vmem:[%s7407_s12 + $0x58] sm:$0xf] }
  0xc3   : > { %v2300_v24 = vrot.slane %v2299_v32, 4  ;;  %v2314_v45 = vrot.slane %v2312_v34, 5  ;;  %v515_v47 = vrot.slane %v513_v37, 4  ;;  %v522_v51 = vshll.u32 %v7585_v35, 16 }
  0xc4   : > { %v511_v49 = vsel %vm7449_vm3, %v506_v39, %v510_v17  ;;  %v518_v50 = vrot.slane %v516_v42, 5  ;;  %v526_v52 = vshrl.u32 %v7585_v35, 16  ;;  %v2309_v56 = vor.u32 %v2308_v44, %v2304_v40 }
  0xc5   : > { %v5424_v54 = vcombine.low %v501_v38, %v511_v49  ;;  %v2305_v55 = vsel %vm7449_vm3, %v2300_v24, %v2304_v40  ;;  %v532_v59 = vshll.u32 %v355_v41, 16  ;;  %v524_v63 = vrot.slane %v522_v51, 5  ;;  %v356_v40 = vld [vmem:[%s7407_s12 + $0x5c] sm:$0x1] }
  0xc6   : > { %v519_v62 = vor.u32 %v518_v50, %v515_v47  ;;  %v528_v0 = vrot.slane %v526_v52, 4  ;;  %v2317_v2 = vshrl.u32 %v5613_v48, 16  ;;  %v2310_v5 = vrot.slane %v2309_v56, 4  ;;  %v7629_v49 = vld [vmem:[#allocation6 + $0x4] sm:$0x3] }
  0xc7   : > { %6183 = vmatmul.mubr.msk.bf16.gmra.mrb[8].mxu1 %vm802_vm4, %v5424_v54  ;;  %v534_v6 = vrot.slane %v532_v59, 5  ;;  %v2320_v7 = vshll.u32 %v5613_v48, 16  ;;  %v2326_v9 = vshll.u32 %v7599_v53, 16  ;;  %v2330_v17 = vshrl.u32 %v7599_v53, 16  ;;  %v5616_v48 = vld [vmem:[%s7407_s12 + $0x60] sm:$0xf]  ;;  %6738 = vmatprep.subr.msk.bf16.mxu1 %vm851_vm0, %v7629_v49 }
  0xc8   : > { %v520_v10 = vrot.slane %v519_v62, 4  ;;  %v529_v12 = vor.u32 %v528_v0, %v524_v63  ;;  %v2319_v16 = vrot.slane %v2317_v2, 4  ;;  %v2315_v21 = vsel %vm7449_vm3, %v2310_v5, %v2314_v45  ;;  %v7640_v5 = vld [vmem:[%s7407_s12 + $0x68] sm:$0x1] }
  0xc9   : > { %v2322_v22 = vrot.slane %v2320_v7, 5  ;;  %v2328_v23 = vrot.slane %v2326_v9, 5  ;;  %v2336_v28 = vshll.u32 %v7604_v1, 16  ;;  %v5648_v32 = vcombine.low %v2305_v55, %v2315_v21  ;;  %v7632_v55 = vld [vmem:[%s7407_s12 + $0x64] sm:$0xf] }
  0xca   : > { %v525_v33 = vsel %vm7449_vm3, %v520_v10, %v524_v63  ;;  %v530_v34 = vrot.slane %v529_v12, 4  ;;  %v2332_v37 = vrot.slane %v2330_v17, 4  ;;  %v537_v41 = vshrl.u32 %v7610_v20, 16  ;;  %v7646_v17 = vld [vmem:[%s7407_s12 + $0x60] sm:$0xf] }
  0xcb   : > { %v2323_v38 = vor.u32 %v2322_v22, %v2319_v16  ;;  %v2338_v39 = vrot.slane %v2336_v28, 5  ;;  %v540_v42 = vshll.u32 %v7610_v20, 16  ;;  %vm1356_vm5 = vcmask 1042432   ;;  %6319 = vmatmul.mubr.msk.bf16.gmra.mrb[8].mxu0 %vm802_vm4, %v5648_v32 }
  0xcc   : > { %vm1357_vm6 = vcmask 1046532   ;;  %v535_v24 = vsel %vm7449_vm3, %v530_v34, %v534_v6  ;;  %v2333_v44 = vor.u32 %v2332_v37, %v2328_v23  ;;  %v546_v45 = vshll.u32 %v7616_v29, 16 }
  0xcd   : > { %v550_v47 = vshrl.u32 %v7616_v29, 16  ;;  %v5425_v50 = vcombine.low %v525_v33, %v535_v24  ;;  %v2324_v51 = vrot.slane %v2323_v38, 4  ;;  %v539_v52 = vrot.slane %v537_v41, 4  ;;  %v357_v41 = vld [vmem:[%s7407_s12 + $0x68] sm:$0x1]  ;;  %vm7669_vm7 = vmor %vm1356_vm5, %vm1357_vm6 }
  0xce   : > { %v542_v54 = vrot.slane %v540_v42, 5  ;;  %v2334_v56 = vrot.slane %v2333_v44, 4  ;;  %v548_v59 = vrot.slane %v546_v45, 5  ;;  %v556_v63 = vshll.u32 %v356_v40, 16 }
  0xcf   : > { %v552_v62 = vrot.slane %v550_v47, 4  ;;  %6186 = vmatprep.mubr.msk.bf16.mxu1 %vm802_vm4, %v5425_v50  ;;  %v2329_v0 = vsel %vm7449_vm3, %v2324_v51, %v2328_v23  ;;  %v2341_v6 = vshrl.u32 %v5616_v48, 16  ;;  %v2344_v7 = vshll.u32 %v5616_v48, 16  ;;  %v7649_v23 = vld [vmem:[%s7407_s12 + $0x64] sm:$0xf] }
  0xd0   : > { %v543_v2 = vor.u32 %v542_v54, %v539_v52  ;;  %v2339_v9 = vsel %vm7449_vm3, %v2334_v56, %v2338_v39  ;;  %v558_v12 = vrot.slane %v556_v63, 5  ;;  %v2350_v16 = vshll.u32 %v7632_v55, 16  ;;  %v5675_v50 = vld [vmem:[%s7407_s12 + $0xc] sm:$0xe] }
  0xd1   : > { %v553_v10 = vor.u32 %v552_v62, %v548_v59  ;;  %v5649_v21 = vcombine.low %v2329_v0, %v2339_v9  ;;  %v2343_v28 = vrot.slane %v2341_v6, 4  ;;  %v2346_v32 = vrot.slane %v2344_v7, 5 }
  0xd2   : > { %v544_v22 = vrot.slane %v543_v2, 4  ;;  %v2352_v34 = vrot.slane %v2350_v16, 5  ;;  %v2354_v37 = vshrl.u32 %v7632_v55, 16  ;;  %v2360_v38 = vshll.u32 %v7640_v5, 16 }
  0xd3   : > { %v554_v33 = vrot.slane %v553_v10, 4  ;;  %6322 = vmatprep.mubr.msk.bf16.mxu0 %vm802_vm4, %v5649_v21  ;;  %v2347_v40 = vor.u32 %v2346_v32, %v2343_v28  ;;  %v561_v42 = vshrl.u32 %v7646_v17, 16  ;;  %v564_v24 = vshll.u32 %v7646_v17, 16  ;;  %v7679_v28 = vld [vmem:[%s7407_s12 + $0x70] sm:$0xf] }
  0xd4   : > { %v549_v39 = vsel %vm7449_vm3, %v544_v22, %v548_v59  ;;  %v2356_v45 = vrot.slane %v2354_v37, 4  ;;  %v2362_v47 = vrot.slane %v2360_v38, 5  ;;  %v570_v48 = vshll.u32 %v7649_v23, 16  ;;  %v7664_v59 = vld [vmem:[%s7407_s12 + $0x6c] sm:$0xf] }
  0xd5   : > { %v559_v44 = vsel %vm7449_vm3, %v554_v33, %v558_v12  ;;  %v2348_v52 = vrot.slane %v2347_v40, 4  ;;  %v563_v54 = vrot.slane %v561_v42, 4  ;;  %v566_v56 = vrot.slane %v564_v24, 5  ;;  %v358_v38 = vld [vmem:[%s7407_s12 + $0x74] sm:$0x1] }
  0xd6   : > { %v5426_v51 = vcombine.low %v549_v39, %v559_v44  ;;  %v2357_v62 = vor.u32 %v2356_v45, %v2352_v34  ;;  %v572_v63 = vrot.slane %v570_v48, 5  ;;  %v574_v0 = vshrl.u32 %v7649_v23, 16  ;;  %v5676_v40 = vld [vmem:[%s7407_s12 + $0x18] sm:$0xe]  ;;  %v7702_v48 = vld [vmem:[%s7407_s12 + $0x7c] sm:$0xf] }
  0xd7   : > { %v580_v2 = vshll.u32 %v357_v41, 16  ;;  %v2353_v7 = vsel %vm7449_vm3, %v2348_v52, %v2352_v34  ;;  %v567_v9 = vor.u32 %v566_v56, %v563_v54  ;;  %v5691_v10 = vrot.slane %v5675_v50, 9  ;;  %v359_v54 = vld [vmem:[%s7407_s12 + $0x80] sm:$0x1]  ;;  %v5677_v56 = vld [vmem:[%s7407_s12 + $0x24] sm:$0xe] }
  0xd8   : > { %6187 = vmatmul.mubr.msk.bf16.gmra.mrb[12].mxu1 %vm802_vm4, %v5426_v51  ;;  %v2918_v12 = vrot.slane %v2916_v57, 4  ;;  %v2358_v16 = vrot.slane %v2357_v62, 4  ;;  %v576_v21 = vrot.slane %v574_v0, 4  ;;  %v585_v32 = vshrl.u32 %v7664_v59, 16 }
  0xd9   : > { %v582_v22 = vrot.slane %v580_v2, 5  ;;  %v568_v33 = vrot.slane %v567_v9, 4  ;;  %v2917_v34 = vsel %vm7669_vm7, %v5691_v10, %v2916_v57  ;;  %v588_v39 = vshll.u32 %v7664_v59, 16 }
  0xda   : > { %v2920_v37 = vsel %vm7669_vm7, %v2918_v12, %v2919_v58  ;;  %v2363_v41 = vsel %vm7449_vm3, %v2358_v16, %v2362_v47  ;;  %v577_v42 = vor.u32 %v576_v21, %v572_v63  ;;  %v587_v14 = vrot.slane %v585_v32, 4  ;;  %v7699_v58 = vld [vmem:[%s7407_s12 + $0x78] sm:$0xf]  ;;  %v7723_v12 = vld [vmem:[%s7407_s12 + $0x84] sm:$0xf] }
  0xdb   : > { %v5707_v24 = vcombine.low %v2917_v34, %v2920_v37  ;;  %v5650_v44 = vcombine.low %v2353_v7, %v2363_v41  ;;  %v573_v57 = vsel %vm7449_vm3, %v568_v33, %v572_v63  ;;  %v590_v19 = vrot.slane %v588_v39, 5 }
  0xdc   : > { %v594_v45 = vshll.u32 %v7679_v28, 16  ;;  %v578_v50 = vrot.slane %v577_v42, 4  ;;  %v598_v51 = vshrl.u32 %v7679_v28, 16  ;;  %v604_v52 = vshll.u32 %v358_v38, 16  ;;  %v7733_v38 = vld [vmem:[%s7407_s12 + $0x88] sm:$0xf] }
  0xdd   : > { %v5692_v47 = vrot.slane %v5676_v40, 9  ;;  %6323 = vmatmul.mubr.msk.bf16.gmra.mrb[12].mxu0 %vm802_vm4, %v5650_v44  ;;  %v591_v62 = vor.u32 %v590_v19, %v587_v14  ;;  %v2927_v63 = vsel %vm7669_vm7, %v7485_v25, %v2926_v26  ;;  %v3484_v2 = vsel %vm851_vm0, %v7551_v31, 0  ;;  %v5678_v14 = vld [vmem:[%s7407_s12 + $0x30] sm:$0xe]  ;;  %v7737_v44 = vld [vmem:[#allocation6 + $0xe] sm:$0x3] }
  0xde   : > { %v596_v0 = vrot.slane %v594_v45, 5  ;;  %v583_v7 = vsel %vm7449_vm3, %v578_v50, %v582_v22  ;;  %6344 = vmatprep.mubr.msk.bf16.mxu0 %vm802_vm4, %v5707_v24  ;;  %v600_v9 = vrot.slane %v598_v51, 4  ;;  %v606_v10 = vrot.slane %v604_v52, 5  ;;  %v360_v24 = vld [vmem:[%s7407_s12 + $0x8c] sm:$0x1] }
  0xdf   : > { %v2924_v61 = vsel %vm7669_vm7, %v5692_v47, %v2923_v15  ;;  %v5427_v16 = vcombine.low %v573_v57, %v583_v7  ;;  %v592_v25 = vrot.slane %v591_v62, 4  ;;  %v609_v31 = vshrl.u32 %v7699_v58, 16 }
  0xe0   : > { %v5708_v26 = vcombine.low %v2924_v61, %v2927_v63  ;;  %v601_v21 = vor.u32 %v600_v9, %v596_v0  ;;  %v612_v22 = vshll.u32 %v7699_v58, 16  ;;  %v618_v32 = vshll.u32 %v7702_v48, 16 }
  0xe1   : > { %v622_v60 = vshrl.u32 %v7702_v48, 16  ;;  %6190 = vmatprep.mubr.msk.bf16.mxu1 %vm802_vm4, %v5427_v16  ;;  %v597_v15 = vsel %vm7449_vm3, %v592_v25, %v596_v0  ;;  %v611_v33 = vrot.slane %v609_v31, 4  ;;  %v628_v34 = vshll.u32 %v359_v54, 16 }
  0xe2   : > { %v5693_v37 = vrot.slane %v5677_v56, 9  ;;  %v602_v39 = vrot.slane %v601_v21, 4  ;;  %v614_v40 = vrot.slane %v612_v22, 5  ;;  %v620_v41 = vrot.slane %v618_v32, 5  ;;  %v7763_v32 = vld [vmem:[%s7407_s12 + $0x94] sm:$0xf] }
  0xe3   : > { %v624_v42 = vrot.slane %v622_v60, 4  ;;  %v630_v57 = vrot.slane %v628_v34, 5  ;;  %v2930_v19 = vrot.slane %v7495_v43, 5  ;;  %v2933_v45 = vrot.slane %v7501_v46, 5  ;;  %v7749_v43 = vld [vmem:[%s7407_s12 + $0x90] sm:$0xf] }
  0xe4   : > { %v633_v50 = vshrl.u32 %v7723_v12, 16  ;;  %v607_v51 = vsel %vm7449_vm3, %v602_v39, %v606_v10  ;;  %v615_v52 = vor.u32 %v614_v40, %v611_v33  ;;  %v636_v54 = vshll.u32 %v7723_v12, 16 }
  0xe5   : > { %v625_v47 = vor.u32 %v624_v42, %v620_v41  ;;  %v5428_v56 = vcombine.low %v597_v15, %v607_v51  ;;  %6345 = vmatmul.mubr.msk.bf16.vlgmr.msra.gmra.mrb[0].mxu0 %vm802_vm4, %v5708_v26  ;;  %v2931_v62 = vsel %vm7669_vm7, %v5693_v37, %v2930_v19  ;;  %v2932_v0 = vrot.slane %v2930_v19, 4  ;;  %v361_v37 = vld [vmem:[%s7407_s12 + $0x98] sm:$0x1] }
  0xe6   : > { %v635_v63 = vrot.slane %v633_v50, 4  ;;  %6377 = vmatpush3.bf16.msra.mxu0 %v3484_v2  ;;  %v616_v46 = vrot.slane %v615_v52, 4  ;;  %v638_v9 = vrot.slane %v636_v54, 5  ;;  %v642_v10 = vshll.u32 %v7733_v38, 16  ;;  %v7780_v52 = vld [vmem:[%s7407_s12 + $0x9c] sm:$0xf] }
  0xe7   : > { %v626_v7 = vrot.slane %v625_v47, 4  ;;  %6191 = vmatmul.mubr.msk.bf16.gmra.mrb[16].mxu1 %vm802_vm4, %v5428_v56  ;;  %v2934_v61 = vsel %vm7669_vm7, %v2932_v0, %v2933_v45  ;;  %v646_v16 = vshrl.u32 %v7733_v38, 16  ;;  %v652_v25 = vshll.u32 %v360_v24, 16  ;;  %6744 = vmatprep.subr.msk.bf16.mxu0 %vm851_vm0, %v7737_v44  ;;  %v5679_v45 = vld [vmem:[%s7407_s12 + $0x3c] sm:$0xe] }
  0xe8   : > { %v5694_v26 = vrot.slane %v5678_v14, 9  ;;  %v621_v2 = vsel %vm7449_vm3, %v616_v46, %v620_v41  ;;  %v5709_v21 = vcombine.low %v2931_v62, %v2934_v61  ;;  %v639_v22 = vor.u32 %v638_v9, %v635_v63  ;;  %v7783_v0 = vld [vmem:[%s7407_s12 + $0xa0] sm:$0xf] }
  0xe9   : > { %v631_v31 = vsel %vm7449_vm3, %v626_v7, %v630_v57  ;;  %v644_v15 = vrot.slane %v642_v10, 5  ;;  %v648_v33 = vrot.slane %v646_v16, 4  ;;  %v654_v34 = vrot.slane %v652_v25, 5 }
  0xea   : > { %v5429_v60 = vcombine.low %v621_v2, %v631_v31  ;;  %6348 = vmatprep.mubr.msk.bf16.mxu0 %vm802_vm4, %v5709_v21  ;;  %v640_v39 = vrot.slane %v639_v22, 4  ;;  %v2937_v40 = vrot.slane %v7518_v27, 5  ;;  %v2940_v41 = vrot.slane %v7524_v36, 5 }
  0xeb   : > { %v657_v42 = vshrl.u32 %v7749_v43, 16  ;;  %v649_v24 = vor.u32 %v648_v33, %v644_v15  ;;  %v660_v14 = vshll.u32 %v7749_v43, 16  ;;  %v666_v57 = vshll.u32 %v7763_v32, 16 }
  0xec   : > { %6194 = vmatprep.mubr.msk.bf16.mxu1 %vm802_vm4, %v5429_v60  ;;  %v670_v19 = vshrl.u32 %v7763_v32, 16  ;;  %v645_v50 = vsel %vm7449_vm3, %v640_v39, %v644_v15  ;;  %v2938_v27 = vsel %vm7669_vm7, %v5694_v26, %v2937_v40  ;;  %v2939_v36 = vrot.slane %v2937_v40, 4  ;;  %v362_v26 = vld [vmem:[%s7407_s12 + $0xa4] sm:$0x1]  ;;  %v5680_v60 = vld [vmem:[%s7407_s12 + $0x48] sm:$0xe] }
  0xed   : > { %v659_v51 = vrot.slane %v657_v42, 4  ;;  %v650_v47 = vrot.slane %v649_v24, 4  ;;  %v662_v54 = vrot.slane %v660_v14, 5  ;;  %v668_v56 = vrot.slane %v666_v57, 5 }
  0xee   : > { %v672_v62 = vrot.slane %v670_v19, 4  ;;  %v2941_v63 = vsel %vm7669_vm7, %v2939_v36, %v2940_v41  ;;  %v676_v46 = vshll.u32 %v361_v37, 16  ;;  %v5695_v7 = vrot.slane %v5679_v45, 9  ;;  %v7798_v37 = vld [vmem:[%s7407_s12 + $0xa8] sm:$0xf] }
  0xef   : > { %v2944_v9 = vrot.slane %v7541_v8, 5  ;;  %v655_v10 = vsel %vm7449_vm3, %v650_v47, %v654_v34  ;;  %v5710_v61 = vcombine.low %v2938_v27, %v2941_v63  ;;  %v663_v16 = vor.u32 %v662_v54, %v659_v51  ;;  %v7811_v19 = vld [vmem:[%s7407_s12 + $0xac] sm:$0xf]  ;;  %v363_v51 = vld [vmem:[%s7407_s12 + $0xb0] sm:$0x1] }
  0xf0   : > { %v673_v25 = vor.u32 %v672_v62, %v668_v56  ;;  %v5430_v2 = vcombine.low %v645_v50, %v655_v10  ;;  %v678_v31 = vrot.slane %v676_v46, 5  ;;  %v2947_v33 = vrot.slane %v7546_v18, 5 }
  0xf1   : > { %v2945_v21 = vsel %vm7669_vm7, %v5695_v7, %v2944_v9  ;;  %v2946_v22 = vrot.slane %v2944_v9, 4  ;;  %6349 = vmatmul.mubr.msk.bf16.gmra.mrb[4].mxu0 %vm802_vm4, %v5710_v61  ;;  %v664_v15 = vrot.slane %v663_v16, 4  ;;  %v681_v34 = vshrl.u32 %v7780_v52, 16 }
  0xf2   : > { %v674_v8 = vrot.slane %v673_v25, 4  ;;  %6195 = vmatmul.mubr.msk.bf16.gmra.mrb[20].mxu1 %vm802_vm4, %v5430_v2  ;;  %v684_v39 = vshll.u32 %v7780_v52, 16  ;;  %v690_v40 = vshll.u32 %v7783_v0, 16  ;;  %v694_v41 = vshrl.u32 %v7783_v0, 16 }
  0xf3   : > { %v700_v42 = vshll.u32 %v362_v26, 16  ;;  %v669_v24 = vsel %vm7449_vm3, %v664_v15, %v668_v56  ;;  %v2948_v14 = vsel %vm7669_vm7, %v2946_v22, %v2947_v33  ;;  %v683_v57 = vrot.slane %v681_v34, 4 }
  0xf4   : > { %v679_v18 = vsel %vm7449_vm3, %v674_v8, %v678_v31  ;;  %v5711_v50 = vcombine.low %v2945_v21, %v2948_v14  ;;  %v686_v27 = vrot.slane %v684_v39, 5  ;;  %v692_v36 = vrot.slane %v690_v40, 5  ;;  %v7830_v40 = vld [vmem:[%s7407_s12 + $0xb4] sm:$0xf]  ;;  %v7836_v14 = vld [vmem:[%s7407_s12 + $0xb8] sm:$0xf] }
  0xf5   : > { %v5431_v45 = vcombine.low %v669_v24, %v679_v18  ;;  %v696_v47 = vrot.slane %v694_v41, 4  ;;  %v702_v54 = vrot.slane %v700_v42, 5  ;;  %v5696_v62 = vrot.slane %v5680_v60, 9 }
  0xf6   : > { %v2951_v56 = vrot.slane %v7569_v3, 5  ;;  %6352 = vmatprep.mubr.msk.bf16.mxu0 %vm802_vm4, %v5711_v50  ;;  %v687_v63 = vor.u32 %v686_v27, %v683_v57  ;;  %v2954_v46 = vrot.slane %v7574_v13, 5  ;;  %v705_v7 = vshrl.u32 %v7798_v37, 16  ;;  %v5681_v3 = vld [vmem:[%s7407_s12 + $0x54] sm:$0xe] }
  0xf7   : > { %6198 = vmatprep.mubr.msk.bf16.mxu1 %vm802_vm4, %v5431_v45  ;;  %v708_v9 = vshll.u32 %v7798_v37, 16  ;;  %v697_v10 = vor.u32 %v696_v47, %v692_v36  ;;  %v714_v25 = vshll.u32 %v7811_v19, 16  ;;  %v718_v21 = vshrl.u32 %v7811_v19, 16 }
  0xf8   : > { %v2952_v61 = vsel %vm7669_vm7, %v5696_v62, %v2951_v56  ;;  %v2953_v16 = vrot.slane %v2951_v56, 4  ;;  %v688_v26 = vrot.slane %v687_v63, 4  ;;  %v707_v2 = vrot.slane %v705_v7, 4 }
  0xf9   : > { %v710_v31 = vrot.slane %v708_v9, 5  ;;  %v698_v13 = vrot.slane %v697_v10, 4  ;;  %v716_v60 = vrot.slane %v714_v25, 5  ;;  %v724_v15 = vshll.u32 %v363_v51, 16 }
  0xfa   : > { %v2955_v22 = vsel %vm7669_vm7, %v2953_v16, %v2954_v46  ;;  %v693_v8 = vsel %vm7449_vm3, %v688_v26, %v692_v36  ;;  %v720_v39 = vrot.slane %v718_v21, 4  ;;  %v5697_v24 = vrot.slane %v5681_v3, 9  ;;  %v7841_v36 = vld [vmem:[%s7407_s12 + $0xbc] sm:$0x1]  ;;  %v5682_v46 = vld [vmem:[%s7407_s12 + $0x60] sm:$0xe] }
  0xfb   : > { %v5712_v33 = vcombine.low %v2952_v61, %v2955_v22  ;;  %v711_v34 = vor.u32 %v710_v31, %v707_v2  ;;  %v703_v41 = vsel %vm7449_vm3, %v698_v13, %v702_v54  ;;  %v726_v42 = vrot.slane %v724_v15, 5  ;;  %v5683_v16 = vld [vmem:[%s7407_s12 + $0x6c] sm:$0xe]  ;;  %v5620_v31 = vld [vmem:[%s7407_s12 + $0x70] sm:$0xf] }
  0xfc   : > { %v2958_v18 = vrot.slane %v7599_v53, 5  ;;  %v5432_v57 = vcombine.low %v693_v8, %v703_v41  ;;  %v721_v50 = vor.u32 %v720_v39, %v716_v60  ;;  %v2961_v27 = vrot.slane %v7604_v1, 5  ;;  %v5621_v21 = vld [vmem:[%s7407_s12 + $0x74] sm:$0x1] }
  0xfd   : > { %6353 = vmatmul.mubr.msk.bf16.gmra.mrb[8].mxu0 %vm802_vm4, %v5712_v33  ;;  %v712_v45 = vrot.slane %v711_v34, 4  ;;  %v729_v54 = vshrl.u32 %v7830_v40, 16  ;;  %v732_v53 = vshll.u32 %v7830_v40, 16  ;;  %v738_v1 = vshll.u32 %v7836_v14, 16 }
  0xfe   : > { %v2959_v51 = vsel %vm7669_vm7, %v5697_v24, %v2958_v18  ;;  %v2960_v47 = vrot.slane %v2958_v18, 4  ;;  %6199 = vmatmul.mubr.msk.bf16.gmra.mrb[24].mxu1 %vm802_vm4, %v5432_v57  ;;  %v722_v56 = vrot.slane %v721_v50, 4  ;;  %v742_v63 = vshrl.u32 %v7836_v14, 16 }
  0xff   : > { %v717_v62 = vsel %vm7449_vm3, %v712_v45, %v716_v60  ;;  %v731_v9 = vrot.slane %v729_v54, 4  ;;  %v734_v10 = vrot.slane %v732_v53, 5  ;;  %v748_v61 = vshll.u32 %v7841_v36, 16  ;;  %v6897_v54 = vld [vmem:[%s7407_s12] sm:$0xf] }
 0x100   : > { %v2962_v7 = vsel %vm7669_vm7, %v2960_v47, %v2961_v27  ;;  %v727_v25 = vsel %vm7449_vm3, %v722_v56, %v726_v42  ;;  %v740_v26 = vrot.slane %v738_v1, 5  ;;  %v744_v2 = vrot.slane %v742_v63, 4  ;;  %v5684_v27 = vld [vmem:[%s7407_s12 + $0x78] sm:$0xe]  ;;  %v7878_v53 = vld [vmem:[%s7407_s12 + $0x4] sm:$0xf] }
 0x101   : > { %v5713_v3 = vcombine.low %v2959_v51, %v2962_v7  ;;  %v5433_v13 = vcombine.low %v717_v62, %v727_v25  ;;  %v735_v22 = vor.u32 %v734_v10, %v731_v9  ;;  %v750_v60 = vrot.slane %v748_v61, 5  ;;  %v7882_v56 = vld [vmem:[%s7407_s12 + $0x7c] sm:$0xf]  ;;  %v7885_v1 = vld [vmem:[%s7407_s12 + $0x80] sm:$0x1] }
 0x102   : > { %v5698_v15 = vrot.slane %v5682_v46, 9  ;;  %v745_v8 = vor.u32 %v744_v2, %v740_v26  ;;  %v2965_v33 = vrot.slane %v7632_v55, 5  ;;  %v2968_v34 = vrot.slane %v7640_v5, 5  ;;  %v5685_v63 = vld [vmem:[%s7407_s12 + $0x84] sm:$0xe] }
 0x103   : > { %6356 = vmatprep.mubr.msk.bf16.mxu0 %vm802_vm4, %v5713_v3  ;;  %v5699_v39 = vrot.slane %v5683_v16, 9  ;;  %6202 = vmatprep.mubr.msk.bf16.mxu1 %vm802_vm4, %v5433_v13  ;;  %v736_v41 = vrot.slane %v735_v22, 4  ;;  %v2972_v42 = vrot.slane %v5620_v31, 5  ;;  %v2975_v24 = vrot.slane %v5621_v21, 5  ;;  %v5626_v10 = vld [vmem:[%s7407_s12 + $0x88] sm:$0xf] }
 0x104   : > { %v746_v18 = vrot.slane %v745_v8, 4  ;;  %v2966_v57 = vsel %vm7669_vm7, %v5698_v15, %v2965_v33  ;;  %v2967_v45 = vrot.slane %v2965_v33, 4  ;;  %v5451_v62 = vcombine.low %v6897_v54, %v7878_v53  ;;  %v5627_v61 = vld [vmem:[%s7407_s12 + $0x8c] sm:$0x1]  ;;  %v5629_v3 = vld [vmem:[%s7407_s12 + $0x94] sm:$0xf] }
 0x105   : > { %v741_v55 = vsel %vm7449_vm3, %v736_v41, %v740_v26  ;;  %v2973_v5 = vsel %vm7669_vm7, %v5699_v39, %v2972_v42  ;;  %v2974_v50 = vrot.slane %v2972_v42, 4  ;;  %v5700_v25 = vrot.slane %v5684_v27, 9  ;;  %v5630_v22 = vld [vmem:[%s7407_s12 + $0x98] sm:$0x1]  ;;  %v6899_v39 = vld [vmem:[%s7407_s12 + $0xc] sm:$0xf] }
 0x106   : > { %v751_v51 = vsel %vm7449_vm3, %v746_v18, %v750_v60  ;;  %v2969_v47 = vsel %vm7669_vm7, %v2967_v45, %v2968_v34  ;;  %v2979_v26 = vrot.slane %v7882_v56, 5  ;;  %v2982_v2 = vrot.slane %v7885_v1, 5  ;;  %v5686_v60 = vld [vmem:[%s7407_s12 + $0x90] sm:$0xe]  ;;  %v5632_v34 = vld [vmem:[%s7407_s12 + $0xa0] sm:$0xf] }
 0x107   : > { %v5434_v46 = vcombine.low %v741_v55, %v751_v51  ;;  %v5714_v7 = vcombine.low %v2966_v57, %v2969_v47  ;;  %v2976_v9 = vsel %vm7669_vm7, %v2974_v50, %v2975_v24  ;;  %v5701_v31 = vrot.slane %v5685_v63, 9  ;;  %v7906_v41 = vld [vmem:[%s7407_s12 + $0x10] sm:$0xf]  ;;  %v5633_v57 = vld [vmem:[%s7407_s12 + $0xa4] sm:$0x1] }
 0x108   : > { %v5715_v16 = vcombine.low %v2973_v5, %v2976_v9  ;;  %v2986_v21 = vrot.slane %v5626_v10, 5  ;;  %v2989_v13 = vrot.slane %v5627_v61, 5  ;;  %v2980_v15 = vsel %vm7669_vm7, %v5700_v25, %v2979_v26  ;;  %v5687_v45 = vld [vmem:[%s7407_s12 + $0x9c] sm:$0xe]  ;;  %v6901_v5 = vld [vmem:[%s7407_s12 + $0x18] sm:$0xf] }
 0x109   : > { %6203 = vmatmul.mubr.msk.bf16.gmra.mrb[28].mxu1 %vm802_vm4, %v5434_v46  ;;  %6357 = vmatmul.mubr.msk.bf16.gmra.mrb[12].mxu0 %vm802_vm4, %v5714_v7  ;;  %v2981_v8 = vrot.slane %v2979_v26, 4  ;;  %v2993_v33 = vrot.slane %v5629_v3, 5  ;;  %v5452_v42 = vcombine.low %v6899_v39, %v7906_v41  ;;  %v7917_v50 = vld [vmem:[%s7407_s12 + $0x1c] sm:$0xf]  ;;  %v5702_v51 = vrot.slane %v5686_v60, 9 }
 0x10a   : > { %6208 = vmatprep.mubr.msk.bf16.mxu1 %vm802_vm4, %v5451_v62  ;;  %6360 = vmatprep.mubr.msk.bf16.mxu0 %vm802_vm4, %v5715_v16  ;;  %v2987_v24 = vsel %vm7669_vm7, %v5701_v31, %v2986_v21  ;;  %v2988_v18 = vrot.slane %v2986_v21, 4  ;;  %v5453_v27 = vcombine.low %v6901_v5, %v7917_v50  ;;  %v2996_v47 = vrot.slane %v5630_v22, 5  ;;  %v5635_v7 = vld [vmem:[%s7407_s12 + $0xac] sm:$0xf]  ;;  %v5638_v9 = vld [vmem:[%s7407_s12 + $0xb8] sm:$0xf] }
 0x10b   : > { %v2983_v55 = vsel %vm7669_vm7, %v2981_v8, %v2982_v2  ;;  %v2995_v63 = vrot.slane %v2993_v33, 4  ;;  %v3000_v46 = vrot.slane %v5632_v34, 5  ;;  %v1570_v10 = vsel %vm851_vm0, %v7629_v49, 0  ;;  %v7926_v26 = vld [vmem:[#allocation6 + $0x6] sm:$0x3] }
 0x10c   : > { %v5716_v54 = vcombine.low %v2980_v15, %v2983_v55  ;;  %v2990_v62 = vsel %vm7669_vm7, %v2988_v18, %v2989_v13  ;;  %v5703_v16 = vrot.slane %v5687_v45, 9  ;;  %v3003_v25 = vrot.slane %v5633_v57, 5  ;;  %v5636_v31 = vld [vmem:[%s7407_s12 + $0xb0] sm:$0x1]  ;;  %v5688_v60 = vld [vmem:[%s7407_s12 + $0xa8] sm:$0xe] }
 0x10d   : > { %v5717_v61 = vcombine.low %v2987_v24, %v2990_v62  ;;  %v3002_v3 = vrot.slane %v3000_v46, 4  ;;  %v2994_v49 = vsel %vm7669_vm7, %v5702_v51, %v2993_v33  ;;  %v2997_v2 = vsel %vm7669_vm7, %v2995_v63, %v2996_v47  ;;  %v5639_v8 = vld [vmem:[%s7407_s12 + $0xbc] sm:$0x1]  ;;  %v5689_v33 = vld [vmem:[%s7407_s12 + $0xb4] sm:$0xe] }
 0x10e   : > { %v3007_v21 = vrot.slane %v5635_v7, 5  ;;  %v3001_v13 = vsel %vm7669_vm7, %v5703_v16, %v3000_v46  ;;  %v3014_v15 = vrot.slane %v5638_v9, 5  ;;  %v6903_v34 = vld [vmem:[%s7407_s12 + $0x24] sm:$0xf]  ;;  %v7948_v39 = vld [vmem:[%s7407_s12 + $0x28] sm:$0xf]  ;;  %v5718_v24 = vcombine.low %v2994_v49, %v2997_v2 }
 0x10f   : > { %v3004_v22 = vsel %vm7669_vm7, %v3002_v3, %v3003_v25  ;;  %v6905_v18 = vld [vmem:[%s7407_s12 + $0x30] sm:$0xf]  ;;  %v7953_v57 = vld [vmem:[%s7407_s12 + $0x34] sm:$0xf]  ;;  %v5641_v55 = vld [vmem:[%s7407_s12 + $0xc4] sm:$0xf] }
 0x110   : > { %v5455_v45 = vcombine.low %v6905_v18, %v7953_v57  ;;  %v5719_v5 = vcombine.low %v3001_v13, %v3004_v22  ;;  %v3009_v51 = vrot.slane %v3007_v21, 4  ;;  %v3010_v47 = vrot.slane %v5636_v31, 5  ;;  %v5642_v16 = vld [vmem:[%s7407_s12 + $0xc8] sm:$0x1]  ;;  %v5690_v25 = vld [vmem:[%s7407_s12 + $0xc0] sm:$0xe] }
 0x111   : > { %6209 = vmatmul.mubr.msk.bf16.vlgmr.msra.gmra.mrb[0].mxu1 %vm802_vm4, %v5452_v42  ;;  %6361 = vmatmul.mubr.msk.bf16.gmra.mrb[16].mxu0 %vm802_vm4, %v5716_v54  ;;  %v5454_v42 = vcombine.low %v6903_v34, %v7948_v39  ;;  %v5705_v54 = vrot.slane %v5689_v33, 9  ;;  %v3016_v62 = vrot.slane %v3014_v15, 4  ;;  %v3017_v63 = vrot.slane %v5639_v8, 5  ;;  %v6907_v3 = vld [vmem:[%s7407_s12 + $0x3c] sm:$0xf] }
 0x112   : > { %6241 = vmatpush3.bf16.msra.mxu1 %v1570_v10  ;;  %6212 = vmatprep.mubr.msk.bf16.mxu1 %vm802_vm4, %v5453_v27  ;;  %v5704_v27 = vrot.slane %v5688_v60, 9  ;;  %v3011_v7 = vsel %vm7669_vm7, %v3009_v51, %v3010_v47  ;;  %v3021_v9 = vrot.slane %v5641_v55, 5  ;;  %v7973_v49 = vld [vmem:[%s7407_s12 + $0x40] sm:$0xf]  ;;  %v5706_v22 = vrot.slane %v5690_v25, 9  ;;  %v6860_v25 = vld [vmem:[%s7407_s12 + $0x24] sm:$0xff]  }
 0x113   : > { %6364 = vmatprep.mubr.msk.bf16.mxu0 %vm802_vm4, %v5717_v61  ;;  %6739 = vmatprep.subr.msk.bf16.mxu1 %vm851_vm0, %v7926_v26  ;;  %v3015_v10 = vsel %vm7669_vm7, %v5705_v54, %v3014_v15  ;;  %v3018_v61 = vsel %vm7669_vm7, %v3016_v62, %v3017_v63  ;;  %v5456_v2 = vcombine.low %v6907_v3, %v7973_v49  ;;  %v3024_v8 = vrot.slane %v5642_v16, 5  ;;  %v1309_v51 = vld [vmem:[%s7407_s12 + $0xc] sm:$0xe]  ;;  %v8002_v47 = vld [vmem:[%s7407_s12 + $0x8] sm:$0x1] }
 0x114   : > { %v3008_v46 = vsel %vm7669_vm7, %v5704_v27, %v3007_v21  ;;  %v5457_v21 = vcombine.low %v7577_v11, %v7585_v35  ;;  %v5721_v13 = vcombine.low %v3015_v10, %v3018_v61  ;;  %v3023_v60 = vrot.slane %v3021_v9, 4  ;;  %v1310_v63 = vld [vmem:[%s7407_s12 + $0x18] sm:$0xe]  ;;  %v1311_v61 = vld [vmem:[%s7407_s12 + $0x24] sm:$0xe] }
 0x115   : > { %v5720_v31 = vcombine.low %v3008_v46, %v3011_v7  ;;  %v2398_v15 = vshll.u32 %v7882_v56, 16  ;;  %v2402_v33 = vshrl.u32 %v7882_v56, 16  ;;  %v3022_v11 = vsel %vm7669_vm7, %v5706_v22, %v3021_v9  ;;  %v1312_v16 = vld [vmem:[%s7407_s12 + $0x30] sm:$0xe] }
 0x116   : > { %v3025_v35 = vsel %vm7669_vm7, %v3023_v60, %v3024_v8  ;;  %v5459_v18 = vcombine.low %v7646_v17, %v7649_v23  ;;  %v1368_v27 = vrot.slane %v7906_v41, 5  ;;  %v1308_v23 = vld [vmem:[%s7407_s12] sm:$0xe]  ;;  %v5460_v54 = vcombine.low %v7664_v59, %v7679_v28 }
 0x117   : > { %v7988_v34 = vrot.slane %v2398_v15, 5  ;;  %v2404_v56 = vrot.slane %v2402_v33, 4  ;;  %v1361_v62 = vrot.slane %v7878_v53, 5  ;;  %v4210_v46 = vsel %vm851_vm0, %v7737_v44, 0  ;;  %v1313_v44 = vld [vmem:[%s7407_s12 + $0x3c] sm:$0xe] }
 0x118   : > { %v5484_v7 = vrot.slane %v1309_v51, 9  ;;  %v1370_v9 = vrot.slane %v1368_v27, 4  ;;  %v1375_v10 = vrot.slane %v7917_v50, 5  ;;  %v5461_v3 = vcombine.low %v7699_v58, %v7702_v48  ;;  %v6862_v53 = vld [vmem:[%s7407_s12 + $0x30] sm:$0xff]   ;;  %v8035_v58 = vld [vmem:[#allocation6 + $0x10] sm:$0x3] }
 0x119   : > { %6213 = vmatmul.mubr.msk.bf16.gmra.mrb[4].mxu1 %vm802_vm4, %v5454_v42  ;;  %6365 = vmatmul.mubr.msk.bf16.gmra.mrb[20].mxu0 %vm802_vm4, %v5718_v24  ;;  %9442 = vst [vmem:[#allocation18_spill] sm:$0xff] %v7988_v34  ;;  %v5458_v42 = vcombine.low %v7610_v20, %v7616_v29  ;;  %v5722_v24 = vcombine.low %v3022_v11, %v3025_v35  ;;  %v1364_v20 = vrot.slane %v8002_v47, 5  ;;  %v6910_v29 = vld [vmem:[%s7407_s12 + $0x14] sm:$0x1]  ;;  %v1382_v28 = vrot.slane %v7948_v39, 5 }
 0x11a   : > { %6216 = vmatprep.mubr.msk.bf16.mxu1 %vm802_vm4, %v5455_v45  ;;  %6368 = vmatprep.mubr.msk.bf16.mxu0 %vm802_vm4, %v5719_v5  ;;  %v6858_v45 = vld [vmem:[%s7407_s12 + $0x18] sm:$0xff]   ;;  %v2405_v55 = vor.u32 %v2404_v56, %v7988_v34  ;;  %v2408_v5 = vshll.u32 %v7885_v1, 16  ;;  %v1371_v17 = vrot.slane %v6910_v29, 5  ;;  %v5463_v59 = vcombine.low %v7749_v43, %v7763_v32  ;;  %v6911_v33 = vld [vmem:[%s7407_s12 + $0x20] sm:$0x1] }
 0x11b   : > { %v1363_v60 = vrot.slane %v1361_v62, 4  ;;  %v1396_v39 = vrot.slane %v7973_v49, 5  ;;  %v8044_v8 = vsel %vm7669_vm7, %v5484_v7, %v1368_v27  ;;  %v1378_v11 = vrot.slane %v6911_v33, 5  ;;  %v6912_v56 = vld [vmem:[%s7407_s12 + $0x2c] sm:$0x1] }
 0x11c   : > { %v8009_v1 = vrot.slane %v2405_v55, 4  ;;  %v8011_v41 = vrot.slane %v2408_v5, 5  ;;  %v8048_v15 = vsel %vm7669_vm7, %v1370_v9, %v1371_v17  ;;  %v5486_v49 = vrot.slane %v1311_v61, 9  ;;  %v1314_v27 = vld [vmem:[%s7407_s12 + $0x48] sm:$0xe]  ;;  %v6864_v17 = vld [vmem:[%s7407_s12 + $0x3c] sm:$0xff]  }
 0x11d   : > { %v1384_v35 = vrot.slane %v1382_v28, 4  ;;  %v5488_v5 = vrot.slane %v1313_v44, 9  ;;  %v6914_v51 = vld [vmem:[%s7407_s12 + $0x4c] sm:$0xf]  ;;  %v8075_v9 = vsel %vm7669_vm7, %v1363_v60, %v1364_v20  ;;  %v5489_v44 = vrot.slane %v1314_v27, 9 }
 0x11e   : > { %9443 = vst [vmem:[#allocation19_spill] sm:$0xff] %v8009_v1  ;;  %9444 = vst [vmem:[#allocation20_spill] sm:$0xff] %v8011_v41  ;;  %v1403_v29 = vrot.slane %v6914_v51, 5  ;;  %v8092_v47 = vsel %vm7669_vm7, %v5486_v49, %v1382_v28  ;;  %v6916_v60 = vld [vmem:[%s7407_s12 + $0x50] sm:$0x1]  ;;  %vm283_vm8 = vcmask 64512  }
 0x11f   : > { %v6918_v51 = vld [vmem:[%s7407_s12 + $0x5c] sm:$0x1]  ;;  %v5805_v43 = vld [vmem:[%s7407_s12 + $0x20] sm:$0x1]  ;;  %v5807_v32 = vld [vmem:[%s7407_s12 + $0x28] sm:$0xf] }
 0x120   : > { %v1405_v28 = vrot.slane %v1403_v29, 4  ;;  %v8352_v34 = vld [vmem:[%s7407_s12 + $0x64] sm:$0xf]  ;;  %vm5245_vm9 = vcmask 60416  }
 0x121   : > { %6217 = vmatmul.mubr.msk.bf16.gmra.mrb[8].mxu1 %vm802_vm4, %v5456_v2  ;;  %6369 = vmatmul.mubr.msk.bf16.gmra.mrb[24].mxu0 %vm802_vm4, %v5720_v31  ;;  %v5462_v2 = vcombine.low %v7723_v12, %v7733_v38  ;;  %v5483_v31 = vrot.slane %v1308_v23, 9  ;;  %v5806_v12 = vld [vmem:[%s7407_s12 + $0x24] sm:$0xf]  ;;  %9457 = vst [vmem:[#allocation27_spill] sm:$0xff] %v8352_v34 }
 0x122   : > { %6220 = vmatprep.mubr.msk.bf16.mxu1 %vm802_vm4, %v5457_v21  ;;  %6372 = vmatprep.mubr.msk.bf16.mxu0 %vm802_vm4, %v5721_v13  ;;  %v5485_v21 = vrot.slane %v1310_v63, 9  ;;  %v1389_v13 = vrot.slane %v7953_v57, 5  ;;  %v1377_v57 = vrot.slane %v1375_v10, 4  ;;  %v1398_v63 = vrot.slane %v1396_v39, 4 }
 0x123   : > { %v8062_v23 = vsel %vm7669_vm7, %v5483_v31, %v1361_v62 }
 0x124   : > { %v8085_v61 = vsel %vm7669_vm7, %v1377_v57, %v1378_v11  ;;  %v1406_v57 = vrot.slane %v6916_v60, 5  ;;  %v3755_v60 = vshll.u32 %v5806_v12, 16 }
 0x126   : > { %v3757_v50 = vrot.slane %v3755_v60, 5  ;;  %v8209_v60 = vld [vmem:[%s7407_s12 + $0x38] sm:$0x1] }
 0x127   : > { %9448 = vst [vmem:[#allocation22_spill] sm:$0xff] %v8209_v60 }
 0x129   : > { %6221 = vmatmul.mubr.msk.bf16.gmra.mrb[12].mxu1 %vm802_vm4, %v5458_v42  ;;  %6373 = vmatmul.mubr.msk.bf16.gmra.mrb[28].mxu0 %vm802_vm4, %v5722_v24  ;;  %v1385_v42 = vrot.slane %v6912_v56, 5  ;;  %v5487_v24 = vrot.slane %v1312_v16, 9  ;;  %v1315_v16 = vld [vmem:[%s7407_s12 + $0x54] sm:$0xe] }
 0x12a   : > { %6224 = vmatprep.mubr.msk.bf16.mxu1 %vm802_vm4, %v5459_v18  ;;  %6378 = vmatprep.mubr.msk.bf16.mxu0 %vm802_vm4, %v6858_v45  ;;  %v1391_v18 = vrot.slane %v1389_v13, 4  ;;  %v6913_v45 = vld [vmem:[%s7407_s12 + $0x38] sm:$0x1] }
 0x12b   : > { %v1392_v55 = vrot.slane %v6913_v45, 5  ;;  %v8096_v20 = vsel %vm7669_vm7, %v1384_v35, %v1385_v42  ;;  %v3761_v45 = vshll.u32 %v5807_v32, 16 }
 0x12d   : > { %v8105_v31 = vsel %vm7669_vm7, %v1391_v18, %v1392_v55  ;;  %v8134_v55 = vsel %vm7669_vm7, %v5489_v44, %v1403_v29  ;;  %v1413_v29 = vrot.slane %v6918_v51, 5  ;;  %v1317_v51 = vld [vmem:[%s7407_s12 + $0x6c] sm:$0xe]  ;;  %v6870_v18 = vld [vmem:[%s7407_s12 + $0x60] sm:$0xff]  }
 0x131   : > { %6225 = vmatmul.mubr.msk.bf16.gmra.mrb[16].mxu1 %vm802_vm4, %v5460_v54  ;;  %6379 = vmatmul.mubr.msk.bf16.vlgmr.msra.gmra.mrb[0].mxu0 %vm802_vm4, %v6860_v25  ;;  %v8066_v54 = vsel %vm851_vm0, %v7926_v26, 0  ;;  %v8081_v26 = vsel %vm7669_vm7, %v5485_v21, %v1375_v10  ;;  %v5803_v25 = vld [vmem:[%s7407_s12 + $0x18] sm:$0xf]  ;;  %v8100_v10 = vsel %vm7669_vm7, %v5487_v24, %v1389_v13  ;;  %v8109_v21 = vsel %vm7669_vm7, %v5488_v5, %v1396_v39  ;;  %v8121_v39 = vld [vmem:[%s7407_s12 + $0x60] sm:$0xe] }
 0x132   : > { %6411 = vmatpush3.bf16.msra.mxu0 %v4210_v46  ;;  %6228 = vmatprep.mubr.msk.bf16.mxu1 %vm802_vm4, %v5461_v3  ;;  %v6915_v46 = vld [vmem:[%s7407_s12 + $0x44] sm:$0x1]  ;;  %v6866_v3 = vld [vmem:[%s7407_s12 + $0x48] sm:$0xff]   ;;  %v5490_v13 = vrot.slane %v1315_v16, 9  ;;  %v3728_v11 = vshrl.u32 %v5803_v25, 16  ;;  %v3731_v49 = vshll.u32 %v5803_v25, 16  ;;  %v9460_v4 = vcombine.low %v8100_v10, %v8105_v31 }
 0x133   : > { %6382 = vmatprep.mubr.msk.bf16.mxu0 %vm802_vm4, %v6862_v53  ;;  %v1399_v7 = vrot.slane %v6915_v46, 5  ;;  %6745 = vmatprep.subr.msk.bf16.mxu0 %vm851_vm0, %v8035_v58  ;;  %v5804_v53 = vld [vmem:[%s7407_s12 + $0x1c] sm:$0xf]  ;;  %v6917_v5 = vld [vmem:[%s7407_s12 + $0x58] sm:$0xf] }
 0x134   : > { %v3737_v42 = vshll.u32 %v5804_v53, 16  ;;  %v3741_v24 = vshrl.u32 %v5804_v53, 16  ;;  %v1410_v27 = vrot.slane %v6917_v5, 5  ;;  %v6868_v46 = vld [vmem:[%s7407_s12 + $0x54] sm:$0xff]   ;;  %v3730_v16 = vrot.slane %v3728_v11, 4 }
 0x135   : > { %v8114_v33 = vsel %vm7669_vm7, %v1398_v63, %v1399_v7  ;;  %v5491_v7 = vrot.slane %v8121_v39, 9  ;;  %v3733_v25 = vrot.slane %v3731_v49, 5  ;;  %v6921_v39 = vld [vmem:[%s7407_s12 + $0x68] sm:$0x1] }
 0x136   : > { %v8160_v44 = vrot.slane %v3737_v42, 5  ;;  %v3743_v53 = vrot.slane %v3741_v24, 4  ;;  %v1412_v5 = vrot.slane %v1410_v27, 4  ;;  %v1420_v11 = vrot.slane %v6921_v39, 5  ;;  %v6922_v39 = vld [vmem:[%s7407_s12 + $0x74] sm:$0x1] }
 0x137   : > { %v3734_v35 = vor.u32 %v3733_v25, %v3730_v16  ;;  %v3747_v42 = vshll.u32 %v5805_v43, 16  ;;  %v8174_v16 = vrot.slane %v3761_v45, 5  ;;  %v9446_v25 = vcombine.low %v7798_v37, %v7811_v19  ;;  %v8190_v45 = vld [vmem:[%s7407_s12 + $0x2c] sm:$0x1] }
 0x138   : > { %9447 = vst [vmem:[#allocation21_spill] sm:$0xff] %v8190_v45 }
 0x139   : > { %6229 = vmatmul.mubr.msk.bf16.gmra.mrb[20].mxu1 %vm802_vm4, %v5462_v2  ;;  %6383 = vmatmul.mubr.msk.bf16.gmra.mrb[4].mxu0 %vm802_vm4, %v6864_v17  ;;  %v8147_v2 = vsel %vm7669_vm7, %v1405_v28, %v1406_v57  ;;  %v6919_v17 = vld [vmem:[%s7407_s12 + $0x64] sm:$0xf]  ;;  %v3752_v28 = vshrl.u32 %v5806_v12, 16  ;;  %v5810_v57 = vld [vmem:[%s7407_s12 + $0x34] sm:$0xf]  ;;  %v3744_v12 = vor.u32 %v3743_v53, %v8160_v44 }
 0x13a   : > { %6232 = vmatprep.mubr.msk.bf16.mxu1 %vm802_vm4, %v5463_v59  ;;  %6386 = vmatprep.mubr.msk.bf16.mxu0 %vm802_vm4, %v6866_v3  ;;  %v1417_v63 = vrot.slane %v6919_v17, 5  ;;  %v8156_v59 = vsel %vm7669_vm7, %v5490_v13, %v1410_v27  ;;  %v5809_v3 = vld [vmem:[%s7407_s12 + $0x30] sm:$0xf]  ;;  %v3765_v13 = vshrl.u32 %v5807_v32, 16  ;;  %v3785_v22 = vshll.u32 %v5810_v57, 16 }
 0x13b   : > { %v6920_v17 = vld [vmem:[%s7407_s12 + $0x70] sm:$0xf]  ;;  %v3776_v62 = vshrl.u32 %v5809_v3, 16  ;;  %v3779_v49 = vshll.u32 %v5809_v3, 16  ;;  %v3789_v24 = vshrl.u32 %v5810_v57, 16  ;;  %v5492_v27 = vrot.slane %v1317_v51, 9 }
 0x13c   : > { %v1424_v38 = vrot.slane %v6920_v17, 5  ;;  %v1419_v56 = vrot.slane %v1417_v63, 4  ;;  %v3754_v48 = vrot.slane %v3752_v28, 4  ;;  %v9445_v32 = vcombine.low %v7780_v52, %v7783_v0  ;;  %v6923_v51 = vld [vmem:[%s7407_s12 + $0x7c] sm:$0xf] }
 0x13d   : > { %v1427_v3 = vrot.slane %v6922_v39, 5  ;;  %v3767_v43 = vrot.slane %v3765_v13, 4  ;;  %v8183_v52 = vsel %vm7669_vm7, %v1412_v5, %v1413_v29  ;;  %v8187_v0 = vsel %vm7669_vm7, %v5491_v7, %v1417_v63  ;;  %v1318_v5 = vld [vmem:[%s7407_s12 + $0x78] sm:$0xe]  ;;  %v5812_v39 = vld [vmem:[%s7407_s12 + $0x3c] sm:$0xf] }
 0x13e   : > { %v1426_v17 = vrot.slane %v1424_v38, 4  ;;  %v3781_v37 = vrot.slane %v3779_v49, 5  ;;  %v8194_v19 = vsel %vm7669_vm7, %v1419_v56, %v1420_v11  ;;  %v8198_v53 = vrot.slane %v3785_v22, 5  ;;  %v6872_v56 = vld [vmem:[%s7407_s12 + $0x6c] sm:$0xff]  }
 0x13f   : > { %v3791_v29 = vrot.slane %v3789_v24, 4  ;;  %v8200_v28 = vrot.slane %v3744_v12, 4  ;;  %v8202_v63 = vrot.slane %v3747_v42, 5  ;;  %v8206_v7 = vsel %vm7669_vm7, %v5492_v27, %v1424_v38  ;;  %v6873_v38 = vld [vmem:[%s7407_s12 + $0x78] sm:$0xff]   ;;  %v1319_v27 = vld [vmem:[%s7407_s12 + $0x84] sm:$0xe] }
 0x140   : > { %v3768_v22 = vor.u32 %v3767_v43, %v8174_v16  ;;  %v3771_v57 = vshll.u32 %v8190_v45, 16  ;;  %v1431_v13 = vrot.slane %v6923_v51, 5  ;;  %v3795_v12 = vshll.u32 %v8209_v60, 16  ;;  %v6925_v51 = vld [vmem:[%s7407_s12 + $0x80] sm:$0x1] }
 0x141   : > { %6233 = vmatmul.mubr.msk.bf16.gmra.mrb[24].mxu1 %vm802_vm4, %v9445_v32  ;;  %6387 = vmatmul.mubr.msk.bf16.gmra.mrb[8].mxu0 %vm802_vm4, %v6868_v46  ;;  %v3778_v46 = vrot.slane %v3776_v62, 4  ;;  %v3758_v62 = vor.u32 %v3757_v50, %v3754_v48  ;;  %v3792_v24 = vor.u32 %v3791_v29, %v8198_v53  ;;  %v6924_v32 = vld [vmem:[%s7407_s12 + $0x88] sm:$0xf]  ;;  %v6926_v43 = vld [vmem:[%s7407_s12 + $0x8c] sm:$0x1] }
 0x142   : > { %6236 = vmatprep.mubr.msk.bf16.mxu1 %vm802_vm4, %v9446_v25  ;;  %6390 = vmatprep.mubr.msk.bf16.mxu0 %vm802_vm4, %v6870_v18  ;;  %v8196_v18 = vrot.slane %v3734_v35, 4  ;;  %v8214_v35 = vsel %vm7669_vm7, %v1426_v17, %v1427_v3  ;;  %v1438_v17 = vrot.slane %v6924_v32, 5  ;;  %v3750_v3 = vsel %vm7449_vm3, %v8200_v28, %v8202_v63  ;;  %v8249_v28 = vld [vmem:[%s7407_s12 + $0x40] sm:$0xf] }
 0x143   : > { %v3782_v49 = vor.u32 %v3781_v37, %v3778_v46  ;;  %v3759_v25 = vrot.slane %v3758_v62, 4  ;;  %v9449_v46 = vcombine.low %v7830_v40, %v7836_v14  ;;  %v3769_v37 = vrot.slane %v3768_v22, 4  ;;  %9450 = vst [vmem:[#allocation23_spill] sm:$0xff] %v8249_v28 }
 0x144   : > { %v3740_v42 = vsel %vm7449_vm3, %v8196_v18, %v8160_v44  ;;  %v5493_v44 = vrot.slane %v1318_v5, 9  ;;  %v3773_v18 = vrot.slane %v3771_v57, 5  ;;  %v1433_v29 = vrot.slane %v1431_v13, 4  ;;  %v5815_v5 = vld [vmem:[%s7407_s12 + $0x48] sm:$0xf] }
 0x145   : > { %v1434_v32 = vrot.slane %v6925_v51, 5  ;;  %v9451_v63 = vcombine.low %v8062_v23, %v8075_v9  ;;  %v3783_v40 = vrot.slane %v3782_v49, 4  ;;  %v5494_v62 = vrot.slane %v1319_v27, 9  ;;  %v8268_v27 = vld [vmem:[%s7407_s12 + $0x4c] sm:$0xf] }
 0x146   : > { %v3803_v22 = vshll.u32 %v5812_v39, 16  ;;  %v3793_v57 = vrot.slane %v3792_v24, 4  ;;  %v1440_v51 = vrot.slane %v1438_v17, 4  ;;  %v1441_v11 = vrot.slane %v6926_v43, 5  ;;  %v6874_v24 = vld [vmem:[%s7407_s12 + $0x84] sm:$0xff]  }
 0x147   : > { %v3764_v23 = vsel %vm7449_vm3, %v3759_v25, %v8174_v16  ;;  %v8263_v9 = vsel %vm7669_vm7, %v5493_v44, %v1431_v13  ;;  %v3813_v49 = vshrl.u32 %v8249_v28, 16  ;;  %v3824_v43 = vshrl.u32 %v5815_v5, 16  ;;  %v8285_v44 = vld [vmem:[%s7407_s12 + $0x44] sm:$0x1] }
 0x148   : > { %v3827_v16 = vshll.u32 %v5815_v5, 16  ;;  %v3788_v13 = vsel %vm7449_vm3, %v3783_v40, %v8198_v53  ;;  %v8282_v25 = vsel %vm7669_vm7, %v5494_v62, %v1438_v17  ;;  %9452 = vst [vmem:[#allocation24_spill] sm:$0xff] %v8285_v44  ;;  %v3805_v48 = vrot.slane %v3803_v22, 5  ;;  %v5818_v22 = vld [vmem:[%s7407_s12 + $0x54] sm:$0xf] }
 0x149   : > { %6237 = vmatmul.mubr.msk.bf16.gmra.mrb[28].mxu1 %vm802_vm4, %v9449_v46  ;;  %6391 = vmatmul.mubr.msk.bf16.gmra.mrb[12].mxu0 %vm802_vm4, %v6872_v56  ;;  %v3800_v56 = vshrl.u32 %v5812_v39, 16  ;;  %v3797_v46 = vrot.slane %v3795_v12, 5  ;;  %v3774_v12 = vsel %vm7449_vm3, %v3769_v37, %v3773_v18  ;;  %v8275_v39 = vsel %vm7669_vm7, %v1433_v29, %v1434_v32  ;;  %v6875_v37 = vld [vmem:[%s7407_s12 + $0x90] sm:$0xff]  }
 0x14a   : > { %6242 = vmatprep.mubr.msk.bf16.mxu1 %vm802_vm4, %v9451_v63  ;;  %6394 = vmatprep.mubr.msk.bf16.mxu0 %vm802_vm4, %v6873_v38  ;;  %v3809_v38 = vshll.u32 %v8249_v28, 16  ;;  %v8292_v29 = vsel %vm7669_vm7, %v1440_v51, %v1441_v11  ;;  %v3833_v32 = vshll.u32 %v8268_v27, 16  ;;  %v3837_v53 = vshrl.u32 %v8268_v27, 16  ;;  %v1321_v11 = vld [vmem:[%s7407_s12 + $0x9c] sm:$0xe] }
 0x14b   : > { %v3802_v63 = vrot.slane %v3800_v56, 4  ;;  %v3798_v18 = vsel %vm7449_vm3, %v3793_v57, %v3797_v46  ;;  %v8296_v40 = vcombine.low %v3740_v42, %v3750_v3  ;;  %v8298_v17 = vcombine.low %v3764_v23, %v3774_v12  ;;  %v8312_v46 = vld [vmem:[%s7407_s12 + $0x58] sm:$0xf] }
 0x14c   : > { %v8300_v62 = vrot.slane %v3809_v38, 5  ;;  %v3815_v56 = vrot.slane %v3813_v49, 4  ;;  %v9453_v5 = vcombine.low %v8044_v8, %v8048_v15  ;;  %v3819_v42 = vshll.u32 %v8285_v44, 16  ;;  %9454 = vst [vmem:[#allocation25_spill] sm:$0xff] %v8312_v46  ;;  %v1320_v49 = vld [vmem:[%s7407_s12 + $0x90] sm:$0xe] }
 0x14d   : > { %v3826_v3 = vrot.slane %v3824_v43, 4  ;;  %v3829_v57 = vrot.slane %v3827_v16, 5  ;;  %v9455_v51 = vcombine.low %v8081_v26, %v8085_v61  ;;  %v8321_v8 = vsel %vm851_vm0, %v8035_v58, 0  ;;  %v5821_v58 = vld [vmem:[%s7407_s12 + $0x60] sm:$0xf] }
 0x14e   : > { %v8323_v15 = vcombine.low %v3788_v13, %v3798_v18  ;;  %v3806_v38 = vor.u32 %v3805_v48, %v3802_v63  ;;  %v3839_v26 = vrot.slane %v3837_v53, 4  ;;  %v3848_v61 = vshrl.u32 %v5818_v22, 16  ;;  %v6927_v12 = vld [vmem:[#allocation6 + $0x8] sm:$0x3]  ;;  %v6928_v48 = vld [vmem:[%s7407_s12 + $0x94] sm:$0xf] }
 0x14f   : > { %v3816_v43 = vor.u32 %v3815_v56, %v8300_v62  ;;  %v1445_v16 = vrot.slane %v6928_v48, 5  ;;  %v8336_v13 = vld [vmem:[%s7407_s12 + $0x50] sm:$0x1]  ;;  %v3857_v63 = vshll.u32 %v8312_v46, 16  ;;  %v6876_v18 = vld [vmem:[%s7407_s12 + $0x9c] sm:$0xff]   ;;  %v8342_v53 = vrot.slane %v3819_v42, 5 }
 0x150   : > { %9456 = vst [vmem:[#allocation26_spill] sm:$0xff] %v8336_v13  ;;  %v8345_v56 = vrot.slane %v3806_v38, 4  ;;  %v6930_v23 = vld [vmem:[%s7407_s12 + $0x98] sm:$0x1]  ;;  %v3872_v50 = vshrl.u32 %v5821_v58, 16  ;;  %v3875_v44 = vshll.u32 %v5821_v58, 16 }
 0x151   : > { %6243 = vmatmul.mubr.msk.bf16.vlgmr.msra.gmra.mrb[0].mxu1 %vm802_vm4, %v9453_v5  ;;  %6395 = vmatmul.mubr.msk.bf16.gmra.mrb[16].mxu0 %vm802_vm4, %v6874_v24  ;;  %v3851_v24 = vshll.u32 %v5818_v22, 16  ;;  %v5495_v22 = vrot.slane %v1320_v49, 9  ;;  %v3830_v5 = vor.u32 %v3829_v57, %v3826_v3  ;;  %v1448_v48 = vrot.slane %v6930_v23, 5  ;;  %v8355_v49 = vld [vmem:[%s7407_s12 + $0x5c] sm:$0x1] }
 0x152   : > { %6275 = vmatpush3.bf16.msra.mxu1 %v8066_v54  ;;  %6246 = vmatprep.mubr.msk.bf16.mxu1 %vm802_vm4, %v9455_v51  ;;  %v8329_v54 = vrot.slane %v3833_v32, 5  ;;  %v6877_v32 = vld [vmem:[%s7407_s12 + $0xa8] sm:$0xff]   ;;  %v6929_v51 = vld [vmem:[%s7407_s12 + $0xa0] sm:$0xf]  ;;  %v3843_v60 = vshll.u32 %v8336_v13, 16  ;;  %v3850_v45 = vrot.slane %v3848_v61, 4  ;;  %v9459_v23 = vcombine.low %v8092_v47, %v8096_v20 }
 0x153   : > { %6398 = vmatprep.mubr.msk.bf16.mxu0 %vm802_vm4, %v6875_v37  ;;  %6741 = vmatprep.subr.msk.bf16.mxu1 %vm851_vm0, %v6927_v12  ;;  %v3861_v37 = vshrl.u32 %v8312_v46, 16  ;;  %v1452_v12 = vrot.slane %v6929_v51, 5  ;;  %v3853_v42 = vrot.slane %v3851_v24, 5  ;;  %v3817_v3 = vrot.slane %v3816_v43, 4  ;;  %9458 = vst [vmem:[#allocation28_spill] sm:$0xff] %v8355_v49 }
 0x154   : > { %v3840_v28 = vor.u32 %v3839_v26, %v8329_v54  ;;  %v1447_v57 = vrot.slane %v1445_v16, 4  ;;  %v8357_v38 = vrot.slane %v3857_v63, 5  ;;  %v3831_v26 = vrot.slane %v3830_v5, 4  ;;  %v6931_v24 = vld [vmem:[%s7407_s12 + $0xa4] sm:$0x1] }
 0x155   : > { %v3863_v51 = vrot.slane %v3861_v37, 4  ;;  %v5496_v58 = vrot.slane %v1321_v11, 9  ;;  %v1454_v61 = vrot.slane %v1452_v12, 4  ;;  %v1455_v43 = vrot.slane %v6931_v24, 5 }
 0x156   : > { %v3874_v47 = vrot.slane %v3872_v50, 4  ;;  %v3877_v20 = vrot.slane %v3875_v44, 5  ;;  %v3881_v63 = vshll.u32 %v8352_v34, 16  ;;  %v3885_v37 = vshrl.u32 %v8352_v34, 16  ;;  %v1322_v50 = vld [vmem:[%s7407_s12 + $0xa8] sm:$0xe] }
 0x157   : > { %v3841_v11 = vrot.slane %v3840_v28, 4  ;;  %v3854_v5 = vor.u32 %v3853_v42, %v3850_v45  ;;  %v8379_v10 = vsel %vm7669_vm7, %v5495_v22, %v1445_v16  ;;  %v3864_v31 = vor.u32 %v3863_v51, %v8357_v38  ;;  %v6932_v44 = vld [vmem:[%s7407_s12 + $0xac] sm:$0xf]  ;;  %v8400_v22 = vld [vmem:[%s7407_s12 + $0x68] sm:$0x1] }
 0x158   : > { %v1459_v28 = vrot.slane %v6932_v44, 5  ;;  %v3822_v45 = vsel %vm7449_vm3, %v3817_v3, %v8342_v53  ;;  %v8397_v16 = vsel %vm7669_vm7, %v5496_v58, %v1452_v12  ;;  %9462 = vst [vmem:[#allocation30_spill] sm:$0xff] %v8400_v22  ;;  %v8405_v42 = vsel %vm7669_vm7, %v1454_v61, %v1455_v43  ;;  %v1323_v58 = vld [vmem:[%s7407_s12 + $0xb4] sm:$0xe]  ;;  %v6933_v61 = vld [vmem:[%s7407_s12 + $0xb0] sm:$0x1] }
 0x159   : > { %6247 = vmatmul.mubr.msk.bf16.gmra.mrb[4].mxu1 %vm802_vm4, %v9459_v23  ;;  %6399 = vmatmul.mubr.msk.bf16.gmra.mrb[20].mxu0 %vm802_vm4, %v6876_v18  ;;  %v3845_v18 = vrot.slane %v3843_v60, 5  ;;  %v3867_v23 = vshll.u32 %v8355_v49, 16  ;;  %v8390_v60 = vsel %vm7669_vm7, %v1447_v57, %v1448_v48  ;;  %9461 = vst [vmem:[#allocation29_spill] sm:$0xff] %v8397_v16  ;;  %9463 = vst [vmem:[#allocation31_spill] sm:$0xff] %v8405_v42  ;;  %v8407_v3 = vrot.slane %v3881_v63, 5 }
 0x15a   : > { %6250 = vmatprep.mubr.msk.bf16.mxu1 %vm802_vm4, %v9460_v4  ;;  %6402 = vmatprep.mubr.msk.bf16.mxu0 %vm802_vm4, %v6877_v32  ;;  %v3812_v4 = vsel %vm7449_vm3, %v8345_v56, %v8300_v62  ;;  %v6878_v32 = vld [vmem:[%s7407_s12 + $0xb4] sm:$0xff]   ;;  %v3836_v62 = vsel %vm7449_vm3, %v3831_v26, %v8329_v54  ;;  %v6879_v56 = vld [vmem:[%s7407_s12 + $0xc0] sm:$0xff]   ;;  %v3878_v53 = vor.u32 %v3877_v20, %v3874_v47  ;;  %v3887_v48 = vrot.slane %v3885_v37, 4  ;;  %v5824_v57 = vld [vmem:[%s7407_s12 + $0x6c] sm:$0xf] }
 0x15b   : > { %v3846_v54 = vsel %vm7449_vm3, %v3841_v11, %v3845_v18  ;;  %v8412_v51 = vrot.slane %v3854_v5, 4  ;;  %v8414_v26 = vrot.slane %v3867_v23, 5  ;;  %v5497_v12 = vrot.slane %v1322_v50, 9  ;;  %v6880_v50 = vld [vmem:[%s7407_s12 + $0xcc] sm:$0xff]   ;;  %v8534_v34 = vld [vmem:[%s7407_s12 + $0x98] sm:$0x1] }
 0x15c   : > { %v8417_v24 = vrot.slane %v3864_v31, 4  ;;  %v1461_v44 = vrot.slane %v1459_v28, 4  ;;  %v1462_v43 = vrot.slane %v6933_v61, 5  ;;  %v3891_v47 = vshll.u32 %v8400_v22, 16  ;;  %v8440_v31 = vld [vmem:[%s7407_s12 + $0x70] sm:$0xf] }
 0x15d   : > { %v9464_v20 = vcombine.low %v8109_v21, %v8114_v33  ;;  %v8426_v63 = vcombine.low %v3812_v4, %v3822_v45  ;;  %v3896_v11 = vshrl.u32 %v5824_v57, 16  ;;  %v3899_v18 = vshll.u32 %v5824_v57, 16  ;;  %9466 = vst [vmem:[#allocation32_spill] sm:$0xff] %v8440_v31  ;;  %v8468_v57 = vld [vmem:[%s7407_s12 + $0x7c] sm:$0xf] }
 0x15e   : > { %v9465_v5 = vcombine.low %v8134_v55, %v8147_v2  ;;  %v8435_v21 = vrot.slane %v3878_v53, 4  ;;  %v3888_v33 = vor.u32 %v3887_v48, %v8407_v3  ;;  %v5498_v23 = vrot.slane %v1323_v58, 9  ;;  %9467 = vst [vmem:[#allocation33_spill] sm:$0xff] %v8468_v57  ;;  %v8497_v48 = vld [vmem:[%s7407_s12 + $0x94] sm:$0xf] }
 0x15f   : > { %v1466_v4 = vrot.slane %v7836_v14, 5  ;;  %v8453_v45 = vsel %vm7669_vm7, %v5497_v12, %v1459_v28  ;;  %v8464_v53 = vrot.slane %v3891_v47, 5  ;;  %v5830_v28 = vld [vmem:[%s7407_s12 + $0x84] sm:$0xf]  ;;  %v8473_v12 = vrot.slane %v3899_v18, 5  ;;  %9470 = vst [vmem:[#allocation36_spill] sm:$0xff] %v8497_v48 }
 0x160   : > { %v3905_v58 = vshll.u32 %v8440_v31, 16  ;;  %v3909_v61 = vshrl.u32 %v8440_v31, 16  ;;  %v8491_v18 = vld [vmem:[%s7407_s12 + $0x74] sm:$0x1]  ;;  %v3929_v14 = vshll.u32 %v8468_v57, 16  ;;  %v3933_v37 = vshrl.u32 %v8468_v57, 16 }
 0x161   : > { %6251 = vmatmul.mubr.msk.bf16.gmra.mrb[8].mxu1 %vm802_vm4, %v9464_v20  ;;  %6403 = vmatmul.mubr.msk.bf16.gmra.mrb[24].mxu0 %vm802_vm4, %v6878_v32  ;;  %v8443_v32 = vcombine.low %v3836_v62, %v3846_v54  ;;  %v8462_v62 = vsel %vm7669_vm7, %v1461_v44, %v1462_v43  ;;  %v8471_v54 = vrot.slane %v3896_v11, 4  ;;  %v8478_v20 = vld [vmem:[%s7407_s12 + $0x88] sm:$0xf]  ;;  %v8484_v43 = vrot.slane %v3888_v33, 4  ;;  %9469 = vst [vmem:[#allocation35_spill] sm:$0xff] %v8491_v18 }
 0x162   : > { %6254 = vmatprep.mubr.msk.bf16.mxu1 %vm802_vm4, %v9465_v5  ;;  %6406 = vmatprep.mubr.msk.bf16.mxu0 %vm802_vm4, %v6879_v56  ;;  %v5827_v56 = vld [vmem:[%s7407_s12 + $0x78] sm:$0xf]  ;;  %9468 = vst [vmem:[#allocation34_spill] sm:$0xff] %v8478_v20  ;;  %v8488_v47 = vsel %vm7669_vm7, %v5498_v23, %v1466_v4  ;;  %v1468_v11 = vrot.slane %v1466_v4, 4  ;;  %v5833_v5 = vld [vmem:[%s7407_s12 + $0x90] sm:$0xf]  ;;  %v9471_v4 = vcombine.low %v8156_v59, %v8183_v52 }
 0x163   : > { %v3920_v55 = vshrl.u32 %v5827_v56, 16  ;;  %v3923_v2 = vshll.u32 %v5827_v56, 16  ;;  %v3944_v44 = vshrl.u32 %v5830_v28, 16  ;;  %v3947_v33 = vshll.u32 %v5830_v28, 16  ;;  %v5836_v31 = vld [vmem:[%s7407_s12 + $0x9c] sm:$0xf] }
 0x164   : > { %v3953_v1 = vshll.u32 %v8478_v20, 16  ;;  %v3957_v23 = vshrl.u32 %v8478_v20, 16  ;;  %v3902_v56 = vor.u32 %v8473_v12, %v8471_v54  ;;  %v8508_v41 = vrot.slane %v3905_v58, 5  ;;  %v8521_v12 = vld [vmem:[%s7407_s12 + $0xa0] sm:$0xf] }
 0x165   : > { %v3911_v28 = vrot.slane %v3909_v61, 4  ;;  %v3915_v57 = vshll.u32 %v8491_v18, 16  ;;  %v9472_v20 = vcombine.low %v8187_v0, %v8194_v19  ;;  %v3968_v59 = vshrl.u32 %v5833_v5, 16  ;;  %9473 = vst [vmem:[#allocation37_spill] sm:$0xff] %v8521_v12  ;;  %v8524_v58 = vld [vmem:[%s7407_s12 + $0x80] sm:$0x1] }
 0x166   : > { %v3971_v52 = vshll.u32 %v5833_v5, 16  ;;  %v3981_v54 = vshrl.u32 %v8497_v48, 16  ;;  %v3922_v61 = vrot.slane %v3920_v55, 4  ;;  %v8526_v18 = vrot.slane %v3929_v14, 5  ;;  %v8529_v19 = vld [vmem:[%s7407_s12 + $0x8c] sm:$0x1] }
 0x167   : > { %v3935_v0 = vrot.slane %v3933_v37, 4  ;;  %v8531_v22 = vrot.slane %v3953_v1, 5  ;;  %v3959_v5 = vrot.slane %v3957_v23, 4  ;;  %v3992_v49 = vshrl.u32 %v5836_v31, 16 }
 0x168   : > { %v4001_v42 = vshll.u32 %v8521_v12, 16  ;;  %v4005_v16 = vshrl.u32 %v8521_v12, 16  ;;  %v3970_v55 = vrot.slane %v3968_v59, 4  ;;  %v3983_v37 = vrot.slane %v3981_v54, 4 }
 0x169   : > { %6255 = vmatmul.mubr.msk.bf16.gmra.mrb[12].mxu1 %vm802_vm4, %v9471_v4  ;;  %6407 = vmatmul.mubr.msk.bf16.gmra.mrb[28].mxu0 %vm802_vm4, %v6880_v50  ;;  %v3977_v50 = vshll.u32 %v8497_v48, 16  ;;  %v3925_v4 = vrot.slane %v3923_v2, 5  ;;  %v3995_v48 = vshll.u32 %v5836_v31, 16  ;;  %v3973_v2 = vrot.slane %v3971_v52, 5 }
 0x16a   : > { %6258 = vmatprep.mubr.msk.bf16.mxu1 %vm802_vm4, %v9472_v20  ;;  %6412 = vmatprep.mubr.msk.bf16.mxu0 %vm802_vm4, %v8296_v40  ;;  %v3946_v20 = vrot.slane %v3944_v44, 4  ;;  %v3949_v40 = vrot.slane %v3947_v33, 5  ;;  %v3912_v46 = vor.u32 %v3911_v28, %v8508_v41  ;;  %v3936_v1 = vor.u32 %v3935_v0, %v8526_v18 }
 0x16b   : > { %v8538_v14 = vrot.slane %v3977_v50, 5  ;;  %v3926_v44 = vor.u32 %v3925_v4, %v3922_v61  ;;  %v3939_v33 = vshll.u32 %v8524_v58, 16  ;;  %v3960_v31 = vor.u32 %v3959_v5, %v8531_v22  ;;  %v5839_v4 = vld [vmem:[%s7407_s12 + $0xa8] sm:$0xf] }
 0x16c   : > { %v3950_v23 = vor.u32 %v3949_v40, %v3946_v20  ;;  %v3963_v13 = vshll.u32 %v8529_v19, 16  ;;  %v3987_v12 = vshll.u32 %v8534_v34, 16  ;;  %v9474_v59 = vcombine.low %v8206_v7, %v8214_v35 }
 0x16d   : > { %v3994_v28 = vrot.slane %v3992_v49, 4  ;;  %v3997_v52 = vrot.slane %v3995_v48, 5  ;;  %v8552_v50 = vrot.slane %v4001_v42, 5  ;;  %v4007_v54 = vrot.slane %v4005_v16, 4  ;;  %v8567_v42 = vld [vmem:[%s7407_s12 + $0xa4] sm:$0x1] }
 0x16e   : > { %v9475_v61 = vcombine.low %v8263_v9, %v8275_v39  ;;  %v9476_v7 = vrot.slane %v7841_v36, 5  ;;  %v3974_v49 = vor.u32 %v3973_v2, %v3970_v55  ;;  %v3984_v48 = vor.u32 %v3983_v37, %v8538_v14  ;;  %v8575_v2 = vld [vmem:[%s7407_s12 + $0xac] sm:$0xf] }
 0x16f   : > { %v3913_v9 = vrot.slane %v3912_v46, 4  ;;  %v3927_v39 = vrot.slane %v3926_v44, 4  ;;  %v3941_v16 = vrot.slane %v3939_v33, 5  ;;  %v3937_v36 = vrot.slane %v3936_v1, 4 }
 0x170   : > { %v8563_v35 = vsel %vm7669_vm7, %v1468_v11, %v9476_v7  ;;  %v3951_v0 = vrot.slane %v3950_v23, 4  ;;  %v3961_v20 = vrot.slane %v3960_v31, 4  ;;  %v3965_v11 = vrot.slane %v3963_v13, 5 }
 0x171   : > { %6259 = vmatmul.mubr.msk.bf16.gmra.mrb[16].mxu1 %vm802_vm4, %v9474_v59  ;;  %6413 = vmatmul.mubr.msk.bf16.vlgmr.msra.gmra.mrb[0].mxu0 %vm802_vm4, %v8298_v17  ;;  %v3917_v17 = vrot.slane %v3915_v57, 5  ;;  %v3989_v40 = vrot.slane %v3987_v12, 5  ;;  %v3998_v57 = vor.u32 %v3997_v52, %v3994_v28  ;;  %v4008_v5 = vor.u32 %v4007_v54, %v8552_v50 }
 0x172   : > { %6445 = vmatpush3.bf16.msra.mxu0 %v8321_v8  ;;  %6262 = vmatprep.mubr.msk.bf16.mxu1 %vm802_vm4, %v9475_v61  ;;  %v3903_v8 = vrot.slane %v3902_v56, 4  ;;  %v4011_v55 = vshll.u32 %v8567_v42, 16  ;;  %v3975_v37 = vrot.slane %v3974_v49, 4  ;;  %v3985_v59 = vrot.slane %v3984_v48, 4 }
 0x173   : > { %6416 = vmatprep.mubr.msk.bf16.mxu0 %vm802_vm4, %v8323_v15  ;;  %v4016_v15 = vshrl.u32 %v5839_v4, 16  ;;  %v4019_v56 = vshll.u32 %v5839_v4, 16  ;;  %v3894_v46 = vsel %vm7449_vm3, %v8484_v43, %v8464_v53  ;;  %v3918_v12 = vsel %vm7449_vm3, %v3913_v9, %v3917_v17  ;;  %v5888_v9 = vld [vmem:[%s7407_s12 + $0x54] sm:$0xe] }
 0x174   : > { %v3908_v13 = vsel %vm7449_vm3, %v3903_v8, %v8508_v41  ;;  %v3932_v44 = vsel %vm7449_vm3, %v3927_v39, %v8526_v18  ;;  %v3942_v1 = vsel %vm7449_vm3, %v3937_v36, %v3941_v16  ;;  %v3956_v33 = vsel %vm7449_vm3, %v3951_v0, %v8531_v22 }
 0x175   : > { %v4025_v53 = vshll.u32 %v8575_v2, 16  ;;  %v4029_v43 = vshrl.u32 %v8575_v2, 16  ;;  %v9477_v41 = vcombine.low %v8282_v25, %v8292_v29  ;;  %v3966_v18 = vsel %vm7449_vm3, %v3961_v20, %v3965_v11 }
 0x176   : > { %v3999_v23 = vrot.slane %v3998_v57, 4  ;;  %v4009_v31 = vrot.slane %v4008_v5, 4  ;;  %v4013_v22 = vrot.slane %v4011_v55, 5  ;;  %v9478_v28 = vcombine.low %v8379_v10, %v8390_v60 }
 0x177   : > { %v3980_v25 = vsel %vm7449_vm3, %v3975_v37, %v8538_v14  ;;  %v3990_v29 = vsel %vm7449_vm3, %v3985_v59, %v3989_v40  ;;  %v8617_v52 = vrot.slane %v4019_v56, 5  ;;  %v9479_v10 = vsel %vm7449_vm3, %v8417_v24, %v8414_v26  ;;  %v8639_v26 = vld [vmem:[%s7407_s12 + $0xb0] sm:$0x1]  ;;  %v5842_v24 = vld [vmem:[%s7407_s12 + $0xb4] sm:$0xf] }
 0x178   : > { %v9480_v60 = vsel %vm7449_vm3, %v8412_v51, %v8357_v38  ;;  %v5513_v14 = vcombine.low %v8453_v45, %v8462_v62  ;;  %v9481_v54 = vsel %vm7449_vm3, %v8435_v21, %v8407_v3  ;;  %v5514_v7 = vcombine.low %v8488_v47, %v8563_v35  ;;  %v8649_v45 = vld [vmem:[%s7407_s12 + $0xb8] sm:$0xf]  ;;  %v5887_v62 = vld [vmem:[%s7407_s12 + $0x48] sm:$0xe]  ;;  %v5890_v56 = vld [vmem:[%s7407_s12 + $0x6c] sm:$0xe] }
 0x179   : > { %6263 = vmatmul.mubr.msk.bf16.gmra.mrb[20].mxu1 %vm802_vm4, %v9477_v41  ;;  %6417 = vmatmul.mubr.msk.bf16.gmra.mrb[4].mxu0 %vm802_vm4, %v8426_v63  ;;  %v8615_v63 = vrot.slane %v4016_v15, 4  ;;  %v5857_v61 = vcombine.low %v9481_v54, %v3894_v46  ;;  %v8642_v17 = vcombine.low %v3908_v13, %v3918_v12  ;;  %v8644_v38 = vcombine.low %v3932_v44, %v3942_v1  ;;  %v9482_v40 = vld [vmem:[#allocation26_spill] sm:$0xff]  ;;  %v9483_v59 = vld [vmem:[#allocation25_spill] sm:$0xff]  ;;  %v9485_v13 = vld [vmem:[#allocation31_spill] sm:$0xff] }
 0x17a   : > { %6266 = vmatprep.mubr.msk.bf16.mxu1 %vm802_vm4, %v9478_v28  ;;  %6420 = vmatprep.mubr.msk.bf16.mxu0 %vm802_vm4, %v8443_v32  ;;  %v5856_v32 = vcombine.low %v9480_v60, %v9479_v10  ;;  %v8646_v51 = vrot.slane %v4025_v53, 5  ;;  %v4031_v49 = vrot.slane %v4029_v43, 4  ;;  %v8652_v48 = vcombine.low %v3956_v33, %v3966_v18  ;;  %v9484_v46 = vld [vmem:[#allocation29_spill] sm:$0xff]  ;;  %v9487_v33 = vld [vmem:[#allocation28_spill] sm:$0xff]  ;;  %v8761_v47 = vld [vmem:[%s7407_s12 + $0xbc] sm:$0x1] }
 0x17b   : > { %v8654_v3 = vcombine.low %v3980_v25, %v3990_v29  ;;  %v4004_v21 = vsel %vm7449_vm3, %v3999_v23, %v8552_v50  ;;  %v4014_v8 = vsel %vm7449_vm3, %v4009_v31, %v4013_v22  ;;  %v4022_v39 = vor.u32 %v8617_v52, %v8615_v63  ;;  %v5889_v50 = vld [vmem:[%s7407_s12 + $0x60] sm:$0xe]  ;;  %v9489_v25 = vld [vmem:[#allocation30_spill] sm:$0xff] }
 0x17c   : > { %v4035_v16 = vshll.u32 %v8639_v26, 16  ;;  %v4040_v4 = vshrl.u32 %v5842_v24, 16  ;;  %v4043_v36 = vshll.u32 %v5842_v24, 16  ;;  %v4049_v0 = vshll.u32 %v8649_v45, 16  ;;  %v9488_v23 = vld [vmem:[#allocation27_spill] sm:$0xff]  ;;  %v9490_v52 = vld [vmem:[#allocation32_spill] sm:$0xff] }
 0x17d   : > { %v5903_v20 = vrot.slane %v5887_v62, 9  ;;  %v4499_v11 = vrot.slane %v8268_v27, 5  ;;  %v4502_v57 = vrot.slane %v9482_v40, 5  ;;  %v8669_v5 = vcombine.low %v4004_v21, %v4014_v8  ;;  %v5845_v22 = vld [vmem:[%s7407_s12 + $0xc0] sm:$0xf] }
 0x17e   : > { %v4032_v55 = vor.u32 %v4031_v49, %v8646_v51  ;;  %v5904_v37 = vrot.slane %v5888_v9, 9  ;;  %v4506_v15 = vrot.slane %v9483_v59, 5  ;;  %v9486_v12 = vcombine.low %v9484_v46, %v9485_v13  ;;  %v9491_v21 = vld [vmem:[#allocation35_spill] sm:$0xff]  ;;  %v6881_v9 = vld [vmem:[%s7407_s12 + $0xc] sm:$0xff]  }
 0x17f   : > { %v4053_v27 = vshrl.u32 %v8649_v45, 16  ;;  %v8682_v44 = vsel %vm7669_vm7, %v5903_v20, %v4499_v11  ;;  %v4501_v1 = vrot.slane %v4499_v11, 4  ;;  %v4509_v53 = vrot.slane %v9487_v33, 5  ;;  %v5892_v33 = vld [vmem:[%s7407_s12 + $0x84] sm:$0xe] }
 0x180   : > { %v8689_v43 = vsel %vm7669_vm7, %v5904_v37, %v4506_v15  ;;  %v4508_v41 = vrot.slane %v4506_v15, 4  ;;  %v5905_v18 = vrot.slane %v5889_v50, 9  ;;  %v4513_v31 = vrot.slane %v9488_v23, 5  ;;  %v5891_v50 = vld [vmem:[%s7407_s12 + $0x78] sm:$0xe]  ;;  %v9493_v23 = vld [vmem:[#allocation20_spill] sm:$0xff] }
 0x181   : > { %6267 = vmatmul.mubr.msk.bf16.gmra.mrb[24].mxu1 %vm802_vm4, %v9486_v12  ;;  %6421 = vmatmul.mubr.msk.bf16.gmra.mrb[8].mxu0 %vm802_vm4, %v5856_v32  ;;  %v8695_v28 = vsel %vm7669_vm7, %v4501_v1, %v4502_v57  ;;  %v4516_v29 = vrot.slane %v9489_v25, 5  ;;  %v5906_v63 = vrot.slane %v5890_v56, 9  ;;  %v4520_v10 = vrot.slane %v9490_v52, 5  ;;  %v9492_v1 = vld [vmem:[#allocation33_spill] sm:$0xff] }
 0x182   : > { %6270 = vmatprep.mubr.msk.bf16.mxu1 %vm802_vm4, %v5513_v14  ;;  %6424 = vmatprep.mubr.msk.bf16.mxu0 %vm802_vm4, %v5857_v61  ;;  %v5919_v60 = vcombine.low %v8682_v44, %v8695_v28  ;;  %v8703_v32 = vsel %vm7669_vm7, %v4508_v41, %v4509_v53  ;;  %v8707_v14 = vsel %vm7669_vm7, %v5905_v18, %v4513_v31  ;;  %v4515_v54 = vrot.slane %v4513_v31, 4  ;;  %v8710_v61 = vld [vmem:[%s7407_s12 + $0xc4] sm:$0xf] }
 0x183   : > { %v5920_v24 = vcombine.low %v8689_v43, %v8703_v32  ;;  %v8716_v49 = vsel %vm7669_vm7, %v5906_v63, %v4520_v10  ;;  %v4522_v62 = vrot.slane %v4520_v10, 4  ;;  %v4523_v8 = vrot.slane %v9491_v21, 5  ;;  %v9494_v31 = vld [vmem:[#allocation19_spill] sm:$0xff] }
 0x184   : > { %v8720_v20 = vrot.slane %v4035_v16, 5  ;;  %v8722_v11 = vrot.slane %v4040_v4, 4  ;;  %v4064_v40 = vshrl.u32 %v5845_v22, 16  ;;  %v8726_v57 = vsel %vm7669_vm7, %v4515_v54, %v4516_v29  ;;  %v5622_v4 = vld [vmem:[%s7407_s12 + $0x78] sm:$0xf] }
 0x185   : > { %v8729_v37 = vrot.slane %v4022_v39, 4  ;;  %v8731_v59 = vrot.slane %v4043_v36, 5  ;;  %v5921_v15 = vcombine.low %v8707_v14, %v8726_v57  ;;  %v8737_v16 = vsel %vm7669_vm7, %v4522_v62, %v4523_v8  ;;  %v6882_v63 = vld [vmem:[%s7407_s12 + $0x18] sm:$0xff]   ;;  %v6883_v8 = vld [vmem:[%s7407_s12 + $0x24] sm:$0xff]  }
 0x186   : > { %v8740_v56 = vrot.slane %v4032_v55, 4  ;;  %v8742_v46 = vrot.slane %v4049_v0, 5  ;;  %v4067_v13 = vshll.u32 %v5845_v22, 16  ;;  %v5922_v39 = vcombine.low %v8716_v49, %v8737_v16  ;;  %v9495_v54 = vld [vmem:[#allocation34_spill] sm:$0xff]  ;;  %v5634_v57 = vld [vmem:[%s7407_s12 + $0xa8] sm:$0xf] }
 0x187   : > { %v8752_v36 = vrot.slane %v4053_v27, 4  ;;  %v4073_v12 = vshll.u32 %v8710_v61, 16  ;;  %v5907_v55 = vrot.slane %v5891_v50, 9  ;;  %v4527_v0 = vrot.slane %v9492_v1, 5  ;;  %v5848_v50 = vld [vmem:[%s7407_s12 + $0xcc] sm:$0xf] }
 0x188   : > { %v4066_v35 = vrot.slane %v4064_v40, 4  ;;  %v2392_v27 = vshll.u32 %v5622_v4, 16  ;;  %v4077_v53 = vshrl.u32 %v8710_v61, 16  ;;  %v4069_v22 = vrot.slane %v4067_v13, 5 }
 0x189   : > { %6271 = vmatmul.mubr.msk.bf16.gmra.mrb[28].mxu1 %vm802_vm4, %v5514_v7  ;;  %6425 = vmatmul.mubr.msk.bf16.gmra.mrb[12].mxu0 %vm802_vm4, %v8642_v17  ;;  %v4530_v7 = vrot.slane %v8524_v58, 5  ;;  %v2389_v17 = vshrl.u32 %v5622_v4, 16  ;;  %v8767_v41 = vsel %vm7669_vm7, %v5907_v55, %v4527_v0  ;;  %v4529_v18 = vrot.slane %v4527_v0, 4  ;;  %v8790_v4 = vld [vmem:[%s7407_s12 + $0xd0] sm:$0xf] }
 0x18a   : > { %6276 = vmatprep.mubr.msk.bf16.mxu1 %vm802_vm4, %v6881_v9  ;;  %6428 = vmatprep.mubr.msk.bf16.mxu0 %vm802_vm4, %v8644_v38  ;;  %v2411_v38 = vsel %vm7449_vm3, %v9494_v31, %v9493_v23  ;;  %v2394_v58 = vrot.slane %v2392_v27, 5  ;;  %v5908_v29 = vrot.slane %v5892_v33, 9  ;;  %v4059_v52 = vshll.u32 %v8761_v47, 16 }
 0x18b   : > { %v2391_v25 = vrot.slane %v2389_v17, 4  ;;  %v8777_v10 = vsel %vm7669_vm7, %v4529_v18, %v4530_v7  ;;  %v4534_v62 = vrot.slane %v9495_v54, 5  ;;  %v4537_v21 = vrot.slane %v8529_v19, 5  ;;  %v5893_v7 = vld [vmem:[%s7407_s12 + $0x90] sm:$0xe] }
 0x18c   : > { %v4028_v9 = vsel %vm7449_vm3, %v8729_v37, %v8646_v51  ;;  %v4046_v40 = vor.u32 %v8731_v59, %v8722_v11  ;;  %v5923_v13 = vcombine.low %v8767_v41, %v8777_v10  ;;  %v8794_v1 = vrot.slane %v4073_v12, 5  ;;  %v8808_v37 = vld [vmem:[%s7407_s12 + $0xc8] sm:$0x1] }
 0x18d   : > { %v2395_v55 = vor.u32 %v2394_v58, %v2391_v25  ;;  %v4079_v0 = vrot.slane %v4077_v53, 4  ;;  %v8798_v19 = vsel %vm7669_vm7, %v5908_v29, %v4534_v62  ;;  %v4536_v33 = vrot.slane %v4534_v62, 4  ;;  %v6884_v29 = vld [vmem:[%s7407_s12 + $0x30] sm:$0xff]   ;;  %v9498_v62 = vld [vmem:[#allocation36_spill] sm:$0xff] }
 0x18e   : > { %v4038_v51 = vsel %vm7449_vm3, %v8740_v56, %v8720_v20  ;;  %v4056_v11 = vor.u32 %v8752_v36, %v8742_v46  ;;  %v4070_v59 = vor.u32 %v4069_v22, %v4066_v35  ;;  %v4088_v17 = vshrl.u32 %v5848_v50, 16  ;;  %v9496_v56 = vld [vmem:[#allocation17_spill] sm:$0xff]  ;;  %v9497_v35 = vld [vmem:[#allocation18_spill] sm:$0xff] }
 0x18f   : > { %v2396_v12 = vrot.slane %v2395_v55, 4  ;;  %v4091_v27 = vshll.u32 %v5848_v50, 16  ;;  %v4097_v53 = vshll.u32 %v8790_v4, 16  ;;  %v8816_v20 = vsel %vm7669_vm7, %v4536_v33, %v4537_v21 }
 0x190   : > { %v4101_v36 = vshrl.u32 %v8790_v4, 16  ;;  %v5909_v23 = vrot.slane %v5893_v7, 9  ;;  %v4061_v31 = vrot.slane %v4059_v52, 5  ;;  %v4080_v22 = vor.u32 %v4079_v0, %v8794_v1  ;;  %v8838_v52 = vld [vmem:[%s7407_s12 + $0xd4] sm:$0x1] }
 0x191   : > { %6277 = vmatmul.mubr.msk.bf16.vlgmr.msra.gmra.mrb[0].mxu1 %vm802_vm4, %v6882_v63  ;;  %6429 = vmatmul.mubr.msk.bf16.gmra.mrb[16].mxu0 %vm802_vm4, %v8652_v48  ;;  %v2401_v18 = vsel %vm7449_vm3, %v2396_v12, %v9497_v35  ;;  %v5924_v48 = vcombine.low %v8798_v19, %v8816_v20  ;;  %v4083_v25 = vshll.u32 %v8808_v37, 16  ;;  %v5863_v63 = vcombine.low %v4028_v9, %v4038_v51  ;;  %v6885_v12 = vld [vmem:[%s7407_s12 + $0x3c] sm:$0xff]   ;;  %v6949_v19 = vld [vmem:[%s7407_s12 + $0xc4] sm:$0xf] }
 0x192   : > { %6479 = vmatpush3.bf16.msra.mxu1 %v9496_v56  ;;  %6280 = vmatprep.mubr.msk.bf16.mxu1 %vm802_vm4, %v6883_v8  ;;  %v8830_v58 = vcombine.low %v2401_v18, %v2411_v38  ;;  %v4047_v54 = vrot.slane %v4046_v40, 4  ;;  %v4541_v21 = vrot.slane %v9498_v62, 5  ;;  %v4544_v8 = vrot.slane %v8534_v34, 5  ;;  %v5895_v62 = vld [vmem:[%s7407_s12 + $0xa8] sm:$0xe] }
 0x193   : > { %6432 = vmatprep.mubr.msk.bf16.mxu0 %vm802_vm4, %v8654_v3  ;;  %v4057_v50 = vrot.slane %v4056_v11, 4  ;;  %v4071_v55 = vrot.slane %v4070_v59, 4  ;;  %v4090_v33 = vrot.slane %v4088_v17, 4  ;;  %v4093_v7 = vrot.slane %v4091_v27, 5  ;;  %v5894_v3 = vld [vmem:[%s7407_s12 + $0x9c] sm:$0xe] }
 0x194   : > { %v8840_v0 = vrot.slane %v4097_v53, 5  ;;  %v4103_v56 = vrot.slane %v4101_v36, 4  ;;  %v8844_v38 = vsel %vm7669_vm7, %v5909_v23, %v4541_v21  ;;  %v4543_v9 = vrot.slane %v4541_v21, 4  ;;  %v9499_v53 = vld [vmem:[#allocation37_spill] sm:$0xff]  ;;  %v5883_v23 = vld [vmem:[%s7407_s12 + $0x18] sm:$0xe] }
 0x195   : > { %v4081_v40 = vrot.slane %v4080_v22, 4  ;;  %v4085_v51 = vrot.slane %v4083_v25, 5  ;;  %v4052_v34 = vsel %vm7449_vm3, %v4047_v54, %v8742_v46  ;;  %v5910_v59 = vrot.slane %v5894_v3, 9  ;;  %v6934_v25 = vld [vmem:[%s7407_s12 + $0x1c] sm:$0xf] }
 0x196   : > { %v8851_v11 = vsel %vm7669_vm7, %v4543_v9, %v4544_v8  ;;  %v4062_v17 = vsel %vm7449_vm3, %v4057_v50, %v4061_v31  ;;  %v4107_v27 = vshll.u32 %v8838_v52, 16  ;;  %v4548_v36 = vrot.slane %v9499_v53, 5  ;;  %v6935_v9 = vld [vmem:[%s7407_s12 + $0x20] sm:$0x1] }
 0x197   : > { %v5925_v46 = vcombine.low %v8844_v38, %v8851_v11  ;;  %v4094_v35 = vor.u32 %v4093_v7, %v4090_v33  ;;  %v4104_v18 = vor.u32 %v4103_v56, %v8840_v0  ;;  %v4551_v31 = vrot.slane %v8567_v42, 5 }
 0x198   : > { %v4086_v22 = vsel %vm7449_vm3, %v4081_v40, %v4085_v51  ;;  %v4550_v54 = vrot.slane %v4548_v36, 4  ;;  %v5864_v21 = vcombine.low %v4052_v34, %v4062_v17  ;;  %v4109_v8 = vrot.slane %v4107_v27, 5  ;;  %v5884_v17 = vld [vmem:[%s7407_s12 + $0x24] sm:$0xe] }
 0x199   : > { %6281 = vmatmul.mubr.msk.bf16.gmra.mrb[4].mxu1 %vm802_vm4, %v6884_v29  ;;  %6433 = vmatmul.mubr.msk.bf16.gmra.mrb[20].mxu0 %vm802_vm4, %v8669_v5  ;;  %v4076_v5 = vsel %vm7449_vm3, %v4071_v55, %v8794_v1  ;;  %v4471_v29 = vrot.slane %v6934_v25, 5  ;;  %v6886_v1 = vld [vmem:[%s7407_s12 + $0x48] sm:$0xff]   ;;  %v5899_v50 = vrot.slane %v5883_v23, 9  ;;  %v6887_v55 = vld [vmem:[%s7407_s12 + $0x54] sm:$0xff]   ;;  %v4095_v7 = vrot.slane %v4094_v35, 4 }
 0x19a   : > { %6284 = vmatprep.mubr.msk.bf16.mxu1 %vm802_vm4, %v6885_v12  ;;  %6436 = vmatprep.mubr.msk.bf16.mxu0 %vm802_vm4, %v5863_v63  ;;  %v8875_v63 = vsel %vm7669_vm7, %v5910_v59, %v4548_v36  ;;  %v8881_v42 = vsel %vm7669_vm7, %v4550_v54, %v4551_v31  ;;  %v5865_v33 = vcombine.low %v4076_v5, %v4086_v22  ;;  %v4105_v3 = vrot.slane %v4104_v18, 4  ;;  %v6936_v36 = vld [vmem:[%s7407_s12 + $0x28] sm:$0xf]  ;;  %v5896_v35 = vld [vmem:[%s7407_s12 + $0xb4] sm:$0xe] }
 0x19b   : > { %v5926_v12 = vcombine.low %v8875_v63, %v8881_v42  ;;  %v4473_v56 = vrot.slane %v4471_v29, 4  ;;  %v4474_v40 = vrot.slane %v6935_v9, 5  ;;  %v5911_v51 = vrot.slane %v5895_v62, 9  ;;  %v5885_v31 = vld [vmem:[%s7407_s12 + $0x30] sm:$0xe] }
 0x19c   : > { %v4555_v34 = vrot.slane %v8575_v2, 5  ;;  %v4558_v59 = vrot.slane %v8639_v26, 5  ;;  %v4100_v2 = vsel %vm7449_vm3, %v4095_v7, %v8840_v0  ;;  %v4110_v26 = vsel %vm7449_vm3, %v4105_v3, %v4109_v8  ;;  %v6937_v22 = vld [vmem:[%s7407_s12 + $0x34] sm:$0xf] }
 0x19d   : > { %v4478_v5 = vrot.slane %v6936_v36, 5  ;;  %v4472_v18 = vsel %vm7669_vm7, %v5899_v50, %v4471_v29  ;;  %v4475_v23 = vsel %vm7669_vm7, %v4473_v56, %v4474_v40  ;;  %v4485_v25 = vrot.slane %v6937_v22, 5  ;;  %v9500_v8 = vld [vmem:[#allocation21_spill] sm:$0xff] }
 0x19e   : > { %v8894_v27 = vsel %vm7669_vm7, %v5911_v51, %v4555_v34  ;;  %v4557_v53 = vrot.slane %v4555_v34, 4  ;;  %v5900_v0 = vrot.slane %v5884_v17, 9  ;;  %v5912_v29 = vrot.slane %v5896_v35, 9  ;;  %v9501_v51 = vld [vmem:[#allocation22_spill] sm:$0xff] }
 0x19f   : > { %v4562_v50 = vrot.slane %v8649_v45, 5  ;;  %v5915_v7 = vcombine.low %v4472_v18, %v4475_v23  ;;  %v4480_v3 = vrot.slane %v4478_v5, 4  ;;  %v5901_v56 = vrot.slane %v5885_v31, 9  ;;  %v9502_v45 = vld [vmem:[#allocation23_spill] sm:$0xff] }
 0x1a0   : > { %v8913_v54 = vsel %vm7669_vm7, %v4557_v53, %v4558_v59  ;;  %v4565_v9 = vrot.slane %v8761_v47, 5  ;;  %v4487_v40 = vrot.slane %v4485_v25, 4  ;;  %v4488_v34 = vrot.slane %v9501_v51, 5  ;;  %v5897_v53 = vld [vmem:[%s7407_s12 + $0xc0] sm:$0xe] }
 0x1a1   : > { %6285 = vmatmul.mubr.msk.bf16.gmra.mrb[8].mxu1 %vm802_vm4, %v6886_v1  ;;  %6437 = vmatmul.mubr.msk.bf16.gmra.mrb[24].mxu0 %vm802_vm4, %v5864_v21  ;;  %v5927_v62 = vcombine.low %v8894_v27, %v8913_v54  ;;  %v6888_v1 = vld [vmem:[%s7407_s12 + $0x60] sm:$0xff]   ;;  %v5866_v21 = vcombine.low %v4100_v2, %v4110_v26  ;;  %v8925_v59 = vsel %vm7669_vm7, %v5912_v29, %v4562_v50  ;;  %v4564_v17 = vrot.slane %v4562_v50, 4  ;;  %v5886_v35 = vld [vmem:[%s7407_s12 + $0x3c] sm:$0xe]  ;;  %v5898_v50 = vld [vmem:[%s7407_s12 + $0xcc] sm:$0xe] }
 0x1a2   : > { %6288 = vmatprep.mubr.msk.bf16.mxu1 %vm802_vm4, %v6887_v55  ;;  %6440 = vmatprep.mubr.msk.bf16.mxu0 %vm802_vm4, %v5865_v33  ;;  %v4481_v55 = vrot.slane %v9500_v8, 5  ;;  %v6889_v33 = vld [vmem:[%s7407_s12 + $0x6c] sm:$0xff]   ;;  %v4492_v2 = vrot.slane %v9502_v45, 5  ;;  %v4479_v26 = vsel %vm7669_vm7, %v5900_v0, %v4478_v5  ;;  %v4486_v23 = vsel %vm7669_vm7, %v5901_v56, %v4485_v25  ;;  %v6890_v5 = vld [vmem:[%s7407_s12 + $0x78] sm:$0xff]  }
 0x1a3   : > { %v8933_v47 = vsel %vm7669_vm7, %v4564_v17, %v4565_v9  ;;  %v4489_v31 = vsel %vm7669_vm7, %v4487_v40, %v4488_v34  ;;  %v5913_v22 = vrot.slane %v5897_v53, 9  ;;  %v4572_v8 = vrot.slane %v8808_v37, 5  ;;  %v6938_v34 = vld [vmem:[%s7407_s12 + $0x70] sm:$0xf] }
 0x1a4   : > { %v4482_v36 = vsel %vm7669_vm7, %v4480_v3, %v4481_v55  ;;  %v5928_v18 = vcombine.low %v8925_v59, %v8933_v47  ;;  %v5902_v55 = vrot.slane %v5886_v35, 9  ;;  %v4494_v29 = vrot.slane %v4492_v2, 4  ;;  %v9503_v3 = vld [vmem:[#allocation24_spill] sm:$0xff] }
 0x1a5   : > { %v5916_v0 = vcombine.low %v4479_v26, %v4482_v36  ;;  %v4495_v9 = vrot.slane %v9503_v3, 5  ;;  %v5914_v37 = vrot.slane %v5898_v50, 9  ;;  %v2374_v17 = vshll.u32 %v6938_v34, 16 }
 0x1a6   : > { %v2378_v53 = vshrl.u32 %v6938_v34, 16  ;;  %v4576_v26 = vrot.slane %v8790_v4, 5  ;;  %v4493_v36 = vsel %vm7669_vm7, %v5902_v55, %v4492_v2  ;;  %v6893_v55 = vld [vmem:[%s7407_s12 + $0x9c] sm:$0xff]   ;;  %v5628_v34 = vld [vmem:[%s7407_s12 + $0x90] sm:$0xf]  ;;  %v2542_v20 = vshll.u32 %v6949_v19, 16 }
 0x1a7   : > { %v4496_v35 = vsel %vm7669_vm7, %v4494_v29, %v4495_v9  ;;  %v5625_v29 = vld [vmem:[%s7407_s12 + $0x84] sm:$0xf]  ;;  %v2437_v28 = vshrl.u32 %v5628_v34, 16  ;;  %v7166_v59 = vmov 0.0  }
 0x1a8   : > { %v4578_v4 = vrot.slane %v4576_v26, 4  ;;  %v2413_v6 = vshrl.u32 %v5625_v29, 16  ;;  %v2416_v9 = vshll.u32 %v5625_v29, 16  ;;  %v2544_v38 = vrot.slane %v2542_v20, 5  ;;  %286 = vst.msk [vmem:[#allocation2 + $0x10] sm:$0xff] %vm283_vm8, %v7166_v59  ;;  %284 = vst.msk [vmem:[#allocation2] sm:$0xff] %vm283_vm8, %v7166_v59 }
 0x1a9   : > { %6289 = vmatmul.mubr.msk.bf16.gmra.mrb[12].mxu1 %vm802_vm4, %v6888_v1  ;;  %6441 = vmatmul.mubr.msk.bf16.gmra.mrb[28].mxu0 %vm802_vm4, %v5866_v21  ;;  %v5619_v1 = vld [vmem:[%s7407_s12 + $0x6c] sm:$0xf]  ;;  %v4569_v21 = vrot.slane %v8710_v61, 5  ;;  %285 = vst.msk [vmem:[#allocation2 + $0x8] sm:$0xff] %vm283_vm8, %v7166_v59  ;;  %287 = vst.msk [vmem:[#allocation2 + $0x18] sm:$0xff] %vm283_vm8, %v7166_v59 }
 0x1aa   : > { %6292 = vmatprep.mubr.msk.bf16.mxu1 %vm802_vm4, %v6889_v33  ;;  %6446 = vmatprep.mubr.msk.bf16.mxu0 %vm802_vm4, %v5915_v7  ;;  %v6891_v33 = vld [vmem:[%s7407_s12 + $0x84] sm:$0xff]   ;;  %v5917_v7 = vcombine.low %v4486_v23, %v4489_v31  ;;  %v2365_v40 = vshrl.u32 %v5619_v1, 16  ;;  %v2368_v51 = vshll.u32 %v5619_v1, 16  ;;  %v4579_v23 = vrot.slane %v8838_v52, 5  ;;  %288 = vst.msk [vmem:[#allocation2 + $0x20] sm:$0xff] %vm283_vm8, %v7166_v59  ;;  %289 = vst.msk [vmem:[#allocation2 + $0x28] sm:$0xff] %vm283_vm8, %v7166_v59 }
 0x1ab   : > { %v8957_v25 = vsel %vm7669_vm7, %v5913_v22, %v4569_v21  ;;  %v4571_v56 = vrot.slane %v4569_v21, 4  ;;  %v8978_v1 = vsel %vm7669_vm7, %v5914_v37, %v4576_v26  ;;  %v6892_v21 = vld [vmem:[%s7407_s12 + $0x90] sm:$0xff]   ;;  %290 = vst.msk [vmem:[#allocation2 + $0x30] sm:$0xff] %vm283_vm8, %v7166_v59  ;;  %291 = vst.msk [vmem:[#allocation2 + $0x38] sm:$0xff] %vm283_vm8, %v7166_v59 }
 0x1ac   : > { %v2367_v31 = vrot.slane %v2365_v40, 4  ;;  %v2370_v22 = vrot.slane %v2368_v51, 5  ;;  %v8983_v2 = vsel %vm7669_vm7, %v4578_v4, %v4579_v23  ;;  %v5631_v23 = vld [vmem:[%s7407_s12 + $0x9c] sm:$0xf]  ;;  %292 = vst.msk [vmem:[#allocation2 + $0x40] sm:$0xff] %vm283_vm8, %v7166_v59  ;;  %293 = vst.msk [vmem:[#allocation2 + $0x48] sm:$0xff] %vm283_vm8, %v7166_v59 }
 0x1ad   : > { %v8961_v61 = vsel %vm7669_vm7, %v4571_v56, %v4572_v8  ;;  %v5918_v8 = vcombine.low %v4493_v36, %v4496_v35  ;;  %v5930_v52 = vcombine.low %v8978_v1, %v8983_v2  ;;  %v6940_v56 = vld [vmem:[%s7407_s12 + $0x88] sm:$0xf]  ;;  %v2415_v36 = vrot.slane %v2413_v6, 4  ;;  %294 = vst.msk [vmem:[#allocation2 + $0x50] sm:$0xff] %vm283_vm8, %v7166_v59  ;;  %295 = vst.msk [vmem:[#allocation2 + $0x58] sm:$0xff] %vm283_vm8, %v7166_v59 }
 0x1ae   : > { %v5929_v45 = vcombine.low %v8957_v25, %v8961_v61  ;;  %v2371_v50 = vor.u32 %v2370_v22, %v2367_v31  ;;  %v2422_v40 = vshll.u32 %v6940_v56, 16  ;;  %v2426_v51 = vshrl.u32 %v6940_v56, 16  ;;  %v6895_v31 = vld [vmem:[%s7407_s12 + $0xb4] sm:$0xff]   ;;  %296 = vst.msk [vmem:[#allocation2 + $0x60] sm:$0xff] %vm283_vm8, %v7166_v59  ;;  %297 = vst.msk [vmem:[#allocation2 + $0x68] sm:$0xff] %vm283_vm8, %v7166_v59 }
 0x1af   : > { %v2418_v35 = vrot.slane %v2416_v9, 5  ;;  %v2464_v29 = vshll.u32 %v5631_v23, 16  ;;  %298 = vst.msk [vmem:[#allocation2 + $0x70] sm:$0xff] %vm283_vm8, %v7166_v59  ;;  %299 = vst.msk [vmem:[#allocation2 + $0x78] sm:$0xff] %vm283_vm8, %v7166_v59 }
 0x1b0   : > { %v2372_v37 = vrot.slane %v2371_v50, 4  ;;  %v9002_v22 = vrot.slane %v2422_v40, 5  ;;  %v2428_v44 = vrot.slane %v2426_v51, 4  ;;  %300 = vst.msk [vmem:[#allocation2 + $0x80] sm:$0xff] %vm283_vm8, %v7166_v59  ;;  %301 = vst.msk [vmem:[#allocation2 + $0x88] sm:$0xff] %vm283_vm8, %v7166_v59 }
 0x1b1   : > { %6293 = vmatmul.mubr.msk.bf16.gmra.mrb[16].mxu1 %vm802_vm4, %v6890_v5  ;;  %6447 = vmatmul.mubr.msk.bf16.vlgmr.msra.gmra.mrb[0].mxu0 %vm802_vm4, %v5916_v0  ;;  %v2376_v5 = vrot.slane %v2374_v17, 5  ;;  %v2380_v0 = vrot.slane %v2378_v53, 4  ;;  %v6894_v17 = vld [vmem:[%s7407_s12 + $0xa8] sm:$0xff]   ;;  %v2419_v43 = vor.u32 %v2418_v35, %v2415_v36  ;;  %302 = vst.msk [vmem:[#allocation2 + $0x90] sm:$0xff] %vm283_vm8, %v7166_v59  ;;  %303 = vst.msk [vmem:[#allocation2 + $0x98] sm:$0xff] %vm283_vm8, %v7166_v59 }
 0x1b2   : > { %6296 = vmatprep.mubr.msk.bf16.mxu1 %vm802_vm4, %v6891_v33  ;;  %6450 = vmatprep.mubr.msk.bf16.mxu0 %vm802_vm4, %v5917_v7  ;;  %v6939_v7 = vld [vmem:[%s7407_s12 + $0x74] sm:$0x1]  ;;  %v2429_v32 = vor.u32 %v2428_v44, %v9002_v22  ;;  %304 = vst.msk [vmem:[#allocation2 + $0xa0] sm:$0xff] %vm283_vm8, %v7166_v59  ;;  %305 = vst.msk [vmem:[#allocation2 + $0xa8] sm:$0xff] %vm283_vm8, %v7166_v59 }
 0x1b3   : > { %v2381_v33 = vor.u32 %v2380_v0, %v2376_v5  ;;  %v2384_v3 = vshll.u32 %v6939_v7, 16  ;;  %v2377_v4 = vsel %vm7449_vm3, %v2372_v37, %v2376_v5  ;;  %v2466_v37 = vrot.slane %v2464_v29, 5  ;;  %v6946_v29 = vld [vmem:[%s7407_s12 + $0xac] sm:$0xf]  ;;  %306 = vst.msk [vmem:[#allocation2 + $0xb0] sm:$0xff] %vm283_vm8, %v7166_v59  ;;  %307 = vst.msk [vmem:[#allocation2 + $0xb8] sm:$0xff] %vm283_vm8, %v7166_v59 }
 0x1b4   : > { %v2430_v36 = vrot.slane %v2429_v32, 4  ;;  %308 = vst.msk [vmem:[#allocation2 + $0xc0] sm:$0xff] %vm283_vm8, %v7166_v59  ;;  %309 = vst.msk [vmem:[#allocation2 + $0xc8] sm:$0xff] %vm283_vm8, %v7166_v59 }
 0x1b5   : > { %v2382_v53 = vrot.slane %v2381_v33, 4  ;;  %v2386_v26 = vrot.slane %v2384_v3, 5  ;;  %v6942_v33 = vld [vmem:[%s7407_s12 + $0x8c] sm:$0x1]  ;;  %v6943_v3 = vld [vmem:[%s7407_s12 + $0xa0] sm:$0xf] }
 0x1b6   : > { %v2432_v7 = vshll.u32 %v6942_v33, 16  ;;  %v2470_v5 = vshll.u32 %v6943_v3, 16  ;;  %v2474_v6 = vshrl.u32 %v6943_v3, 16  ;;  %v2498_v33 = vshrl.u32 %v6946_v29, 16  ;;  %310 = vst.msk [vmem:[#allocation2 + $0xd0] sm:$0xff] %vm283_vm8, %v7166_v59  ;;  %311 = vst.msk [vmem:[#allocation2 + $0xd8] sm:$0xff] %vm283_vm8, %v7166_v59 }
 0x1b7   : > { %v2387_v50 = vsel %vm7449_vm3, %v2382_v53, %v2386_v26  ;;  %312 = vst.msk [vmem:[#allocation2 + $0xe0] sm:$0xff] %vm283_vm8, %v7166_v59  ;;  %313 = vst.msk [vmem:[#allocation2 + $0xe8] sm:$0xff] %vm283_vm8, %v7166_v59 }
 0x1b8   : > { %v2434_v53 = vrot.slane %v2432_v7, 5  ;;  %v9025_v26 = vrot.slane %v2470_v5, 5  ;;  %v2476_v14 = vrot.slane %v2474_v6, 4  ;;  %v6947_v6 = vld [vmem:[%s7407_s12 + $0xb8] sm:$0xf]  ;;  %314 = vst.msk [vmem:[#allocation2 + $0xf0] sm:$0xff] %vm283_vm8, %v7166_v59 }
 0x1b9   : > { %6297 = vmatmul.mubr.msk.bf16.gmra.mrb[20].mxu1 %vm802_vm4, %v6892_v21  ;;  %6451 = vmatmul.mubr.msk.bf16.gmra.mrb[4].mxu0 %vm802_vm4, %v5918_v8  ;;  %v6941_v21 = vld [vmem:[%s7407_s12 + $0x94] sm:$0xf]  ;;  %v2522_v32 = vshrl.u32 %v6947_v6, 16  ;;  %315 = vst.msk [vmem:[#allocation2 + $0xf8] sm:$0xff] %vm283_vm8, %v7166_v59 }
 0x1ba   : > { %6300 = vmatprep.mubr.msk.bf16.mxu1 %vm802_vm4, %v6893_v55  ;;  %6454 = vmatprep.mubr.msk.bf16.mxu0 %vm802_vm4, %v5919_v60  ;;  %v2440_v60 = vshll.u32 %v5628_v34, 16  ;;  %v2446_v8 = vshll.u32 %v6941_v21, 16  ;;  %v2450_v0 = vshrl.u32 %v6941_v21, 16  ;;  %v2461_v55 = vshrl.u32 %v5631_v23, 16  ;;  %v6896_v34 = vld [vmem:[%s7407_s12 + $0xc0] sm:$0xff]  }
 0x1bb   : > { %v6944_v23 = vld [vmem:[%s7407_s12 + $0x98] sm:$0x1]  ;;  %v2435_v49 = vsel %vm7449_vm3, %v2430_v36, %v2434_v53 }
 0x1bc   : > { %v2442_v9 = vrot.slane %v2440_v60, 5  ;;  %v9022_v56 = vrot.slane %v2446_v8, 5  ;;  %v2452_v40 = vrot.slane %v2450_v0, 4  ;;  %v2463_v51 = vrot.slane %v2461_v55, 4  ;;  %v6945_v60 = vld [vmem:[%s7407_s12 + $0xa4] sm:$0x1] }
 0x1bd   : > { %v2480_v21 = vshll.u32 %v6945_v60, 16  ;;  %v2485_v8 = vshrl.u32 %v5634_v57, 16  ;;  %v5637_v0 = vld [vmem:[%s7407_s12 + $0xb4] sm:$0xf]  ;;  %v2488_v55 = vshll.u32 %v5634_v57, 16  ;;  %v2546_v60 = vshrl.u32 %v6949_v19, 16 }
 0x1be   : > { %v2453_v44 = vor.u32 %v2452_v40, %v9022_v56  ;;  %v2509_v3 = vshrl.u32 %v5637_v0, 16  ;;  %v2512_v5 = vshll.u32 %v5637_v0, 16  ;;  %v5640_v57 = vld [vmem:[%s7407_s12 + $0xc0] sm:$0xf] }
 0x1bf   : > { %v2482_v41 = vrot.slane %v2480_v21, 5  ;;  %v2487_v10 = vrot.slane %v2485_v8, 4  ;;  %v2490_v40 = vrot.slane %v2488_v55, 5  ;;  %v6950_v8 = vld [vmem:[%s7407_s12 + $0xbc] sm:$0x1]  ;;  %v2548_v11 = vrot.slane %v2546_v60, 4 }
 0x1c0   : > { %v2528_v0 = vshll.u32 %v6950_v8, 16  ;;  %v4881_v8 = vld [vmem:[#allocation2 + $0x30] sm:$0xff] }
 0x1c1   : > { %6301 = vmatmul.mubr.msk.bf16.gmra.mrb[24].mxu1 %vm802_vm4, %v6894_v17  ;;  %6455 = vmatmul.mubr.msk.bf16.gmra.mrb[8].mxu0 %vm802_vm4, %v5920_v24  ;;  %v2439_v24 = vrot.slane %v2437_v28, 4  ;;  %v5651_v17 = vcombine.low %v2377_v4, %v2387_v50  ;;  %v2467_v28 = vor.u32 %v2466_v37, %v2463_v51  ;;  %v2477_v4 = vor.u32 %v2476_v14, %v9025_v26 }
 0x1c2   : > { %6304 = vmatprep.mubr.msk.bf16.mxu1 %vm802_vm4, %v6895_v31  ;;  %6458 = vmatprep.mubr.msk.bf16.mxu0 %vm802_vm4, %v5921_v15  ;;  %v2420_v15 = vrot.slane %v2419_v43, 4  ;;  %v2456_v31 = vshll.u32 %v6944_v23, 16  ;;  %v2494_v50 = vshll.u32 %v6946_v29, 16  ;;  %v2518_v43 = vshll.u32 %v6947_v6, 16 }
 0x1c3   : > { %v2443_v35 = vor.u32 %v2442_v9, %v2439_v24  ;;  %v2454_v24 = vrot.slane %v2453_v44, 4  ;;  %v2468_v9 = vrot.slane %v2467_v28, 4  ;;  %v2524_v14 = vrot.slane %v2522_v32, 4  ;;  %v6948_v44 = vld [vmem:[%s7407_s12 + $0xb0] sm:$0x1] }
 0x1c4   : > { %v2425_v7 = vsel %vm7449_vm3, %v2420_v15, %v9002_v22  ;;  %v2496_v51 = vrot.slane %v2494_v50, 5  ;;  %v2500_v22 = vrot.slane %v2498_v33, 4  ;;  %v2520_v53 = vrot.slane %v2518_v43, 5  ;;  %v6951_v32 = vld [vmem:[%s7407_s12 + $0xc8] sm:$0x1] }
 0x1c5   : > { %v2444_v16 = vrot.slane %v2443_v35, 4  ;;  %v5653_v37 = vcombine.low %v2425_v7, %v2435_v49  ;;  %v2473_v35 = vsel %vm7449_vm3, %v2468_v9, %v9025_v26  ;;  %v2504_v28 = vshll.u32 %v6948_v44, 16 }
 0x1c6   : > { %v2536_v26 = vshll.u32 %v5640_v57, 16  ;;  %v2525_v21 = vor.u32 %v2524_v14, %v2520_v53  ;;  %v2549_v43 = vor.u32 %v2548_v11, %v2544_v38 }
 0x1c7   : > { %v2449_v15 = vsel %vm7449_vm3, %v2444_v16, %v9022_v56  ;;  %v2491_v56 = vor.u32 %v2490_v40, %v2487_v10  ;;  %v2506_v33 = vrot.slane %v2504_v28, 5 }
 0x1c8   : > { %v2538_v49 = vrot.slane %v2536_v26, 5  ;;  %v2526_v16 = vrot.slane %v2525_v21, 4  ;;  %v2550_v10 = vrot.slane %v2549_v43, 4  ;;  %v4876_v26 = vld [vmem:[#allocation2 + $0x8] sm:$0xff] }
 0x1c9   : > { %6305 = vmatmul.mubr.msk.bf16.gmra.mrb[28].mxu1 %vm802_vm4, %v6896_v34  ;;  %6459 = vmatmul.mubr.msk.bf16.gmra.mrb[12].mxu0 %vm802_vm4, %v5922_v39  ;;  %v2458_v39 = vrot.slane %v2456_v31, 5  ;;  %v2511_v34 = vrot.slane %v2509_v3, 4  ;;  %v2501_v31 = vor.u32 %v2500_v22, %v2496_v51  ;;  %v2492_v29 = vrot.slane %v2491_v56, 4 }
 0x1ca   : > { %6326 = vmatprep.mubr.msk.bf16.mxu1 %vm802_vm4, %v5651_v17  ;;  %6462 = vmatprep.mubr.msk.bf16.mxu0 %vm802_vm4, %v5923_v13  ;;  %v2478_v13 = vrot.slane %v2477_v4, 4  ;;  %v2514_v17 = vrot.slane %v2512_v5, 5 }
 0x1cb   : > { %v2459_v36 = vsel %vm7449_vm3, %v2454_v24, %v2458_v39  ;;  %v2502_v50 = vrot.slane %v2501_v31, 4  ;;  %v2530_v39 = vrot.slane %v2528_v0, 5  ;;  %v2497_v3 = vsel %vm7449_vm3, %v2492_v29, %v2496_v51  ;;  %v4878_v31 = vld [vmem:[#allocation2 + $0x18] sm:$0xff]  ;;  %v9165_v29 = vld [vmem:[#allocation8] ss:$0 sm:$0xff] }
 0x1cc   : > { %v2483_v23 = vsel %vm7449_vm3, %v2478_v13, %v2482_v41  ;;  %v5654_v4 = vcombine.low %v2449_v15, %v2459_v36  ;;  %v2552_v24 = vshll.u32 %v6951_v32, 16 }
 0x1cd   : > { %v5655_v55 = vcombine.low %v2473_v35, %v2483_v23  ;;  %v2507_v5 = vsel %vm7449_vm3, %v2502_v50, %v2506_v33  ;;  %v2531_v42 = vsel %vm7449_vm3, %v2526_v16, %v2530_v39  ;;  %v4875_v35 = vld [vmem:[#allocation2] sm:$0xff] }
 0x1ce   : > { %v2554_v27 = vrot.slane %v2552_v24, 5  ;;  %v9167_v39 = vld [vmem:[#allocation9] ss:$0 sm:$0xff] }
 0x1d1   : > { %6327 = vmatmul.mubr.msk.bf16.vlgmr.msra.gmra.mrb[16].mxu1 %vm802_vm4, %v8830_v58  ;;  %6463 = vmatmul.mubr.msk.bf16.gmra.mrb[16].mxu0 %vm802_vm4, %v5924_v48  ;;  %v2533_v58 = vshrl.u32 %v5640_v57, 16  ;;  %v2515_v48 = vor.u32 %v2514_v17, %v2511_v34  ;;  %v4877_v57 = vld [vmem:[#allocation2 + $0x10] sm:$0xff] }
 0x1d2   : > { %6330 = vmatprep.mubr.msk.bf16.mxu1 %vm802_vm4, %v5653_v37  ;;  %6466 = vmatprep.mubr.msk.bf16.mxu0 %vm802_vm4, %v5925_v46 }
 0x1d3   : > { %v2535_v7 = vrot.slane %v2533_v58, 4  ;;  %v2516_v46 = vrot.slane %v2515_v48, 4 }
 0x1d5   : > { %v2539_v6 = vor.u32 %v2538_v49, %v2535_v7  ;;  %v2521_v63 = vsel %vm7449_vm3, %v2516_v46, %v2520_v53  ;;  %v4882_v7 = vld [vmem:[#allocation2 + $0x38] sm:$0xff]  ;;  %v4880_v46 = vld [vmem:[#allocation2 + $0x28] sm:$0xff] }
 0x1d6   : > { %v5657_v9 = vcombine.low %v2521_v63, %v2531_v42 }
 0x1d7   : > { %v2540_v41 = vrot.slane %v2539_v6, 4 }
 0x1d9   : > { %6331 = vmatmul.mubr.msk.bf16.gmra.mrb[20].mxu1 %vm802_vm4, %v5654_v4  ;;  %6467 = vmatmul.mubr.msk.bf16.gmra.mrb[20].mxu0 %vm802_vm4, %v5926_v12  ;;  %v5656_v12 = vcombine.low %v2497_v3, %v2507_v5  ;;  %v2545_v54 = vsel %vm7449_vm3, %v2540_v41, %v2544_v38 }
 0x1da   : > { %6334 = vmatprep.mubr.msk.bf16.mxu1 %vm802_vm4, %v5655_v55  ;;  %6470 = vmatprep.mubr.msk.bf16.mxu0 %vm802_vm4, %v5927_v62  ;;  %v2555_v62 = vsel %vm7449_vm3, %v2550_v10, %v2554_v27  ;;  %v4879_v55 = vld [vmem:[#allocation2 + $0x20] sm:$0xff] }
 0x1db   : > { %v5658_v13 = vcombine.low %v2545_v54, %v2555_v62  ;;  %v4885_v62 = vld [vmem:[#allocation2 + $0x50] sm:$0xff] }
 0x1e1   : > { %6335 = vmatmul.mubr.msk.bf16.gmra.mrb[24].mxu1 %vm802_vm4, %v5656_v12  ;;  %6471 = vmatmul.mubr.msk.bf16.gmra.mrb[24].mxu0 %vm802_vm4, %v5928_v18 }
 0x1e2   : > { %6338 = vmatprep.mubr.msk.bf16.mxu1 %vm802_vm4, %v5657_v9  ;;  %6474 = vmatprep.mubr.msk.bf16.mxu0 %vm802_vm4, %v5929_v45 }
 0x1e9   : > { %6339 = vmatmul.mubr.msk.bf16.gmra.mrb[28].mxu1 %vm802_vm4, %v5658_v13  ;;  %6475 = vmatmul.mubr.msk.bf16.gmra.mrb[28].mxu0 %vm802_vm4, %v5930_v52 }
 0x264   : > { %v6278_v30 = vpop.f32.mrb[0].mxu1 }
 0x265   : > { %v1965_v47 = vpop.f32.mrb[1].mxu1 }
 0x266   : > { %v6279_v18 = vpop.f32.mrb[2].mxu1 }
 0x267   : > { %v1968_v25 = vpop.f32.mrb[3].mxu1 }
 0x26c   : > { %v6282_v61 = vpop.f32.mrb[4].mxu1 }
 0x26d   : > { %v1981_v45 = vpop.f32.mrb[5].mxu1 }
 0x26e   : > { %v6283_v1 = vpop.f32.mrb[6].mxu1 }
 0x26f   : > { %v1984_v2 = vpop.f32.mrb[7].mxu1 }
 0x274   : > { %v9145_v52 = vpop.f32.mrb[8].mxu1 }
 0x275   : > { %v9147_v40 = vpop.f32.mrb[9].mxu1 }
 0x276   : > { %v9149_v51 = vpop.f32.mrb[10].mxu1 }
 0x277   : > { %v9151_v22 = vpop.f32.mrb[11].mxu1 }
 0x27c   : > { %v9153_v37 = vpop.f32.mrb[12].mxu1 }
 0x27d   : > { %v9155_v34 = vpop.f32.mrb[13].mxu1 }
 0x27e   : > { %v9157_v17 = vpop.f32.mrb[14].mxu1 }
 0x27f   : > { %v9159_v53 = vpop.f32.mrb[15].mxu1 }
 0x284   : > { %v6448_v14 = vpop.f32.mrb[0].mxu0 }
 0x285   : > { %v6480_v15 = vadd.f32 %v6448_v14, %v6278_v30  ;;  %v4716_v36 = vpop.f32.mrb[1].mxu0 }
 0x286   : > { %v6481_v23 = vadd.f32 %v4716_v36, %v1965_v47  ;;  %v6449_v56 = vpop.f32.mrb[2].mxu0 }
 0x287   : > { %v4909_v44 = vadd.f32 %v6480_v15, %v4877_v57  ;;  %v6482_v28 = vadd.f32 %v6449_v56, %v6279_v18  ;;  %v4719_v58 = vpop.f32.mrb[3].mxu0  ;;  %v4883_v18 = vld [vmem:[#allocation2 + $0x40] sm:$0xff] }
 0x288   : > { %v4907_v19 = vadd.f32 %v6481_v23, %v4875_v35  ;;  %v6483_v20 = vadd.f32 %v4719_v58, %v1968_v25  ;;  %v4884_v23 = vld [vmem:[#allocation2 + $0x48] sm:$0xff] }
 0x289   : > { %4942 = vst.msk [vmem:[#allocation2 + $0x10] sm:$0xff] %vm283_vm8, %v4909_v44  ;;  %v4910_v60 = vadd.f32 %v6482_v28, %v4878_v31 }
 0x28a   : > { %4940 = vst.msk [vmem:[#allocation2] sm:$0xff] %vm283_vm8, %v4907_v19  ;;  %v4908_v48 = vadd.f32 %v6483_v20, %v4876_v26 }
 0x28b   : > { %4943 = vst.msk [vmem:[#allocation2 + $0x18] sm:$0xff] %vm283_vm8, %v4910_v60 }
 0x28c   : > { %4941 = vst.msk [vmem:[#allocation2 + $0x8] sm:$0xff] %vm283_vm8, %v4908_v48  ;;  %v6452_v21 = vpop.f32.mrb[4].mxu0 }
 0x28d   : > { %v6484_v0 = vadd.f32 %v6452_v21, %v6282_v61  ;;  %v4732_v4 = vpop.f32.mrb[5].mxu0 }
 0x28e   : > { %v6485_v50 = vadd.f32 %v4732_v4, %v1981_v45  ;;  %v6453_v33 = vpop.f32.mrb[6].mxu0 }
 0x28f   : > { %v4913_v49 = vadd.f32 %v6484_v0, %v4881_v8  ;;  %v6486_v38 = vadd.f32 %v6453_v33, %v6283_v1  ;;  %v4735_v11 = vpop.f32.mrb[7].mxu0 }
 0x290   : > { %v4977_v16 = vld [vmem:[#allocation2 + $0x10] sm:$0xff]  ;;  %v4911_v3 = vadd.f32 %v6485_v50, %v4879_v55  ;;  %v6487_v5 = vadd.f32 %v4735_v11, %v1984_v2  ;;  %v4886_v2 = vld [vmem:[#allocation2 + $0x58] sm:$0xff]  ;;  %v4887_v11 = vld [vmem:[#allocation2 + $0x60] sm:$0xff] }
 0x291   : > { %v5016_v6 = vmul.f32 %v9165_v29, %v4977_v16  ;;  %v4975_v43 = vld [vmem:[#allocation2] sm:$0xff]  ;;  %4946 = vst.msk [vmem:[#allocation2 + $0x30] sm:$0xff] %vm283_vm8, %v4913_v49  ;;  %v4914_v32 = vadd.f32 %v6486_v38, %v4882_v7  ;;  %v4889_v50 = vld [vmem:[#allocation2 + $0x70] sm:$0xff] }
 0x292   : > { %v5014_v24 = vmul.f32 %v9165_v29, %v4975_v43  ;;  %v4978_v63 = vld [vmem:[#allocation2 + $0x18] sm:$0xff]  ;;  %4944 = vst.msk [vmem:[#allocation2 + $0x20] sm:$0xff] %vm283_vm8, %v4911_v3  ;;  %v4912_v42 = vadd.f32 %v6487_v5, %v4880_v46 }
 0x293   : > { %v5055_v12 = vadd.f32 %v9167_v39, %v5016_v6  ;;  %v5017_v9 = vmul.f32 %v9165_v29, %v4978_v63  ;;  %v4976_v41 = vld [vmem:[#allocation2 + $0x8] sm:$0xff]  ;;  %4947 = vst.msk [vmem:[#allocation2 + $0x38] sm:$0xff] %vm283_vm8, %v4914_v32  ;;  %v4890_v6 = vld [vmem:[#allocation2 + $0x78] sm:$0xff] }
 0x294   : > { %v5053_v10 = vadd.f32 %v9167_v39, %v5014_v24  ;;  %v5015_v27 = vmul.f32 %v9165_v29, %v4976_v41  ;;  %4945 = vst.msk [vmem:[#allocation2 + $0x28] sm:$0xff] %vm283_vm8, %v4912_v42  ;;  %v6456_v54 = vpop.f32.mrb[8].mxu0 }
 0x295   : > { %v5087_v13 = vmax.f32 %v5055_v12, 0.0  ;;  %v5056_v59 = vadd.f32 %v9167_v39, %v5017_v9  ;;  %v6488_v30 = vadd.f32 %v6456_v54, %v9145_v52  ;;  %v4748_v47 = vpop.f32.mrb[9].mxu0  ;;  %v4888_v12 = vld [vmem:[#allocation2 + $0x68] sm:$0xff] }
 0x296   : > { %v5085_v25 = vmax.f32 %v5053_v10, 0.0  ;;  %v5054_v61 = vadd.f32 %v9167_v39, %v5015_v27  ;;  %v6489_v45 = vadd.f32 %v4748_v47, %v9147_v40  ;;  %v6457_v1 = vpop.f32.mrb[10].mxu0 }
 0x297   : > { %v5988_v14 = vpack.c.bf16 %v5087_v13, %v5087_v13  ;;  %v5088_v57 = vmax.f32 %v5056_v59, 0.0  ;;  %v4917_v15 = vadd.f32 %v6488_v30, %v4885_v62  ;;  %v6490_v36 = vadd.f32 %v6457_v1, %v9149_v51  ;;  %v4751_v35 = vpop.f32.mrb[11].mxu0 }
 0x298   : > { %v5986_v56 = vpack.c.bf16 %v5085_v25, %v5085_v25  ;;  %v5086_v52 = vmax.f32 %v5054_v61, 0.0  ;;  %v4981_v31 = vld [vmem:[#allocation2 + $0x30] sm:$0xff]  ;;  %v4915_v44 = vadd.f32 %v6489_v45, %v4883_v18  ;;  %v6491_v28 = vadd.f32 %v4751_v35, %v9151_v22 }
 0x299   : > { %5248 = vst.msk [vmem:[%s9188_s25 + $0x8] sm:$0xf] %vm5245_vm9, %v5988_v14  ;;  %v5989_v40 = vpack.c.bf16 %v5088_v57, %v5088_v57  ;;  %v5020_v51 = vmul.f32 %v9165_v29, %v4981_v31  ;;  %v4979_v58 = vld [vmem:[#allocation2 + $0x20] sm:$0xff]  ;;  %v4918_v26 = vadd.f32 %v6490_v36, %v4886_v2  ;;  %v4893_v14 = vld [vmem:[#allocation2 + $0x90] sm:$0xff] }
 0x29a   : > { %4950 = vst.msk [vmem:[#allocation2 + $0x50] sm:$0xff] %vm283_vm8, %v4917_v15  ;;  %v5987_v19 = vpack.c.bf16 %v5086_v52, %v5086_v52  ;;  %v5018_v22 = vmul.f32 %v9165_v29, %v4979_v58  ;;  %v4982_v20 = vld [vmem:[#allocation2 + $0x38] sm:$0xff]  ;;  %4948 = vst.msk [vmem:[#allocation2 + $0x40] sm:$0xff] %vm283_vm8, %v4915_v44  ;;  %v4916_v60 = vadd.f32 %v6491_v28, %v4884_v23 }
 0x29b   : > { %5246 = vst.msk [vmem:[%s9188_s25] sm:$0xf] %vm5245_vm9, %v5986_v56  ;;  %5249 = vst.msk [vmem:[%s9188_s25 + $0xc] sm:$0xf] %vm5245_vm9, %v5989_v40  ;;  %v5059_v48 = vadd.f32 %v9167_v39, %v5020_v51  ;;  %v5021_v21 = vmul.f32 %v9165_v29, %v4982_v20  ;;  %v4980_v8 = vld [vmem:[#allocation2 + $0x28] sm:$0xff]  ;;  %v4891_v56 = vld [vmem:[#allocation2 + $0x80] sm:$0xff] }
 0x29c   : > { %4951 = vst.msk [vmem:[#allocation2 + $0x58] sm:$0xff] %vm283_vm8, %v4918_v26  ;;  %v5057_v0 = vadd.f32 %v9167_v39, %v5018_v22  ;;  %v5019_v4 = vmul.f32 %v9165_v29, %v4980_v8  ;;  %4949 = vst.msk [vmem:[#allocation2 + $0x48] sm:$0xff] %vm283_vm8, %v4916_v60  ;;  %v6460_v55 = vpop.f32.mrb[12].mxu0  ;;  %v4894_v51 = vld [vmem:[#allocation2 + $0x98] sm:$0xff] }
 0x29d   : > { %5247 = vst.msk [vmem:[%s9188_s25 + $0x4] sm:$0xf] %vm5245_vm9, %v5987_v19  ;;  %v5091_v33 = vmax.f32 %v5059_v48, 0.0  ;;  %v5060_v7 = vadd.f32 %v9167_v39, %v5021_v21  ;;  %v6492_v49 = vadd.f32 %v6460_v55, %v9153_v37  ;;  %v4764_v38 = vpop.f32.mrb[13].mxu0  ;;  %v4892_v48 = vld [vmem:[#allocation2 + $0x88] sm:$0xff] }
 0x29e   : > { %v5089_v46 = vmax.f32 %v5057_v0, 0.0  ;;  %v5058_v16 = vadd.f32 %v9167_v39, %v5019_v4  ;;  %v6493_v3 = vadd.f32 %v4764_v38, %v9155_v34  ;;  %v6461_v5 = vpop.f32.mrb[14].mxu0 }
 0x29f   : > { %v5992_v43 = vpack.c.bf16 %v5091_v33, %v5091_v33  ;;  %v5092_v32 = vmax.f32 %v5060_v7, 0.0  ;;  %v4921_v24 = vadd.f32 %v6492_v49, %v4889_v50  ;;  %v6494_v63 = vadd.f32 %v6461_v5, %v9157_v17  ;;  %v4767_v42 = vpop.f32.mrb[15].mxu0 }
 0x2a0   : > { %v5990_v9 = vpack.c.bf16 %v5089_v46, %v5089_v46  ;;  %v5090_v37 = vmax.f32 %v5058_v16, 0.0  ;;  %v4919_v10 = vadd.f32 %v6493_v3, %v4887_v11  ;;  %v6495_v27 = vadd.f32 %v4767_v42, %v9159_v53  ;;  %v4897_v42 = vld [vmem:[#allocation2 + $0xb0] sm:$0xff] }
 0x2a1   : > { %v4985_v41 = vld [vmem:[#allocation2 + $0x50] sm:$0xff]  ;;  %5252 = vst.msk [vmem:[%s9188_s25 + $0x18] sm:$0xf] %vm5245_vm9, %v5992_v43  ;;  %v5993_v34 = vpack.c.bf16 %v5092_v32, %v5092_v32  ;;  %v4983_v62 = vld [vmem:[#allocation2 + $0x40] sm:$0xff]  ;;  %v4922_v13 = vadd.f32 %v6494_v63, %v4890_v6 }
 0x2a2   : > { %v5024_v54 = vmul.f32 %v9165_v29, %v4985_v41  ;;  %4954 = vst.msk [vmem:[#allocation2 + $0x70] sm:$0xff] %vm283_vm8, %v4921_v24  ;;  %v5991_v17 = vpack.c.bf16 %v5090_v37, %v5090_v37  ;;  %v5022_v59 = vmul.f32 %v9165_v29, %v4983_v62  ;;  %4952 = vst.msk [vmem:[#allocation2 + $0x60] sm:$0xff] %vm283_vm8, %v4919_v10 }
 0x2a3   : > { %5250 = vst.msk [vmem:[%s9188_s25 + $0x10] sm:$0xf] %vm5245_vm9, %v5990_v9  ;;  %v4986_v30 = vld [vmem:[#allocation2 + $0x58] sm:$0xff]  ;;  %v4920_v47 = vadd.f32 %v6495_v27, %v4888_v12  ;;  %5253 = vst.msk [vmem:[%s9188_s25 + $0x1c] sm:$0xf] %vm5245_vm9, %v5993_v34  ;;  %v4984_v25 = vld [vmem:[#allocation2 + $0x48] sm:$0xff] }
 0x2a4   : > { %v5063_v53 = vadd.f32 %v9167_v39, %v5024_v54  ;;  %v5025_v18 = vmul.f32 %v9165_v29, %v4986_v30  ;;  %4955 = vst.msk [vmem:[#allocation2 + $0x78] sm:$0xff] %vm283_vm8, %v4922_v13  ;;  %v5061_v61 = vadd.f32 %v9167_v39, %v5022_v59  ;;  %v5023_v45 = vmul.f32 %v9165_v29, %v4984_v25  ;;  %v6328_v1 = vpop.f32.mrb[16].mxu1  ;;  %v6464_v2 = vpop.f32.mrb[16].mxu0  ;;  %v4895_v27 = vld [vmem:[#allocation2 + $0xa0] sm:$0xff]  ;;  %v4898_v59 = vld [vmem:[#allocation2 + $0xb8] sm:$0xff] }
 0x2a5   : > { %5251 = vst.msk [vmem:[%s9188_s25 + $0x14] sm:$0xf] %vm5245_vm9, %v5991_v17  ;;  %v6496_v36 = vadd.f32 %v6464_v2, %v6328_v1  ;;  %v2755_v35 = vpop.f32.mrb[17].mxu1  ;;  %v4780_v23 = vpop.f32.mrb[17].mxu0 }
 0x2a6   : > { %4953 = vst.msk [vmem:[#allocation2 + $0x68] sm:$0xff] %vm283_vm8, %v4920_v47  ;;  %v5095_v57 = vmax.f32 %v5063_v53, 0.0  ;;  %v5064_v15 = vadd.f32 %v9167_v39, %v5025_v18  ;;  %v5093_v52 = vmax.f32 %v5061_v61, 0.0  ;;  %v5062_v31 = vadd.f32 %v9167_v39, %v5023_v45  ;;  %v6329_v28 = vpop.f32.mrb[18].mxu1  ;;  %v6465_v40 = vpop.f32.mrb[18].mxu0  ;;  %v4896_v45 = vld [vmem:[#allocation2 + $0xa8] sm:$0xff] }
 0x2a7   : > { %v6497_v44 = vadd.f32 %v4780_v23, %v2755_v35  ;;  %v4925_v19 = vadd.f32 %v6496_v36, %v4893_v14  ;;  %v6498_v22 = vadd.f32 %v6465_v40, %v6329_v28  ;;  %v2758_v20 = vpop.f32.mrb[19].mxu1  ;;  %v4783_v60 = vpop.f32.mrb[19].mxu0 }
 0x2a8   : > { %v5996_v58 = vpack.c.bf16 %v5095_v57, %v5095_v57  ;;  %v5096_v26 = vmax.f32 %v5064_v15, 0.0  ;;  %v5994_v21 = vpack.c.bf16 %v5093_v52, %v5093_v52  ;;  %v5094_v8 = vmax.f32 %v5062_v31, 0.0 }
 0x2a9   : > { %v4989_v0 = vld [vmem:[#allocation2 + $0x70] sm:$0xff]  ;;  %v4923_v4 = vadd.f32 %v6497_v44, %v4891_v56  ;;  %v6499_v55 = vadd.f32 %v4783_v60, %v2758_v20  ;;  %v4987_v7 = vld [vmem:[#allocation2 + $0x60] sm:$0xff]  ;;  %4958 = vst.msk [vmem:[#allocation2 + $0x90] sm:$0xff] %vm283_vm8, %v4925_v19  ;;  %v4926_v49 = vadd.f32 %v6498_v22, %v4894_v51 }
 0x2aa   : > { %5256 = vst.msk [vmem:[%s9188_s25 + $0x28] sm:$0xf] %vm5245_vm9, %v5996_v58  ;;  %v5997_v50 = vpack.c.bf16 %v5096_v26, %v5096_v26  ;;  %v5028_v33 = vmul.f32 %v9165_v29, %v4989_v0  ;;  %5254 = vst.msk [vmem:[%s9188_s25 + $0x20] sm:$0xf] %vm5245_vm9, %v5994_v21  ;;  %v5995_v38 = vpack.c.bf16 %v5094_v8, %v5094_v8  ;;  %v4901_v60 = vld [vmem:[#allocation2 + $0xd0] sm:$0xff] }
 0x2ab   : > { %v5026_v11 = vmul.f32 %v9165_v29, %v4987_v7  ;;  %v4990_v46 = vld [vmem:[#allocation2 + $0x78] sm:$0xff]  ;;  %4956 = vst.msk [vmem:[#allocation2 + $0x80] sm:$0xff] %vm283_vm8, %v4923_v4  ;;  %v4924_v16 = vadd.f32 %v6499_v55, %v4892_v48  ;;  %4959 = vst.msk [vmem:[#allocation2 + $0x98] sm:$0xff] %vm283_vm8, %v4926_v49  ;;  %v4899_v55 = vld [vmem:[#allocation2 + $0xc0] sm:$0xff] }
 0x2ac   : > { %5257 = vst.msk [vmem:[%s9188_s25 + $0x2c] sm:$0xf] %vm5245_vm9, %v5997_v50  ;;  %v5067_v3 = vadd.f32 %v9167_v39, %v5028_v33  ;;  %v5029_v5 = vmul.f32 %v9165_v29, %v4990_v46  ;;  %5255 = vst.msk [vmem:[%s9188_s25 + $0x24] sm:$0xf] %vm5245_vm9, %v5995_v38  ;;  %v6332_v24 = vpop.f32.mrb[20].mxu1  ;;  %v6468_v63 = vpop.f32.mrb[20].mxu0 }
 0x2ad   : > { %v4988_v6 = vld [vmem:[#allocation2 + $0x68] sm:$0xff]  ;;  %v5065_v43 = vadd.f32 %v9167_v39, %v5026_v11  ;;  %4957 = vst.msk [vmem:[#allocation2 + $0x88] sm:$0xff] %vm283_vm8, %v4924_v16  ;;  %v6500_v37 = vadd.f32 %v6468_v63, %v6332_v24  ;;  %v2771_v41 = vpop.f32.mrb[21].mxu1  ;;  %v4796_v10 = vpop.f32.mrb[21].mxu0  ;;  %v4902_v11 = vld [vmem:[#allocation2 + $0xd8] sm:$0xff] }
 0x2ae   : > { %v5027_v32 = vmul.f32 %v9165_v29, %v4988_v6  ;;  %v5099_v12 = vmax.f32 %v5067_v3, 0.0  ;;  %v5068_v9 = vadd.f32 %v9167_v39, %v5029_v5  ;;  %v6501_v62 = vadd.f32 %v4796_v10, %v2771_v41  ;;  %v6333_v13 = vpop.f32.mrb[22].mxu1  ;;  %v6469_v17 = vpop.f32.mrb[22].mxu0 }
 0x2af   : > { %v5097_v34 = vmax.f32 %v5065_v43, 0.0  ;;  %v4929_v53 = vadd.f32 %v6500_v37, %v4897_v42  ;;  %v6502_v18 = vadd.f32 %v6469_v17, %v6333_v13  ;;  %v2774_v25 = vpop.f32.mrb[23].mxu1  ;;  %v4799_v61 = vpop.f32.mrb[23].mxu0 }
 0x2b0   : > { %v5066_v54 = vadd.f32 %v9167_v39, %v5027_v32  ;;  %v6000_v30 = vpack.c.bf16 %v5099_v12, %v5099_v12  ;;  %v5100_v47 = vmax.f32 %v5068_v9, 0.0  ;;  %v4993_v14 = vld [vmem:[#allocation2 + $0x90] sm:$0xff]  ;;  %v4927_v57 = vadd.f32 %v6501_v62, %v4895_v27  ;;  %v4900_v32 = vld [vmem:[#allocation2 + $0xc8] sm:$0xff] }
 0x2b1   : > { %v5998_v1 = vpack.c.bf16 %v5097_v34, %v5097_v34  ;;  %v6503_v15 = vadd.f32 %v4799_v61, %v2774_v25  ;;  %v5032_v35 = vmul.f32 %v9165_v29, %v4993_v14  ;;  %4962 = vst.msk [vmem:[#allocation2 + $0xb0] sm:$0xff] %vm283_vm8, %v4929_v53  ;;  %v4930_v56 = vadd.f32 %v6502_v18, %v4898_v59  ;;  %v4905_v61 = vld [vmem:[#allocation2 + $0xf0] sm:$0xff] }
 0x2b2   : > { %v5098_v2 = vmax.f32 %v5066_v54, 0.0  ;;  %5260 = vst.msk [vmem:[%s9188_s25 + $0x38] sm:$0xf] %vm5245_vm9, %v6000_v30  ;;  %v6001_v36 = vpack.c.bf16 %v5100_v47, %v5100_v47  ;;  %v4991_v23 = vld [vmem:[#allocation2 + $0x80] sm:$0xff]  ;;  %v4994_v44 = vld [vmem:[#allocation2 + $0x98] sm:$0xff] }
 0x2b3   : > { %5258 = vst.msk [vmem:[%s9188_s25 + $0x30] sm:$0xf] %vm5245_vm9, %v5998_v1  ;;  %v5030_v31 = vmul.f32 %v9165_v29, %v4991_v23  ;;  %v4928_v28 = vadd.f32 %v6503_v15, %v4896_v45  ;;  %v5071_v40 = vadd.f32 %v9167_v39, %v5032_v35  ;;  %v5033_v51 = vmul.f32 %v9165_v29, %v4994_v44  ;;  %v4903_v15 = vld [vmem:[#allocation2 + $0xe0] sm:$0xff] }
 0x2b4   : > { %v5999_v52 = vpack.c.bf16 %v5098_v2, %v5098_v2  ;;  %4960 = vst.msk [vmem:[#allocation2 + $0xa0] sm:$0xff] %vm283_vm8, %v4927_v57  ;;  %v4992_v58 = vld [vmem:[#allocation2 + $0x88] sm:$0xff]  ;;  %4963 = vst.msk [vmem:[#allocation2 + $0xb8] sm:$0xff] %vm283_vm8, %v4930_v56  ;;  %v6336_v22 = vpop.f32.mrb[24].mxu1  ;;  %v6472_v20 = vpop.f32.mrb[24].mxu0 }
 0x2b5   : > { %5261 = vst.msk [vmem:[%s9188_s25 + $0x3c] sm:$0xf] %vm5245_vm9, %v6001_v36  ;;  %v5069_v26 = vadd.f32 %v9167_v39, %v5030_v31  ;;  %v5031_v19 = vmul.f32 %v9165_v29, %v4992_v58  ;;  %v5103_v48 = vmax.f32 %v5071_v40, 0.0  ;;  %v5072_v21 = vadd.f32 %v9167_v39, %v5033_v51  ;;  %v2787_v0 = vpop.f32.mrb[25].mxu1  ;;  %v4812_v4 = vpop.f32.mrb[25].mxu0  ;;  %v4906_v31 = vld [vmem:[#allocation2 + $0xf8] sm:$0xff] }
 0x2b6   : > { %5259 = vst.msk [vmem:[%s9188_s25 + $0x34] sm:$0xf] %vm5245_vm9, %v5999_v52  ;;  %v6504_v8 = vadd.f32 %v6472_v20, %v6336_v22  ;;  %v6505_v7 = vadd.f32 %v4812_v4, %v2787_v0  ;;  %v6337_v49 = vpop.f32.mrb[26].mxu1  ;;  %v6473_v38 = vpop.f32.mrb[26].mxu0 }
 0x2b7   : > { %4961 = vst.msk [vmem:[#allocation2 + $0xa8] sm:$0xff] %vm283_vm8, %v4928_v28  ;;  %v5101_v50 = vmax.f32 %v5069_v26, 0.0  ;;  %v5070_v33 = vadd.f32 %v9167_v39, %v5031_v19  ;;  %v6004_v46 = vpack.c.bf16 %v5103_v48, %v5103_v48  ;;  %v5104_v16 = vmax.f32 %v5072_v21, 0.0  ;;  %v2790_v6 = vpop.f32.mrb[27].mxu1  ;;  %v4815_v43 = vpop.f32.mrb[27].mxu0  ;;  %v4904_v19 = vld [vmem:[#allocation2 + $0xe8] sm:$0xff] }
 0x2b8   : > { %v4933_v3 = vadd.f32 %v6504_v8, %v4901_v60  ;;  %v6506_v5 = vadd.f32 %v6473_v38, %v6337_v49  ;;  %v4997_v42 = vld [vmem:[#allocation2 + $0xb0] sm:$0xff]  ;;  %v4931_v12 = vadd.f32 %v6505_v7, %v4899_v55  ;;  %v6507_v9 = vadd.f32 %v4815_v43, %v2790_v6 }
 0x2b9   : > { %v6002_v24 = vpack.c.bf16 %v5101_v50, %v5101_v50  ;;  %v5102_v63 = vmax.f32 %v5070_v33, 0.0  ;;  %5264 = vst.msk [vmem:[%s9188_s25 + $0x48] sm:$0xf] %vm5245_vm9, %v6004_v46  ;;  %v6005_v37 = vpack.c.bf16 %v5104_v16, %v5104_v16  ;;  %v5036_v41 = vmul.f32 %v9165_v29, %v4997_v42 }
 0x2ba   : > { %4966 = vst.msk [vmem:[#allocation2 + $0xd0] sm:$0xff] %vm283_vm8, %v4933_v3  ;;  %v4934_v27 = vadd.f32 %v6506_v5, %v4902_v11  ;;  %4964 = vst.msk [vmem:[#allocation2 + $0xc0] sm:$0xff] %vm283_vm8, %v4931_v12  ;;  %v4932_v13 = vadd.f32 %v6507_v9, %v4900_v32 }
 0x2bb   : > { %v4995_v10 = vld [vmem:[#allocation2 + $0xa0] sm:$0xff]  ;;  %5262 = vst.msk [vmem:[%s9188_s25 + $0x40] sm:$0xf] %vm5245_vm9, %v6002_v24  ;;  %v6003_v34 = vpack.c.bf16 %v5102_v63, %v5102_v63  ;;  %v4998_v62 = vld [vmem:[#allocation2 + $0xb8] sm:$0xff]  ;;  %5265 = vst.msk [vmem:[%s9188_s25 + $0x4c] sm:$0xf] %vm5245_vm9, %v6005_v37  ;;  %v5075_v17 = vadd.f32 %v9167_v39, %v5036_v41 }
 0x2bc   : > { %v5034_v54 = vmul.f32 %v9165_v29, %v4995_v10  ;;  %v5037_v59 = vmul.f32 %v9165_v29, %v4998_v62  ;;  %4967 = vst.msk [vmem:[#allocation2 + $0xd8] sm:$0xff] %vm283_vm8, %v4934_v27  ;;  %4965 = vst.msk [vmem:[#allocation2 + $0xc8] sm:$0xff] %vm283_vm8, %v4932_v13  ;;  %v6340_v18 = vpop.f32.mrb[28].mxu1  ;;  %v6476_v25 = vpop.f32.mrb[28].mxu0 }
 0x2bd   : > { %5263 = vst.msk [vmem:[%s9188_s25 + $0x44] sm:$0xf] %vm5245_vm9, %v6003_v34  ;;  %v5107_v45 = vmax.f32 %v5075_v17, 0.0  ;;  %v6508_v2 = vadd.f32 %v6476_v25, %v6340_v18  ;;  %v2803_v14 = vpop.f32.mrb[29].mxu1  ;;  %v4828_v57 = vpop.f32.mrb[29].mxu0 }
 0x2be   : > { %v4996_v30 = vld [vmem:[#allocation2 + $0xa8] sm:$0xff]  ;;  %v5073_v47 = vadd.f32 %v9167_v39, %v5034_v54  ;;  %v5076_v1 = vadd.f32 %v9167_v39, %v5037_v59  ;;  %v6509_v23 = vadd.f32 %v4828_v57, %v2803_v14  ;;  %v6341_v56 = vpop.f32.mrb[30].mxu1  ;;  %v6477_v52 = vpop.f32.mrb[30].mxu0 }
 0x2bf   : > { %v5035_v53 = vmul.f32 %v9165_v29, %v4996_v30  ;;  %v6008_v44 = vpack.c.bf16 %v5107_v45, %v5107_v45  ;;  %v4937_v40 = vadd.f32 %v6508_v2, %v4905_v61  ;;  %v6510_v51 = vadd.f32 %v6477_v52, %v6341_v56  ;;  %v2806_v58 = vpop.f32.mrb[31].mxu1  ;;  %v4831_v26 = vpop.f32.mrb[31].mxu0 }
 0x2c0   : > { %v5105_v36 = vmax.f32 %v5073_v47, 0.0  ;;  %v5108_v28 = vmax.f32 %v5076_v1, 0.0  ;;  %v4935_v48 = vadd.f32 %v6509_v23, %v4903_v15  ;;  %v6511_v21 = vadd.f32 %v4831_v26, %v2806_v58 }
 0x2c1   : > { %v5074_v35 = vadd.f32 %v9167_v39, %v5035_v53  ;;  %v5001_v60 = vld [vmem:[#allocation2 + $0xd0] sm:$0xff]  ;;  %5268 = vst.msk [vmem:[%s9188_s25 + $0x58] sm:$0xf] %vm5245_vm9, %v6008_v44  ;;  %v4999_v4 = vld [vmem:[#allocation2 + $0xc0] sm:$0xff]  ;;  %v4938_v55 = vadd.f32 %v6510_v51, %v4906_v31 }
 0x2c2   : > { %v6006_v22 = vpack.c.bf16 %v5105_v36, %v5105_v36  ;;  %v6009_v8 = vpack.c.bf16 %v5108_v28, %v5108_v28  ;;  %v5040_v0 = vmul.f32 %v9165_v29, %v5001_v60  ;;  %4970 = vst.msk [vmem:[#allocation2 + $0xf0] sm:$0xff] %vm283_vm8, %v4937_v40  ;;  %v5038_v33 = vmul.f32 %v9165_v29, %v4999_v4 }
 0x2c3   : > { %v5106_v20 = vmax.f32 %v5074_v35, 0.0  ;;  %v5002_v7 = vld [vmem:[#allocation2 + $0xd8] sm:$0xff]  ;;  %4968 = vst.msk [vmem:[#allocation2 + $0xe0] sm:$0xff] %vm283_vm8, %v4935_v48  ;;  %v4936_v49 = vadd.f32 %v6511_v21, %v4904_v19  ;;  %v5000_v46 = vld [vmem:[#allocation2 + $0xc8] sm:$0xff]  ;;  %4971 = vst.msk [vmem:[#allocation2 + $0xf8] sm:$0xff] %vm283_vm8, %v4938_v55 }
 0x2c4   : > { %5266 = vst.msk [vmem:[%s9188_s25 + $0x50] sm:$0xf] %vm5245_vm9, %v6006_v22  ;;  %5269 = vst.msk [vmem:[%s9188_s25 + $0x5c] sm:$0xf] %vm5245_vm9, %v6009_v8  ;;  %v5079_v38 = vadd.f32 %v9167_v39, %v5040_v0  ;;  %v5041_v11 = vmul.f32 %v9165_v29, %v5002_v7  ;;  %v5077_v16 = vadd.f32 %v9167_v39, %v5038_v33 }
 0x2c5   : > { %v6007_v50 = vpack.c.bf16 %v5106_v20, %v5106_v20  ;;  %v5039_v3 = vmul.f32 %v9165_v29, %v5000_v46  ;;  %4969 = vst.msk [vmem:[#allocation2 + $0xe8] sm:$0xff] %vm283_vm8, %v4936_v49 }
 0x2c6   : > { %v5111_v5 = vmax.f32 %v5079_v38, 0.0  ;;  %v5080_v6 = vadd.f32 %v9167_v39, %v5041_v11  ;;  %v5109_v43 = vmax.f32 %v5077_v16, 0.0 }
 0x2c7   : > { %5267 = vst.msk [vmem:[%s9188_s25 + $0x54] sm:$0xf] %vm5245_vm9, %v6007_v50  ;;  %v5078_v32 = vadd.f32 %v9167_v39, %v5039_v3 }
 0x2c8   : > { %v6012_v24 = vpack.c.bf16 %v5111_v5, %v5111_v5  ;;  %v5112_v63 = vmax.f32 %v5080_v6, 0.0  ;;  %v6010_v42 = vpack.c.bf16 %v5109_v43, %v5109_v43 }
 0x2c9   : > { %v5110_v12 = vmax.f32 %v5078_v32, 0.0  ;;  %v5005_v9 = vld [vmem:[#allocation2 + $0xf0] sm:$0xff] }
 0x2ca   : > { %5272 = vst.msk [vmem:[%s9188_s25 + $0x68] sm:$0xf] %vm5245_vm9, %v6012_v24  ;;  %v6013_v37 = vpack.c.bf16 %v5112_v63, %v5112_v63  ;;  %v5044_v41 = vmul.f32 %v9165_v29, %v5005_v9  ;;  %v5003_v10 = vld [vmem:[#allocation2 + $0xe0] sm:$0xff]  ;;  %5270 = vst.msk [vmem:[%s9188_s25 + $0x60] sm:$0xf] %vm5245_vm9, %v6010_v42  ;;  %v5006_v54 = vld [vmem:[#allocation2 + $0xf8] sm:$0xff] }
 0x2cb   : > { %v6011_v27 = vpack.c.bf16 %v5110_v12, %v5110_v12  ;;  %v5042_v34 = vmul.f32 %v9165_v29, %v5003_v10  ;;  %v5045_v13 = vmul.f32 %v9165_v29, %v5006_v54 }
 0x2cc   : > { %5273 = vst.msk [vmem:[%s9188_s25 + $0x6c] sm:$0xf] %vm5245_vm9, %v6013_v37  ;;  %v5083_v62 = vadd.f32 %v9167_v39, %v5044_v41  ;;  %v5004_v17 = vld [vmem:[#allocation2 + $0xe8] sm:$0xff] }
 0x2cd   : > { %5271 = vst.msk [vmem:[%s9188_s25 + $0x64] sm:$0xf] %vm5245_vm9, %v6011_v27  ;;  %v5081_v59 = vadd.f32 %v9167_v39, %v5042_v34  ;;  %v5043_v30 = vmul.f32 %v9165_v29, %v5004_v17  ;;  %v5084_v53 = vadd.f32 %v9167_v39, %v5045_v13 }
 0x2ce   : > { %v5115_v47 = vmax.f32 %v5083_v62, 0.0 }
 0x2cf   : > { %v5113_v18 = vmax.f32 %v5081_v59, 0.0  ;;  %v5082_v25 = vadd.f32 %v9167_v39, %v5043_v30  ;;  %v5116_v45 = vmax.f32 %v5084_v53, 0.0 }
 0x2d0   : > { %v6016_v61 = vpack.c.bf16 %v5115_v47, %v5115_v47 }
 0x2d1   : > { %v6014_v1 = vpack.c.bf16 %v5113_v18, %v5113_v18  ;;  %v5114_v2 = vmax.f32 %v5082_v25, 0.0  ;;  %v6017_v14 = vpack.c.bf16 %v5116_v45, %v5116_v45 }
 0x2d2   : > { %5276 = vst.msk [vmem:[%s9188_s25 + $0x78] sm:$0xf] %vm5245_vm9, %v6016_v61 }
 0x2d3   : > { %5274 = vst.msk [vmem:[%s9188_s25 + $0x70] sm:$0xf] %vm5245_vm9, %v6014_v1  ;;  %v6015_v29 = vpack.c.bf16 %v5114_v2, %v5114_v2  ;;  %5277 = vst.msk [vmem:[%s9188_s25 + $0x7c] sm:$0xf] %vm5245_vm9, %v6017_v14 }
 0x2d5   : > { %5275 = vst.msk [vmem:[%s9188_s25 + $0x74] sm:$0xf] %vm5245_vm9, %v6015_v29 }
 0x2d6   : > { %7079 = shalt.err (!%p7076_p0)
}
 0x2d7   : > { %s7080_s29 = scalar_lea.hbm %s9337_s6, 2048  ;;  %s7084_s10 = scalar_lea.hbm %s9398_s4, 4096 }
 0x2d8   : > { %p7081_p4 = scmp.ne.s32.totalorder %s9337_s6, %s7080_s29  ;;  %p7085_p12 = scmp.lt.u32.totalorder %s9337_s6, %s9398_s4 }
 0x2d9   : > { %p7086_p1 = scmp.lt.u32.totalorder %s7084_s10, %s7080_s29  ;;  %p7088_p13 = scmp.lt.u32.totalorder %s7080_s29, %s9337_s6 }
 0x2da   : > { %p7082_p2 = pnand %p7081_p4, %p7347_p10 }
 0x2db   : > { %p7087_p11 = por %p7086_p1, %p7085_p12 }
 0x2dc   : > { %p7083_p8 = pneg %p7082_p2 }
 0x2dd   : > { %p7089_p6 = por %p7088_p13, %p7087_p11 }
 0x2df   : > { %p7090_p3 = pnand %p7089_p6, %p7083_p8 }
 0x2e1   : > { %7093 = shalt.err (!%p7090_p3)
}
 0x2e2   : > { %s7168_s25 = smov 64   ;;  %s7169_s27 = smov 4  }
 0x2e3   : > { %6763 = dma.vmem_to_hbm [thread:$0]  (%p7347_p10), %s9339_s11, 2048, %s9337_s6, %s5279_s18, %s7168_s25, %s7168_s25, %s7169_s27  }
 0x2e4 PF: > { %s9504_s21 = sld [smem:[#allocation16_spill]]  ;;  %s5307_s28 = sand.u32 1, %s7136_s15  }
 0x2e5   : > { %p9506_p7 = scmp.ge.s32.totalorder %s7156_s20, 2  ;;  %s5308_s7 = scalar_lea.sflag [#allocation5], %s5307_s28 }
 0x2ea   : > { %p9505_p5 = scmp.ne.s32.totalorder %s9504_s21, 0 }
 0x2ec   : > { %p6780_p9 = pnand %p9506_p7, %p9505_p5 }
 0x2ee   : > { %7131 = dma.done.wait (!%p6780_p9), %s5308_s7, 2048  }
 0x2ef   : > { %7133 = vsyncadd (!%p6780_p9), %s5308_s7, 4294965248  ;;  %s22_s20 = sadd.s32 1, %s7156_s20   ;;  %s9507_s15 = smov %s7140_s16 }
 0x2f0   : > { %p19_p0 = scmp.ge.s32.totalorder %s22_s20, 4   ;;  %s9508_s16 = smov %s7144_s17 }
 0x2f1   : > { %s9509_s17 = smov %s7363_s24  ;;  %s9510_s18 = smov %s7152_s19 }
 0x2f2   : > { %s9511_s19 = smov %s9513_s26  ;;  %21 = sbr.rel (!%p19_p0) target bundleno = 8 (0x8), region = 112 }
 0x2f9   :  { %5313 = vsyncpa [#allocation4], 1 }
 0x2fa   :  { %5315 = vsyncpa [#allocation4 + $0x1], 1 }
 0x2fb   :  { %5316 = vsyncpa [#allocation7], 1 }
 0x2fc   :  { %5317 = vsyncpa [#allocation10], 1 }
 0x2fd   :  { %5318 = vsyncpa [#allocation5], 1 }
 0x2fe   :  { %5320 = vsyncpa [#allocation5 + $0x1], 1 }

</bundles_post_ra>
